<compile_context>
chip_gen: v6e
topology: v6e:2x2x1
jax: 0.10.0
libtpu: 0.0.40
codegen_flags: <defaults>
</compile_context>

<pallas_src>
import math

import jax
import jax.numpy as jnp
from jax.experimental import pallas as pl
from jax.experimental.pallas import tpu as pltpu

BN_EPS = 1e-5
LANE = 128
SUBLANE = 8

# Conservative per-final-frame VMEM working-set estimate (bytes): bf16 input
# double-buffer + a handful of lane-padded f32 temporaries per block + the
# 3-D maxpool reshape temporary.  Used only to cap the tile size.
_PER_FRAME_VMEM = 112 * 1024
_VMEM_WORKING_BUDGET = 40 * 1024 * 1024


# ----------------------------------------------------------------------------
# Fused Pallas kernel (whole network, one time-tile of one batch element)
# ----------------------------------------------------------------------------
def _make_fused_kernel(block_cfgs):
    """block_cfgs: tuple of (cout, downsample) per ResBlock."""
    n_blocks = len(block_cfgs)

    def kernel(*refs):
        # refs layout (inputs..., output):
        #   [0]              x tile                (rows_in, C0)  VMEM (bf16)
        #   [1+4i .. 4+4i]   block i: w1(cat), b1, w2, b2         VMEM (f32)
        #   [1+4n]           final conv weight     (Cin_f, spk_p) VMEM
        #   [2+4n]           final conv bias       (1, spk_p)     VMEM
        #   [3+4n]           PReLU slopes          (n_blocks, 2)  SMEM
        #   [4+4n]           output tile           (spk_p, f_t)   VMEM
        x_ref = refs[0]
        wf_ref = refs[1 + 4 * n_blocks]
        bf_ref = refs[2 + 4 * n_blocks]
        a_ref = refs[3 + 4 * n_blocks]
        o_ref = refs[4 + 4 * n_blocks]

        # bf16 HBM stream -> f32 immediately (keeps all VPU math f32; v5e-safe)
        h = x_ref[...].astype(jnp.float32)                  # (rows, Cin)

        for i, (cout, downsample) in enumerate(block_cfgs):
            w1_ref = refs[1 + 4 * i]
            b1_ref = refs[2 + 4 * i]
            w2_ref = refs[3 + 4 * i]
            b2_ref = refs[4 + 4 * i]
            a1 = a_ref[i, 0]
            a2 = a_ref[i, 1]

            # conv1x1 (+ residual 1x1 projection columns when downsampling):
            # one wide MXU push instead of two narrow ones.
            y = jnp.dot(h, w1_ref[...], preferred_element_type=jnp.float32)
            if downsample:
                res = y[:, cout:]
                y = y[:, :cout]
            else:
                res = h
            # BN1 scale is folded into w1 -> only the per-channel shift remains
            y = y + b1_ref[...]
            y = jnp.where(y >= 0.0, y, a1 * y)               # PReLU 1

            # conv1x1_2 with BN2 scale folded in, then shift.
            y = jnp.dot(y, w2_ref[...], preferred_element_type=jnp.float32)
            y = y + b2_ref[...]

            z = y + res
            z = jnp.where(z >= 0.0, z, a2 * z)               # PReLU 2

            # MaxPool1d(kernel=3, stride=3) along time (rows); tile row counts
            # are always multiples of 3**n_blocks so windows never straddle
            # tile boundaries.
            rows = z.shape[0]
            h = jnp.max(z.reshape(rows // 3, 3, cout), axis=1)

        # Final Conv1d(kernel_size=1), then transpose so the store is
        # lane-dense over frames with only 8-sublane channel padding.
        y = jnp.dot(h, wf_ref[...], preferred_element_type=jnp.float32)
        y = y + bf_ref[...]                                  # (f_t, spk_p)
        o_ref[...] = y.T.astype(o_ref.dtype)                 # (spk_p, f_t)

    return kernel


# ----------------------------------------------------------------------------
# Tile sizing: VMEM-budgeted, megacore-aware, (8,128)-legal
# ----------------------------------------------------------------------------
def _choose_frames_per_tile(F, B, requested):
    cap = max(SUBLANE, _VMEM_WORKING_BUDGET // _PER_FRAME_VMEM)
    f_t = max(SUBLANE, min(int(requested), cap))
    # Guarantee >= 4 grid steps when the input allows it (2 TCs on v7x + keeps
    # the pipeline busy); never raises f_t, only shrinks it.
    want_steps = max(1, math.ceil(4 / max(B, 1)))
    if F >= 2 * LANE:
        per_step = max(LANE, (F // want_steps) // LANE * LANE)
        f_t = min(f_t, per_step)
    if f_t < F:
        # Inner (non-full) time tiles must be multiples of 128 frames so the
        # transposed output block's last dim stays lane-dense and legal.
        f_t = max(LANE, f_t // LANE * LANE)
    else:
        # Single tile covers all frames: only 8-sublane alignment needed.
        f_t = SUBLANE * math.ceil(F / SUBLANE)
    return f_t


# ----------------------------------------------------------------------------
# Wrapper (layout plumbing + pallas_call glue)
# ----------------------------------------------------------------------------
def speaker_encoder_forward(x_nct, params, *, frames_per_tile=256,
                            io_dtype=jnp.bfloat16, input_buffers=2,
                            vmem_limit_bytes=48 * 1024 * 1024):
    """PyTorch-equivalent forward.  x_nct: (B, C, T) -> (B, spk_emb, T//3^n)."""
    B, C, T = x_nct.shape
    blocks = params["blocks"]
    n_blocks = len(blocks)
    pool = 3 ** n_blocks                       # input rows per final frame
    F = T // pool                              # final output frames
    assert F >= 1, "input too short for the pooling pyramid"

    f_t = _choose_frames_per_tile(F, B, frames_per_tile)
    F_pad = f_t * math.ceil(F / f_t)
    n_t = F_pad // f_t
    rows_in = pool * f_t

    # Final frame k depends exactly on input rows [pool*k, pool*(k+1)): drop
    # the trailing remainder and zero-pad whole frames (padding cannot leak
    # into valid frames).  Stream the big activation slab as bf16.
    x = jnp.transpose(x_nct, (0, 2, 1))[:, : pool * F, :]    # (B, pool*F, C)
    x = jnp.pad(x, ((0, 0), (0, pool * (F_pad - F)), (0, 0)))
    x = x.astype(io_dtype)

    spk_emb = params["spk_emb"]
    spk_p = params["final_w"].shape[1]         # spk_emb rounded up to 8

    def _resident(arr):                        # tiny weights: resident in VMEM
        return pl.BlockSpec(arr.shape, lambda b, t: (0,) * arr.ndim)

    x_spec_kwargs = {}
    if input_buffers and int(input_buffers) > 2:
        # Deeper buffering on the one streamed input (useful on v5e).
        x_spec_kwargs["pipeline_mode"] = pl.Buffered(int(input_buffers))

    flat_inputs = [x]
    in_specs = [pl.BlockSpec((None, rows_in, C), lambda b, t: (b, t, 0),
                             **x_spec_kwargs)]

    block_cfgs = []
    slopes = []
    for blk in blocks:
        cout = blk["w1"].shape[1]
        downsample = "wd" in blk
        w1 = (jnp.concatenate([blk["w1"], blk["wd"]], axis=1)
              if downsample else blk["w1"])
        for arr in (w1, blk["b1"], blk["w2"], blk["b2"]):
            flat_inputs.append(arr)
            in_specs.append(_resident(arr))
        slopes.append(blk["a"])
        block_cfgs.append((cout, downsample))

    flat_inputs += [params["final_w"], params["final_b"]]
    in_specs += [_resident(params["final_w"]), _resident(params["final_b"])]

    slopes = jnp.stack(slopes).astype(jnp.float32)           # (n_blocks, 2)
    flat_inputs.append(slopes)
    in_specs.append(pl.BlockSpec(memory_space=pltpu.MemorySpace.SMEM))

    kernel = _make_fused_kernel(tuple(block_cfgs))

    out = pl.pallas_call(
        kernel,
        out_shape=jax.ShapeDtypeStruct((B, spk_p, F_pad), jnp.float32),
        grid_spec=pltpu.PrefetchScalarGridSpec(
            num_scalar_prefetch=0,
            grid=(B, n_t),
            in_specs=in_specs,
            # transposed, lane-dense output: (channels, frames)
            out_specs=pl.BlockSpec((None, spk_p, f_t), lambda b, t: (b, 0, t)),
        ),
        compiler_params=pltpu.CompilerParams(
            dimension_semantics=("parallel", "parallel"),
            vmem_limit_bytes=int(vmem_limit_bytes),
        ),
    )(*flat_inputs)

    # Drop channel + frame padding; already in (B, spk_emb, F) layout.
    return out[:, :spk_emb, :F]


# ----------------------------------------------------------------------------
# Deterministic parameter construction (eval-mode BN folded into the weights)
# ----------------------------------------------------------------------------
def _fold_bn(gamma, beta, mean, var):
    scale = gamma / jnp.sqrt(var + BN_EPS)
    shift = beta - mean * scale
    return scale, shift


def init_params(key, num_blocks, emb_dim, intermed_dim, spk_emb):
    def conv_w(k, cin, cout):
        return (jax.random.normal(k, (cin, cout), jnp.float32)
                / jnp.sqrt(jnp.float32(cin)))

    def bn(k, c):
        k1, k2, k3, k4 = jax.random.split(k, 4)
        gamma = 1.0 + 0.1 * jax.random.normal(k1, (c,), jnp.float32)
        beta = 0.05 * jax.random.normal(k2, (c,), jnp.float32)
        mean = 0.1 * jax.random.normal(k3, (c,), jnp.float32)
        var = 1.0 + 0.1 * jnp.abs(jax.random.normal(k4, (c,), jnp.float32))
        return _fold_bn(gamma, beta, mean, var)

    blocks = []
    for i in range(num_blocks):
        if i < num_blocks - 2:
            cin, cout = emb_dim, emb_dim
        elif i == num_blocks - 2:
            cin, cout = emb_dim, intermed_dim
        else:
            cin, cout = intermed_dim, intermed_dim
        key, k1, k2, k3, k4, k5 = jax.random.split(key, 6)
        s1, b1 = bn(k3, cout)
        s2, b2 = bn(k4, cout)
        blk = {
            # eval-mode BN: fold the scale into the preceding 1x1 conv weight
            "w1": conv_w(k1, cin, cout) * s1[None, :],
            "b1": b1[None, :],
            "w2": conv_w(k2, cout, cout) * s2[None, :],
            "b2": b2[None, :],
            # PyTorch PReLU default init: single slope = 0.25 (two per block)
            "a": jnp.array([0.25, 0.25], jnp.float32),
        }
        if cin != cout:
            blk["wd"] = conv_w(k5, cin, cout)     # residual 1x1 (no BN)
        blocks.append(blk)

    key, kw, kb = jax.random.split(key, 3)
    spk_p = SUBLANE * math.ceil(spk_emb / SUBLANE)   # 8-sublane channel pad
    final_w = jnp.zeros((intermed_dim, spk_p), jnp.float32)
    final_w = final_w.at[:, :spk_emb].set(
        jax.random.normal(kw, (intermed_dim, spk_emb), jnp.float32)
        / jnp.sqrt(jnp.float32(intermed_dim)))
    final_b = jnp.zeros((1, spk_p), jnp.float32)
    final_b = final_b.at[:, :spk_emb].set(
        0.1 * jax.random.normal(kb, (1, spk_emb), jnp.float32))
    return {"blocks": blocks, "final_w": final_w, "final_b": final_b,
            "spk_emb": spk_emb}


# ----------------------------------------------------------------------------
# Pure-JAX reference (same math, un-fused) for correctness checking
# ----------------------------------------------------------------------------
def reference_forward(x_nct, params, io_dtype=jnp.bfloat16):
    B, C, T = x_nct.shape
    # Apply the same bf16 input quantization the kernel's HBM stream uses.
    h = jnp.transpose(x_nct, (0, 2, 1)).astype(io_dtype).astype(jnp.float32)
    hp = jax.lax.Precision.HIGHEST
    for blk in params["blocks"]:
        a1, a2 = blk["a"][0], blk["a"][1]
        y = jnp.dot(h, blk["w1"], precision=hp) + blk["b1"]
        y = jnp.where(y >= 0.0, y, a1 * y)
        y = jnp.dot(y, blk["w2"], precision=hp) + blk["b2"]
        res = jnp.dot(h, blk["wd"], precision=hp) if "wd" in blk else h
        z = y + res
        z = jnp.where(z >= 0.0, z, a2 * z)
        t3 = z.shape[1] // 3
        h = z[:, : 3 * t3, :].reshape(B, t3, 3, z.shape[-1]).max(axis=2)
    out = jnp.dot(h, params["final_w"], precision=hp) + params["final_b"]
    out = out[..., : params["spk_emb"]]
    return jnp.transpose(out, (0, 2, 1))


# ----------------------------------------------------------------------------
if __name__ == "__main__":
    num_res_net_blocks = 3
    extractor_emb_dim = 32
    extractor_intermed_dim = 64
    spk_emb = 16

    key = jax.random.PRNGKey(0)
    key, kp = jax.random.split(key)
    params = init_params(kp, num_res_net_blocks, extractor_emb_dim,
                         extractor_intermed_dim, spk_emb)

    # Tolerance note: kernel matmuls use default Mosaic MXU precision while the
    # reference uses Precision.HIGHEST (both see identically bf16-quantized
    # inputs), so allow ~1% discrepancy.
    TOL = 1e-2

    # Case 1: minimal single-tile path (81 -> 27 -> 9 -> 3 frames).
    B, T = 2, 81
    key, kx = jax.random.split(key)
    x = jax.random.normal(kx, (B, extractor_emb_dim, T), jnp.float32)   # NCT
    out = jax.block_until_ready(speaker_encoder_forward(x, params))
    ref = jax.block_until_ready(reference_forward(x, params))
    assert out.shape == (B, spk_emb, T // 27), out.shape
    assert jnp.allclose(out, ref, rtol=TOL, atol=TOL), (
        float(jnp.max(jnp.abs(out - ref))))

    # Case 2: multi-tile path (multiple 128-frame tiles, tail-frame padding,
    # B x n_t >= 4 grid steps for megacore sharding).
    B2, T2 = 2, 27 * 300
    key, kx2 = jax.random.split(key)
    x2 = jax.random.normal(kx2, (B2, extractor_emb_dim, T2), jnp.float32)
    out2 = jax.block_until_ready(speaker_encoder_forward(x2, params))
    ref2 = jax.block_until_ready(reference_forward(x2, params))
    assert out2.shape == (B2, spk_emb, T2 // 27), out2.shape
    assert jnp.allclose(out2, ref2, rtol=TOL, atol=TOL), (
        float(jnp.max(jnp.abs(out2 - ref2))))

    print("KERNEL_OK")
</pallas_src>

<mosaic_0001>
module attributes {stable_mosaic.version = 11 : i64} {
  func.func @kernel(%arg0: i32, %arg1: i32, %arg2: memref<1x216x32xbf16, #tpu.memory_space<vmem>>, %arg3: memref<32x32xf32, #tpu.memory_space<vmem>>, %arg4: memref<1x32xf32, #tpu.memory_space<vmem>>, %arg5: memref<32x32xf32, #tpu.memory_space<vmem>>, %arg6: memref<1x32xf32, #tpu.memory_space<vmem>>, %arg7: memref<32x128xf32, #tpu.memory_space<vmem>>, %arg8: memref<1x64xf32, #tpu.memory_space<vmem>>, %arg9: memref<64x64xf32, #tpu.memory_space<vmem>>, %arg10: memref<1x64xf32, #tpu.memory_space<vmem>>, %arg11: memref<64x64xf32, #tpu.memory_space<vmem>>, %arg12: memref<1x64xf32, #tpu.memory_space<vmem>>, %arg13: memref<64x64xf32, #tpu.memory_space<vmem>>, %arg14: memref<1x64xf32, #tpu.memory_space<vmem>>, %arg15: memref<64x16xf32, #tpu.memory_space<vmem>>, %arg16: memref<1x16xf32, #tpu.memory_space<vmem>>, %arg17: memref<3x2xf32, #tpu.memory_space<smem>>, %arg18: memref<1x16x8xf32, #tpu.memory_space<vmem>>) attributes {dimension_semantics = [#tpu.dimension_semantics<parallel>, #tpu.dimension_semantics<parallel>], iteration_bounds = array<i64: 2, 1>, scalar_prefetch = 0 : i64, scratch_operands = 0 : i64, tpu.core_type = #tpu.core_type<tc>, window_params = [{transform_indices = @transform_0, window_bounds = array<i64: 1, 216, 32>}, {pipeline_mode = #tpu.pipeline_mode<synchronous>, transform_indices = @transform_1, window_bounds = array<i64: 32, 32>}, {pipeline_mode = #tpu.pipeline_mode<synchronous>, transform_indices = @transform_2, window_bounds = array<i64: 1, 32>}, {pipeline_mode = #tpu.pipeline_mode<synchronous>, transform_indices = @transform_3, window_bounds = array<i64: 32, 32>}, {pipeline_mode = #tpu.pipeline_mode<synchronous>, transform_indices = @transform_4, window_bounds = array<i64: 1, 32>}, {pipeline_mode = #tpu.pipeline_mode<synchronous>, transform_indices = @transform_5, window_bounds = array<i64: 32, 128>}, {pipeline_mode = #tpu.pipeline_mode<synchronous>, transform_indices = @transform_6, window_bounds = array<i64: 1, 64>}, {pipeline_mode = #tpu.pipeline_mode<synchronous>, transform_indices = @transform_7, window_bounds = array<i64: 64, 64>}, {pipeline_mode = #tpu.pipeline_mode<synchronous>, transform_indices = @transform_8, window_bounds = array<i64: 1, 64>}, {pipeline_mode = #tpu.pipeline_mode<synchronous>, transform_indices = @transform_9, window_bounds = array<i64: 64, 64>}, {pipeline_mode = #tpu.pipeline_mode<synchronous>, transform_indices = @transform_10, window_bounds = array<i64: 1, 64>}, {pipeline_mode = #tpu.pipeline_mode<synchronous>, transform_indices = @transform_11, window_bounds = array<i64: 64, 64>}, {pipeline_mode = #tpu.pipeline_mode<synchronous>, transform_indices = @transform_12, window_bounds = array<i64: 1, 64>}, {pipeline_mode = #tpu.pipeline_mode<synchronous>, transform_indices = @transform_13, window_bounds = array<i64: 64, 16>}, {pipeline_mode = #tpu.pipeline_mode<synchronous>, transform_indices = @transform_14, window_bounds = array<i64: 1, 16>}, {transform_indices = @transform_15, window_bounds = array<i64: 3, 2>}, {transform_indices = @transform_16, window_bounds = array<i64: 1, 16, 8>}]} {
    %c0 = arith.constant 0 : index
    %c0_0 = arith.constant 0 : index
    %c0_1 = arith.constant 0 : index
    %0 = vector.load %arg2[%c0, %c0_0, %c0_1] : memref<1x216x32xbf16, #tpu.memory_space<vmem>>, vector<1x216x32xbf16>
    %1 = vector.shape_cast %0 : vector<1x216x32xbf16> to vector<216x32xbf16>
    %2 = arith.extf %1 : vector<216x32xbf16> to vector<216x32xf32>
    %c0_2 = arith.constant 0 : index
    %c0_3 = arith.constant 0 : index
    %3 = memref.load %arg17[%c0_2, %c0_3] : memref<3x2xf32, #tpu.memory_space<smem>>
    %c0_4 = arith.constant 0 : index
    %c1 = arith.constant 1 : index
    %4 = memref.load %arg17[%c0_4, %c1] : memref<3x2xf32, #tpu.memory_space<smem>>
    %c0_5 = arith.constant 0 : index
    %c0_6 = arith.constant 0 : index
    %5 = vector.load %arg3[%c0_5, %c0_6] : memref<32x32xf32, #tpu.memory_space<vmem>>, vector<32x32xf32>
    %cst = arith.constant dense<0.000000e+00> : vector<216x32xf32>
    %6 = tpu.matmul %2, %5, %cst {dimension_numbers = #tpu.dot_dimension_numbers<[1], [0], [0], [1], [0, 0, 1, 1], [], []>} : vector<216x32xf32>, vector<32x32xf32>, vector<216x32xf32> -> vector<216x32xf32>
    %c0_7 = arith.constant 0 : index
    %c0_8 = arith.constant 0 : index
    %7 = vector.load %arg4[%c0_7, %c0_8] : memref<1x32xf32, #tpu.memory_space<vmem>>, vector<1x32xf32>
    %8 = vector.broadcast %7 : vector<1x32xf32> to vector<216x32xf32>
    %9 = arith.addf %6, %8 : vector<216x32xf32>
    %cst_9 = arith.constant 0.000000e+00 : f32
    %10 = vector.broadcast %cst_9 : f32 to vector<216x32xf32>
    %11 = arith.cmpf oge, %9, %10 : vector<216x32xf32>
    %12 = vector.broadcast %3 : f32 to vector<216x32xf32>
    %13 = arith.mulf %12, %9 : vector<216x32xf32>
    %14 = arith.select %11, %9, %13 : vector<216x32xi1>, vector<216x32xf32>
    %c0_10 = arith.constant 0 : index
    %c0_11 = arith.constant 0 : index
    %15 = vector.load %arg5[%c0_10, %c0_11] : memref<32x32xf32, #tpu.memory_space<vmem>>, vector<32x32xf32>
    %cst_12 = arith.constant dense<0.000000e+00> : vector<216x32xf32>
    %16 = tpu.matmul %14, %15, %cst_12 {dimension_numbers = #tpu.dot_dimension_numbers<[1], [0], [0], [1], [0, 0, 1, 1], [], []>} : vector<216x32xf32>, vector<32x32xf32>, vector<216x32xf32> -> vector<216x32xf32>
    %c0_13 = arith.constant 0 : index
    %c0_14 = arith.constant 0 : index
    %17 = vector.load %arg6[%c0_13, %c0_14] : memref<1x32xf32, #tpu.memory_space<vmem>>, vector<1x32xf32>
    %18 = vector.broadcast %17 : vector<1x32xf32> to vector<216x32xf32>
    %19 = arith.addf %16, %18 : vector<216x32xf32>
    %20 = arith.addf %19, %2 : vector<216x32xf32>
    %cst_15 = arith.constant 0.000000e+00 : f32
    %21 = vector.broadcast %cst_15 : f32 to vector<216x32xf32>
    %22 = arith.cmpf oge, %20, %21 : vector<216x32xf32>
    %23 = vector.broadcast %4 : f32 to vector<216x32xf32>
    %24 = arith.mulf %23, %20 : vector<216x32xf32>
    %25 = arith.select %22, %20, %24 : vector<216x32xi1>, vector<216x32xf32>
    %26 = vector.shape_cast %25 : vector<216x32xf32> to vector<72x3x32xf32>
    %cst_16 = arith.constant dense<0xFF800000> : vector<72x32xf32>
    %27 = vector.multi_reduction <maximumf>, %26, %cst_16 [1] : vector<72x3x32xf32> to vector<72x32xf32>
    %c1_17 = arith.constant 1 : index
    %c0_18 = arith.constant 0 : index
    %28 = memref.load %arg17[%c1_17, %c0_18] : memref<3x2xf32, #tpu.memory_space<smem>>
    %c1_19 = arith.constant 1 : index
    %c1_20 = arith.constant 1 : index
    %29 = memref.load %arg17[%c1_19, %c1_20] : memref<3x2xf32, #tpu.memory_space<smem>>
    %c0_21 = arith.constant 0 : index
    %c0_22 = arith.constant 0 : index
    %30 = vector.load %arg7[%c0_21, %c0_22] : memref<32x128xf32, #tpu.memory_space<vmem>>, vector<32x128xf32>
    %cst_23 = arith.constant dense<0.000000e+00> : vector<72x128xf32>
    %31 = tpu.matmul %27, %30, %cst_23 {dimension_numbers = #tpu.dot_dimension_numbers<[1], [0], [0], [1], [0, 0, 1, 1], [], []>} : vector<72x32xf32>, vector<32x128xf32>, vector<72x128xf32> -> vector<72x128xf32>
    %32 = vector.extract_strided_slice %31 {offsets = [0, 64], sizes = [72, 64], strides = [1, 1]} : vector<72x128xf32> to vector<72x64xf32>
    %33 = vector.extract_strided_slice %31 {offsets = [0, 0], sizes = [72, 64], strides = [1, 1]} : vector<72x128xf32> to vector<72x64xf32>
    %c0_24 = arith.constant 0 : index
    %c0_25 = arith.constant 0 : index
    %34 = vector.load %arg8[%c0_24, %c0_25] : memref<1x64xf32, #tpu.memory_space<vmem>>, vector<1x64xf32>
    %35 = vector.broadcast %34 : vector<1x64xf32> to vector<72x64xf32>
    %36 = arith.addf %33, %35 : vector<72x64xf32>
    %cst_26 = arith.constant 0.000000e+00 : f32
    %37 = vector.broadcast %cst_26 : f32 to vector<72x64xf32>
    %38 = arith.cmpf oge, %36, %37 : vector<72x64xf32>
    %39 = vector.broadcast %28 : f32 to vector<72x64xf32>
    %40 = arith.mulf %39, %36 : vector<72x64xf32>
    %41 = arith.select %38, %36, %40 : vector<72x64xi1>, vector<72x64xf32>
    %c0_27 = arith.constant 0 : index
    %c0_28 = arith.constant 0 : index
    %42 = vector.load %arg9[%c0_27, %c0_28] : memref<64x64xf32, #tpu.memory_space<vmem>>, vector<64x64xf32>
    %cst_29 = arith.constant dense<0.000000e+00> : vector<72x64xf32>
    %43 = tpu.matmul %41, %42, %cst_29 {dimension_numbers = #tpu.dot_dimension_numbers<[1], [0], [0], [1], [0, 0, 1, 1], [], []>} : vector<72x64xf32>, vector<64x64xf32>, vector<72x64xf32> -> vector<72x64xf32>
    %c0_30 = arith.constant 0 : index
    %c0_31 = arith.constant 0 : index
    %44 = vector.load %arg10[%c0_30, %c0_31] : memref<1x64xf32, #tpu.memory_space<vmem>>, vector<1x64xf32>
    %45 = vector.broadcast %44 : vector<1x64xf32> to vector<72x64xf32>
    %46 = arith.addf %43, %45 : vector<72x64xf32>
    %47 = arith.addf %46, %32 : vector<72x64xf32>
    %cst_32 = arith.constant 0.000000e+00 : f32
    %48 = vector.broadcast %cst_32 : f32 to vector<72x64xf32>
    %49 = arith.cmpf oge, %47, %48 : vector<72x64xf32>
    %50 = vector.broadcast %29 : f32 to vector<72x64xf32>
    %51 = arith.mulf %50, %47 : vector<72x64xf32>
    %52 = arith.select %49, %47, %51 : vector<72x64xi1>, vector<72x64xf32>
    %53 = vector.shape_cast %52 : vector<72x64xf32> to vector<24x3x64xf32>
    %cst_33 = arith.constant dense<0xFF800000> : vector<24x64xf32>
    %54 = vector.multi_reduction <maximumf>, %53, %cst_33 [1] : vector<24x3x64xf32> to vector<24x64xf32>
    %c2 = arith.constant 2 : index
    %c0_34 = arith.constant 0 : index
    %55 = memref.load %arg17[%c2, %c0_34] : memref<3x2xf32, #tpu.memory_space<smem>>
    %c2_35 = arith.constant 2 : index
    %c1_36 = arith.constant 1 : index
    %56 = memref.load %arg17[%c2_35, %c1_36] : memref<3x2xf32, #tpu.memory_space<smem>>
    %c0_37 = arith.constant 0 : index
    %c0_38 = arith.constant 0 : index
    %57 = vector.load %arg11[%c0_37, %c0_38] : memref<64x64xf32, #tpu.memory_space<vmem>>, vector<64x64xf32>
    %cst_39 = arith.constant dense<0.000000e+00> : vector<24x64xf32>
    %58 = tpu.matmul %54, %57, %cst_39 {dimension_numbers = #tpu.dot_dimension_numbers<[1], [0], [0], [1], [0, 0, 1, 1], [], []>} : vector<24x64xf32>, vector<64x64xf32>, vector<24x64xf32> -> vector<24x64xf32>
    %c0_40 = arith.constant 0 : index
    %c0_41 = arith.constant 0 : index
    %59 = vector.load %arg12[%c0_40, %c0_41] : memref<1x64xf32, #tpu.memory_space<vmem>>, vector<1x64xf32>
    %60 = vector.broadcast %59 : vector<1x64xf32> to vector<24x64xf32>
    %61 = arith.addf %58, %60 : vector<24x64xf32>
    %cst_42 = arith.constant 0.000000e+00 : f32
    %62 = vector.broadcast %cst_42 : f32 to vector<24x64xf32>
    %63 = arith.cmpf oge, %61, %62 : vector<24x64xf32>
    %64 = vector.broadcast %55 : f32 to vector<24x64xf32>
    %65 = arith.mulf %64, %61 : vector<24x64xf32>
    %66 = arith.select %63, %61, %65 : vector<24x64xi1>, vector<24x64xf32>
    %c0_43 = arith.constant 0 : index
    %c0_44 = arith.constant 0 : index
    %67 = vector.load %arg13[%c0_43, %c0_44] : memref<64x64xf32, #tpu.memory_space<vmem>>, vector<64x64xf32>
    %cst_45 = arith.constant dense<0.000000e+00> : vector<24x64xf32>
    %68 = tpu.matmul %66, %67, %cst_45 {dimension_numbers = #tpu.dot_dimension_numbers<[1], [0], [0], [1], [0, 0, 1, 1], [], []>} : vector<24x64xf32>, vector<64x64xf32>, vector<24x64xf32> -> vector<24x64xf32>
    %c0_46 = arith.constant 0 : index
    %c0_47 = arith.constant 0 : index
    %69 = vector.load %arg14[%c0_46, %c0_47] : memref<1x64xf32, #tpu.memory_space<vmem>>, vector<1x64xf32>
    %70 = vector.broadcast %69 : vector<1x64xf32> to vector<24x64xf32>
    %71 = arith.addf %68, %70 : vector<24x64xf32>
    %72 = arith.addf %71, %54 : vector<24x64xf32>
    %cst_48 = arith.constant 0.000000e+00 : f32
    %73 = vector.broadcast %cst_48 : f32 to vector<24x64xf32>
    %74 = arith.cmpf oge, %72, %73 : vector<24x64xf32>
    %75 = vector.broadcast %56 : f32 to vector<24x64xf32>
    %76 = arith.mulf %75, %72 : vector<24x64xf32>
    %77 = arith.select %74, %72, %76 : vector<24x64xi1>, vector<24x64xf32>
    %78 = vector.shape_cast %77 : vector<24x64xf32> to vector<8x3x64xf32>
    %cst_49 = arith.constant dense<0xFF800000> : vector<8x64xf32>
    %79 = vector.multi_reduction <maximumf>, %78, %cst_49 [1] : vector<8x3x64xf32> to vector<8x64xf32>
    %c0_50 = arith.constant 0 : index
    %c0_51 = arith.constant 0 : index
    %80 = vector.load %arg15[%c0_50, %c0_51] : memref<64x16xf32, #tpu.memory_space<vmem>>, vector<64x16xf32>
    %cst_52 = arith.constant dense<0.000000e+00> : vector<8x16xf32>
    %81 = tpu.matmul %79, %80, %cst_52 {dimension_numbers = #tpu.dot_dimension_numbers<[1], [0], [0], [1], [0, 0, 1, 1], [], []>} : vector<8x64xf32>, vector<64x16xf32>, vector<8x16xf32> -> vector<8x16xf32>
    %c0_53 = arith.constant 0 : index
    %c0_54 = arith.constant 0 : index
    %82 = vector.load %arg16[%c0_53, %c0_54] : memref<1x16xf32, #tpu.memory_space<vmem>>, vector<1x16xf32>
    %83 = vector.broadcast %82 : vector<1x16xf32> to vector<8x16xf32>
    %84 = arith.addf %81, %83 : vector<8x16xf32>
    %85 = tpu.transpose %84, [1, 0] : vector<8x16xf32> -> vector<16x8xf32>
    %c0_55 = arith.constant 0 : index
    %c0_56 = arith.constant 0 : index
    %c0_57 = arith.constant 0 : index
    %86 = vector.load %arg18[%c0_55, %c0_56, %c0_57] : memref<1x16x8xf32, #tpu.memory_space<vmem>>, vector<1x16x8xf32>
    %87 = vector.shape_cast %86 : vector<1x16x8xf32> to vector<16x8xf32>
    %88 = vector.shape_cast %85 : vector<16x8xf32> to vector<1x16x8xf32>
    tpu.vector_store %arg18[%c0_55, %c0_56, %c0_57], %88 {strides = array<i32>} : memref<1x16x8xf32, #tpu.memory_space<vmem>>, vector<1x16x8xf32>,
    return
  }
  func.func @transform_0(%arg0: i32, %arg1: i32) -> (i32, i32, i32) {
    %c0_i32 = arith.constant 0 : i32
    %c0_i32_0 = arith.constant 0 : i32
    return %arg0, %arg1, %c0_i32 : i32, i32, i32
  }
  func.func @transform_1(%arg0: i32, %arg1: i32) -> (i32, i32) {
    %c0_i32 = arith.constant 0 : i32
    %c0_i32_0 = arith.constant 0 : i32
    %c0_i32_1 = arith.constant 0 : i32
    return %c0_i32, %c0_i32_0 : i32, i32
  }
  func.func @transform_2(%arg0: i32, %arg1: i32) -> (i32, i32) {
    %c0_i32 = arith.constant 0 : i32
    %c0_i32_0 = arith.constant 0 : i32
    %c0_i32_1 = arith.constant 0 : i32
    return %c0_i32, %c0_i32_0 : i32, i32
  }
  func.func @transform_3(%arg0: i32, %arg1: i32) -> (i32, i32) {
    %c0_i32 = arith.constant 0 : i32
    %c0_i32_0 = arith.constant 0 : i32
    %c0_i32_1 = arith.constant 0 : i32
    return %c0_i32, %c0_i32_0 : i32, i32
  }
  func.func @transform_4(%arg0: i32, %arg1: i32) -> (i32, i32) {
    %c0_i32 = arith.constant 0 : i32
    %c0_i32_0 = arith.constant 0 : i32
    %c0_i32_1 = arith.constant 0 : i32
    return %c0_i32, %c0_i32_0 : i32, i32
  }
  func.func @transform_5(%arg0: i32, %arg1: i32) -> (i32, i32) {
    %c0_i32 = arith.constant 0 : i32
    %c0_i32_0 = arith.constant 0 : i32
    %c0_i32_1 = arith.constant 0 : i32
    return %c0_i32, %c0_i32_0 : i32, i32
  }
  func.func @transform_6(%arg0: i32, %arg1: i32) -> (i32, i32) {
    %c0_i32 = arith.constant 0 : i32
    %c0_i32_0 = arith.constant 0 : i32
    %c0_i32_1 = arith.constant 0 : i32
    return %c0_i32, %c0_i32_0 : i32, i32
  }
  func.func @transform_7(%arg0: i32, %arg1: i32) -> (i32, i32) {
    %c0_i32 = arith.constant 0 : i32
    %c0_i32_0 = arith.constant 0 : i32
    %c0_i32_1 = arith.constant 0 : i32
    return %c0_i32, %c0_i32_0 : i32, i32
  }
  func.func @transform_8(%arg0: i32, %arg1: i32) -> (i32, i32) {
    %c0_i32 = arith.constant 0 : i32
    %c0_i32_0 = arith.constant 0 : i32
    %c0_i32_1 = arith.constant 0 : i32
    return %c0_i32, %c0_i32_0 : i32, i32
  }
  func.func @transform_9(%arg0: i32, %arg1: i32) -> (i32, i32) {
    %c0_i32 = arith.constant 0 : i32
    %c0_i32_0 = arith.constant 0 : i32
    %c0_i32_1 = arith.constant 0 : i32
    return %c0_i32, %c0_i32_0 : i32, i32
  }
  func.func @transform_10(%arg0: i32, %arg1: i32) -> (i32, i32) {
    %c0_i32 = arith.constant 0 : i32
    %c0_i32_0 = arith.constant 0 : i32
    %c0_i32_1 = arith.constant 0 : i32
    return %c0_i32, %c0_i32_0 : i32, i32
  }
  func.func @transform_11(%arg0: i32, %arg1: i32) -> (i32, i32) {
    %c0_i32 = arith.constant 0 : i32
    %c0_i32_0 = arith.constant 0 : i32
    %c0_i32_1 = arith.constant 0 : i32
    return %c0_i32, %c0_i32_0 : i32, i32
  }
  func.func @transform_12(%arg0: i32, %arg1: i32) -> (i32, i32) {
    %c0_i32 = arith.constant 0 : i32
    %c0_i32_0 = arith.constant 0 : i32
    %c0_i32_1 = arith.constant 0 : i32
    return %c0_i32, %c0_i32_0 : i32, i32
  }
  func.func @transform_13(%arg0: i32, %arg1: i32) -> (i32, i32) {
    %c0_i32 = arith.constant 0 : i32
    %c0_i32_0 = arith.constant 0 : i32
    %c0_i32_1 = arith.constant 0 : i32
    return %c0_i32, %c0_i32_0 : i32, i32
  }
  func.func @transform_14(%arg0: i32, %arg1: i32) -> (i32, i32) {
    %c0_i32 = arith.constant 0 : i32
    %c0_i32_0 = arith.constant 0 : i32
    %c0_i32_1 = arith.constant 0 : i32
    return %c0_i32, %c0_i32_0 : i32, i32
  }
  func.func @transform_15(%arg0: i32, %arg1: i32) -> (i32, i32) {
    %c0_i32 = arith.constant 0 : i32
    %c0_i32_0 = arith.constant 0 : i32
    %c0_i32_1 = arith.constant 0 : i32
    return %c0_i32, %c0_i32_0 : i32, i32
  }
  func.func @transform_16(%arg0: i32, %arg1: i32) -> (i32, i32, i32) {
    %c0_i32 = arith.constant 0 : i32
    %c0_i32_0 = arith.constant 0 : i32
    return %arg0, %c0_i32, %arg1 : i32, i32, i32
  }
}

</mosaic_0001>

<bundles_post_ra>
// kernel: tpu_custom_call.1
= control target key start
LH: loop header
LB: loop body
LE: loop exit
PB: predicated region body
PF: predicated region fallthrough
CT: control target
= control target key end

     0   :  { %s10589_s0 = inlined_call_operand.vmem [shape: bf16[2,216,32], index: 0, kind: input, shape index: {}]   ;;  %s10590_s1 = inlined_call_operand.vmem [shape: f32[32,32], index: 1, kind: input, shape index: {}]   ;;  %s10591_s2 = inlined_call_operand.vmem [shape: f32[1,32], index: 2, kind: input, shape index: {}]   ;;  %s10592_s3 = inlined_call_operand.vmem [shape: f32[32,32], index: 3, kind: input, shape index: {}]   ;;  %s10593_s4 = inlined_call_operand.vmem [shape: f32[1,32], index: 4, kind: input, shape index: {}]   ;;  %s10594_s5 = inlined_call_operand.vmem [shape: f32[32,128], index: 5, kind: input, shape index: {}]   ;;  %s10595_s6 = inlined_call_operand.vmem [shape: f32[1,64], index: 6, kind: input, shape index: {}]   ;;  %s10596_s7 = inlined_call_operand.vmem [shape: f32[64,64], index: 7, kind: input, shape index: {}]   ;;  %s10597_s8 = inlined_call_operand.vmem [shape: f32[1,64], index: 8, kind: input, shape index: {}]   ;;  %s10598_s9 = inlined_call_operand.vmem [shape: f32[64,64], index: 9, kind: input, shape index: {}]   ;;  %s10599_s10 = inlined_call_operand.vmem [shape: f32[1,64], index: 10, kind: input, shape index: {}]   ;;  %s10600_s11 = inlined_call_operand.vmem [shape: f32[64,64], index: 11, kind: input, shape index: {}]   ;;  %s10601_s12 = inlined_call_operand.vmem [shape: f32[1,64], index: 12, kind: input, shape index: {}]   ;;  %s10602_s13 = inlined_call_operand.vmem [shape: f32[64,16], index: 13, kind: input, shape index: {}]   ;;  %s10603_s14 = inlined_call_operand.vmem [shape: f32[1,16], index: 14, kind: input, shape index: {}]   ;;  %s10604_s15 = inlined_call_operand.vmem [shape: f32[3,2], index: 15, kind: input, shape index: {}]   ;;  %s10605_s16 = inlined_call_operand.vmem [shape: f32[2,16,8], index: 16, kind: output, shape index: {}]  }
   0x1   :  { %10635 = sst [smem:[#allocation14_spill]] %s10589_s0 }
   0x2   :  { %21 = vsyncpa [#allocation3], 0  ;;  %s8453_s21 = smov 0   ;;  %s8455_s22 = smov 0  }
   0x3   :  { %s8457_s23 = smov 0  }
   0x4 LB: > { %s7637_s24 = sadd.s32 4294967295, %s8361_s23   ;;  %s39_s25 = sadd.s32 1, %s8357_s22  ;;  %s8361_s23 = sphi %s8457_s23, %s27_s23   ;;  %s8357_s22 = sphi %s8455_s22, %s10706_s22   ;;  %s8353_s21 = sphi %s8453_s21, %s10705_s21  }
   0x5   : > { %p41_p0 = scmp.ge.s32.totalorder %s39_s25, 2  ;;  %p7639_p1 = scmp.ge.s32.totalorder %s8361_s23, 1 }
   0x6   : > { %p415_p2 = scmp.lt.s32.totalorder %s8361_s23, 3  ;;  %p8478_p4 = scmp.eq.s32.totalorder %s7637_s24, 0 }
   0x7   : > { %s10708_s25 = smov (%p41_p0, %s39_s25), 0  ;;  %s470_s30 = sshll.u32 %s10604_s15, 4  ;;  %s471_s30 = int_to_ptr.vmem [resolvable:$true] %s470_s30 }
   0x8   : > { %p8474_p3 = pnand %p7639_p1, %p415_p2  ;;  %s8320_s0 = scalar_lea.vmem %s471_s30, 64 }
   0x9   : > { %p8321_p7 = scmp.ne.s32.totalorder %s471_s30, %s8320_s0  ;;  %p8328_p11 = scmp.lt.s32.totalorder %s471_s30, %s471_s30 }
   0xa   : > { %p8284_p5 = pneg %p8474_p3  ;;  %p8329_p12 = scmp.lt.s32.totalorder %s8320_s0, %s8320_s0 }
   0xc   : > { %p8285_p6 = pnand %p8478_p4, %p8284_p5  ;;  %p8330_p13 = por %p8329_p12, %p8328_p11 }
   0xe   : > { %p8322_p8 = pneg %p8285_p6 }
  0x10   : > { %p8323_p9 = pnand %p8322_p8, %p8321_p7 }
  0x12   : > { %p8324_p10 = pneg %p8323_p9 }
  0x14   : > { %p8331_p0 = pnand %p8330_p13, %p8324_p10 }
  0x16   : > { %8334 = shalt.err (!%p8331_p0)
}
  0x17   : > { %s8363_s17 = smov [#allocation2]   ;;  %496 = sbr.rel (%p8474_p3) target bundleno = 1978 (0x7ba), region = 84 }
  0x18   : > { %8287 = dma.vmem_to_smem (!%p8285_p6), %s471_s30, 64, %s8363_s17, [#allocation3]  }
  0x1c   : > { %8348 = dma.done.wait (%p8478_p4), [#allocation3], 64  }
  0x1d   : > { %8350 = vsyncadd (%p8478_p4), [#allocation3], 4294967232 }
  0x1e   : > { %502 = sfence }
  0x1f   : > { %v631_v0 = vld [vmem:[%s10590_s1 + $0x18] sm:$0xff]  ;;  %p555_p1 = scmp.lt.s32.totalorder %s8353_s21, 1  ;;  %v10618_v1 = vmov 0.0   ;;  %v630_v2 = vld [vmem:[%s10590_s1 + $0x10] sm:$0xff]  ;;  %vm8365_vm0 = vmmov 0   ;;  %v629_v4 = vld [vmem:[%s10590_s1 + $0x8] sm:$0xff] }
  0x20   : > { %7954 = vmatprep.subr.mxu0 %v10618_v1  ;;  %7962 = vmatprep.mubr.msk.f32.mxu0 %vm8365_vm0, %v10618_v1  ;;  %v1006_v3 = vld [vmem:[%s10592_s3 + $0x18] sm:$0xff]  ;;  %v628_v5 = vld [vmem:[%s10590_s1] sm:$0xff]  ;;  %s10638_s20 = sld [smem:[#allocation14_spill]]  ;;  %vm639_vm1 = vcmask 261120   ;;  %v1005_v33 = vld [vmem:[%s10592_s3 + $0x10] sm:$0xff]  ;;  %s8367_s0 = smov 64  }
  0x21   : > { %7955 = vmatpush3.msra.mxu0 %v631_v0  ;;  %s10710_s21 = smov (!%p555_p1, %s8353_s21), 1  ;;  %8043 = vmatprep.subr.mxu1 %v10618_v1  ;;  %v1004_v35 = vld [vmem:[%s10592_s3 + $0x8] sm:$0xff]  ;;  %v1003_v37 = vld [vmem:[%s10592_s3] sm:$0xff]  ;;  %s626_s17 = sld [smem:[#allocation2]] }
  0x22   : > { %7956 = vmatprep.subr.mxu0 %v10618_v1  ;;  %8044 = vmatpush3.msra.mxu1 %v1006_v3  ;;  %s8279_s30 = smul.u32 108, %s10710_s21  ;;  %v8750_v50 = vld [vmem:[%s10591_s2] ss:$0 sm:$0xff]  ;;  %s7723_s26 = sld [smem:[#allocation2 + $0x81]] }
  0x23   : > { %7957 = vmatpush3.msra.mxu0 %v630_v2  ;;  %8045 = vmatprep.subr.mxu1 %v10618_v1  ;;  %s7751_s19 = sld [smem:[#allocation2 + $0x101]]  ;;  %s7766_s28 = sshll.u32 %s10710_s21, 4 }
  0x24   : > { %7958 = vmatprep.subr.mxu0 %v10618_v1  ;;  %8051 = vmatprep.mubr.msk.f32.mxu1 %vm8365_vm0, %v10618_v1 }
  0x25   : > { %7959 = vmatpush3.msra.mxu0 %v629_v4  ;;  %8046 = vmatpush3.msra.mxu1 %v1005_v33 }
  0x26   : > { %s8527_s24 = scalar_lea.vmem %s10638_s20, %s8279_s30  ;;  %7960 = vmatprep.subr.mxu0 %v10618_v1  ;;  %8047 = vmatprep.subr.mxu1 %v10618_v1 }
  0x27   : > { %v8531_v6 = vld [vmem:[%s8527_s24] sm:$0xff]   ;;  %7961 = vmatpush3.msra.mxu0 %v628_v5  ;;  %v8542_v9 = vld [vmem:[%s8527_s24 + $0x8] sm:$0xff]   ;;  %v8557_v12 = vld [vmem:[%s8527_s24 + $0x10] sm:$0xff]   ;;  %8048 = vmatpush3.msra.mxu1 %v1004_v35  ;;  %v8752_v52 = vstv %s626_s17  ;;  %s7647_s17 = sld [smem:[#allocation2 + $0x1]] }
  0x28   : > { %v7769_v7 = vunpack.c.l.bf16 %v8531_v6  ;;  %8132 = vmatprep.subr.mxu0 %v10618_v1  ;;  %v7770_v8 = vunpack.c.h.bf16 %v8531_v6  ;;  %v7773_v10 = vunpack.c.l.bf16 %v8542_v9  ;;  %v7774_v11 = vunpack.c.h.bf16 %v8542_v9  ;;  %v8572_v15 = vld [vmem:[%s8527_s24 + $0x18] sm:$0xff]   ;;  %v8587_v18 = vld [vmem:[%s8527_s24 + $0x20] sm:$0xff]   ;;  %v8602_v21 = vld [vmem:[%s8527_s24 + $0x28] sm:$0xff]   ;;  %8049 = vmatprep.subr.mxu1 %v10618_v1 }
  0x29   : > { %v7777_v13 = vunpack.c.l.bf16 %v8557_v12  ;;  %v7778_v14 = vunpack.c.h.bf16 %v8557_v12  ;;  %v7781_v16 = vunpack.c.l.bf16 %v8572_v15  ;;  %v7782_v17 = vunpack.c.h.bf16 %v8572_v15  ;;  %v8617_v24 = vld [vmem:[%s8527_s24 + $0x30] sm:$0xff]   ;;  %v8632_v27 = vld [vmem:[%s8527_s24 + $0x38] sm:$0xff]   ;;  %v8647_v30 = vld [vmem:[%s8527_s24 + $0x40] sm:$0xff]   ;;  %8050 = vmatpush3.msra.mxu1 %v1003_v37 }
  0x2a   : > { %7963 = vmatmul.mubr.msk.f32.vlgmr.msra.gmra.mxu0 %vm639_vm1, %v7769_v7  ;;  %v7785_v19 = vunpack.c.l.bf16 %v8587_v18  ;;  %v7786_v20 = vunpack.c.h.bf16 %v8587_v18  ;;  %v10624_v22 = vunpack.c.l.bf16 %v8602_v21  ;;  %v10623_v23 = vunpack.c.h.bf16 %v8602_v21  ;;  %v8665_v34 = vld [vmem:[%s8527_s24 + $0x48] sm:$0xff]   ;;  %8167 = vmatprep.subr.mxu1 %v10618_v1  ;;  %v8689_v39 = vld [vmem:[%s8527_s24 + $0x50] sm:$0xff]   ;;  %v8704_v42 = vld [vmem:[%s8527_s24 + $0x58] sm:$0xff]  }
  0x2b   : > { %7965 = vmatprep.mubr.msk.f32.mxu0 %vm8365_vm0, %v10618_v1  ;;  %v10622_v25 = vunpack.c.l.bf16 %v8617_v24  ;;  %v10621_v26 = vunpack.c.h.bf16 %v8617_v24  ;;  %v10620_v28 = vunpack.c.l.bf16 %v8632_v27  ;;  %v10617_v29 = vunpack.c.h.bf16 %v8632_v27  ;;  %10639 = vst [vmem:[#allocation5_spill] sm:$0xff] %v8665_v34  ;;  %10640 = vst [vmem:[#allocation6_spill] sm:$0xff] %v8689_v39  ;;  %v8719_v45 = vld [vmem:[%s8527_s24 + $0x60] sm:$0xff]   ;;  %v8734_v48 = vld [vmem:[%s8527_s24 + $0x68] sm:$0xf] }
  0x2c   : > { %v10616_v31 = vunpack.c.l.bf16 %v8647_v30  ;;  %v10615_v32 = vunpack.c.h.bf16 %v8647_v30  ;;  %v10614_v36 = vunpack.c.l.bf16 %v8665_v34  ;;  %v10613_v38 = vunpack.c.h.bf16 %v8665_v34  ;;  %10641 = vst [vmem:[#allocation7_spill] sm:$0xff] %v8704_v42  ;;  %10642 = vst [vmem:[#allocation8_spill] sm:$0xff] %v8719_v45 }
  0x2d   : > { %v10612_v40 = vunpack.c.l.bf16 %v8689_v39  ;;  %v10611_v41 = vunpack.c.h.bf16 %v8689_v39  ;;  %v10610_v43 = vunpack.c.l.bf16 %v8704_v42  ;;  %v10609_v44 = vunpack.c.h.bf16 %v8704_v42  ;;  %10643 = vst [vmem:[#allocation9_spill] sm:$0xff] %v8734_v48 }
  0x2e   : > { %7966 = vmatmul.mubr.msk.f32.gmra.mxu0 %vm639_vm1, %v7770_v8  ;;  %v10608_v46 = vunpack.c.l.bf16 %v8719_v45  ;;  %v10607_v47 = vunpack.c.h.bf16 %v8719_v45  ;;  %v10606_v49 = vunpack.c.l.bf16 %v8734_v48 }
  0x2f   : > { %7968 = vmatprep.mubr.msk.f32.mxu0 %vm8365_vm0, %v10618_v1 }
  0x32   : > { %7969 = vmatmul.mubr.msk.f32.gmra.mxu0 %vm639_vm1, %v7773_v10 }
  0x33   : > { %7971 = vmatprep.mubr.msk.f32.mxu0 %vm8365_vm0, %v10618_v1 }
  0x36   : > { %7972 = vmatmul.mubr.msk.f32.gmra.mxu0 %vm639_vm1, %v7774_v11 }
  0x37   : > { %7974 = vmatprep.mubr.msk.f32.mxu0 %vm8365_vm0, %v10618_v1 }
  0x3a   : > { %7975 = vmatmul.mubr.msk.f32.gmra.mxu0 %vm639_vm1, %v7777_v13 }
  0x3b   : > { %7977 = vmatprep.mubr.msk.f32.mxu0 %vm8365_vm0, %v10618_v1 }
  0x3e   : > { %7978 = vmatmul.mubr.msk.f32.gmra.mxu0 %vm639_vm1, %v7778_v14 }
  0x3f   : > { %7980 = vmatprep.mubr.msk.f32.mxu0 %vm8365_vm0, %v10618_v1 }
  0x42   : > { %7981 = vmatmul.mubr.msk.f32.gmra.mxu0 %vm639_vm1, %v7781_v16 }
  0x43   : > { %7983 = vmatprep.mubr.msk.f32.mxu0 %vm8365_vm0, %v10618_v1 }
  0x46   : > { %7984 = vmatmul.mubr.msk.f32.gmra.mxu0 %vm639_vm1, %v7782_v17 }
  0x47   : > { %7986 = vmatprep.mubr.msk.f32.mxu0 %vm8365_vm0, %v10618_v1 }
  0x4a   : > { %7987 = vmatmul.mubr.msk.f32.gmra.mxu0 %vm639_vm1, %v7785_v19 }
  0x4b   : > { %7989 = vmatprep.mubr.msk.f32.mxu0 %vm8365_vm0, %v10618_v1 }
  0x4e   : > { %7990 = vmatmul.mubr.msk.f32.gmra.mxu0 %vm639_vm1, %v7786_v20 }
  0x4f   : > { %7992 = vmatprep.mubr.msk.f32.mxu0 %vm8365_vm0, %v10618_v1 }
  0x52   : > { %7993 = vmatmul.mubr.msk.f32.gmra.mxu0 %vm639_vm1, %v10624_v22 }
  0x53   : > { %7995 = vmatprep.mubr.msk.f32.mxu0 %vm8365_vm0, %v10618_v1 }
  0x56   : > { %7996 = vmatmul.mubr.msk.f32.gmra.mxu0 %vm639_vm1, %v10623_v23 }
  0x57   : > { %7998 = vmatprep.mubr.msk.f32.mxu0 %vm8365_vm0, %v10618_v1 }
  0x5a   : > { %7999 = vmatmul.mubr.msk.f32.gmra.mxu0 %vm639_vm1, %v10622_v25 }
  0x5b   : > { %8001 = vmatprep.mubr.msk.f32.mxu0 %vm8365_vm0, %v10618_v1 }
  0x5e   : > { %8002 = vmatmul.mubr.msk.f32.gmra.mxu0 %vm639_vm1, %v10621_v26 }
  0x5f   : > { %8004 = vmatprep.mubr.msk.f32.mxu0 %vm8365_vm0, %v10618_v1 }
  0x62   : > { %8005 = vmatmul.mubr.msk.f32.gmra.mxu0 %vm639_vm1, %v10620_v28 }
  0x63   : > { %8007 = vmatprep.mubr.msk.f32.mxu0 %vm8365_vm0, %v10618_v1 }
  0x66   : > { %8008 = vmatmul.mubr.msk.f32.gmra.mxu0 %vm639_vm1, %v10617_v29 }
  0x67   : > { %8010 = vmatprep.mubr.msk.f32.mxu0 %vm8365_vm0, %v10618_v1 }
  0x6a   : > { %8011 = vmatmul.mubr.msk.f32.gmra.mxu0 %vm639_vm1, %v10616_v31 }
  0x6b   : > { %8013 = vmatprep.mubr.msk.f32.mxu0 %vm8365_vm0, %v10618_v1 }
  0x6e   : > { %8014 = vmatmul.mubr.msk.f32.gmra.mxu0 %vm639_vm1, %v10615_v32 }
  0x6f   : > { %8016 = vmatprep.mubr.msk.f32.mxu0 %vm8365_vm0, %v10618_v1 }
  0x72   : > { %8017 = vmatmul.mubr.msk.f32.gmra.mxu0 %vm639_vm1, %v10614_v36 }
  0x73   : > { %8019 = vmatprep.mubr.msk.f32.mxu0 %vm8365_vm0, %v10618_v1 }
  0x76   : > { %8020 = vmatmul.mubr.msk.f32.gmra.mxu0 %vm639_vm1, %v10613_v38 }
  0x77   : > { %8022 = vmatprep.mubr.msk.f32.mxu0 %vm8365_vm0, %v10618_v1 }
  0x7a   : > { %8023 = vmatmul.mubr.msk.f32.gmra.mxu0 %vm639_vm1, %v10612_v40 }
  0x7b   : > { %8025 = vmatprep.mubr.msk.f32.mxu0 %vm8365_vm0, %v10618_v1 }
  0x7e   : > { %8026 = vmatmul.mubr.msk.f32.gmra.mxu0 %vm639_vm1, %v10611_v41 }
  0x7f   : > { %8028 = vmatprep.mubr.msk.f32.mxu0 %vm8365_vm0, %v10618_v1 }
  0x82   : > { %8029 = vmatmul.mubr.msk.f32.gmra.mxu0 %vm639_vm1, %v10610_v43 }
  0x83   : > { %8031 = vmatprep.mubr.msk.f32.mxu0 %vm8365_vm0, %v10618_v1 }
  0x86   : > { %8032 = vmatmul.mubr.msk.f32.gmra.mxu0 %vm639_vm1, %v10609_v44 }
  0x87   : > { %8034 = vmatprep.mubr.msk.f32.mxu0 %vm8365_vm0, %v10618_v1 }
  0x8a   : > { %8035 = vmatmul.mubr.msk.f32.gmra.mxu0 %vm639_vm1, %v10608_v46 }
  0x8b   : > { %8037 = vmatprep.mubr.msk.f32.mxu0 %vm8365_vm0, %v10618_v1 }
  0x8e   : > { %8038 = vmatmul.mubr.msk.f32.gmra.mxu0 %vm639_vm1, %v10607_v47 }
  0x8f   : > { %8040 = vmatprep.mubr.msk.f32.mxu0 %vm8365_vm0, %v10618_v1 }
  0x92   : > { %8041 = vmatmul.mubr.msk.f32.gmra.mxu0 %vm639_vm1, %v10606_v49 }
  0x93   : > { %8140 = vmatprep.mubr.msk.f32.mxu0 %vm8365_vm0, %v10618_v1 }
  0xea   : > { %v787_v51 = vpop.f32.mrf.mxu0 }
  0xeb   : > { %v788_v53 = vadd.f32 %v8750_v50, %v787_v51 }
  0xec   : > { %v7964_v54 = vpop.f32.mrf.mxu0 }
  0xed   : > { %vm921_vm2 = vcmp.ge.f32.partialorder %v788_v53, 0.0  ;;  %v949_v55 = vmul.f32 %v8752_v52, %v788_v53 }
  0xee   : > { %v792_v56 = vpop.f32.mrf.mxu0 }
  0xef   : > { %v793_v57 = vadd.f32 %v8750_v50, %v792_v56  ;;  %v976_v58 = vsel %vm921_vm2, %v788_v53, %v949_v55 }
  0xf0   : > { %v7967_v59 = vpop.f32.mrf.mxu0  ;;  %8052 = vmatmul.mubr.msk.f32.vlgmr.msra.gmra.mxu1 %vm639_vm1, %v976_v58 }
  0xf1   : > { %vm922_vm3 = vcmp.ge.f32.partialorder %v793_v57, 0.0  ;;  %v950_v60 = vmul.f32 %v8752_v52, %v793_v57  ;;  %8054 = vmatprep.mubr.msk.f32.mxu1 %vm8365_vm0, %v10618_v1 }
  0xf2   : > { %v797_v61 = vpop.f32.mrf.mxu0 }
  0xf3   : > { %v798_v62 = vadd.f32 %v8750_v50, %v797_v61  ;;  %v977_v63 = vsel %vm922_vm3, %v793_v57, %v950_v60 }
  0xf4   : > { %v7970_v0 = vpop.f32.mrf.mxu0  ;;  %8055 = vmatmul.mubr.msk.f32.gmra.mxu1 %vm639_vm1, %v977_v63 }
  0xf5   : > { %vm923_vm4 = vcmp.ge.f32.partialorder %v798_v62, 0.0  ;;  %v951_v2 = vmul.f32 %v8752_v52, %v798_v62  ;;  %8057 = vmatprep.mubr.msk.f32.mxu1 %vm8365_vm0, %v10618_v1 }
  0xf6   : > { %v802_v3 = vpop.f32.mrf.mxu0 }
  0xf7   : > { %v803_v4 = vadd.f32 %v8750_v50, %v802_v3  ;;  %v978_v5 = vsel %vm923_vm4, %v798_v62, %v951_v2 }
  0xf8   : > { %v7973_v33 = vpop.f32.mrf.mxu0  ;;  %8058 = vmatmul.mubr.msk.f32.gmra.mxu1 %vm639_vm1, %v978_v5 }
  0xf9   : > { %vm924_vm5 = vcmp.ge.f32.partialorder %v803_v4, 0.0  ;;  %v952_v35 = vmul.f32 %v8752_v52, %v803_v4  ;;  %8060 = vmatprep.mubr.msk.f32.mxu1 %vm8365_vm0, %v10618_v1 }
  0xfa   : > { %v807_v37 = vpop.f32.mrf.mxu0 }
  0xfb   : > { %v808_v51 = vadd.f32 %v8750_v50, %v807_v37  ;;  %v979_v53 = vsel %vm924_vm5, %v803_v4, %v952_v35 }
  0xfc   : > { %v7976_v54 = vpop.f32.mrf.mxu0  ;;  %8061 = vmatmul.mubr.msk.f32.gmra.mxu1 %vm639_vm1, %v979_v53 }
  0xfd   : > { %vm925_vm6 = vcmp.ge.f32.partialorder %v808_v51, 0.0  ;;  %v953_v55 = vmul.f32 %v8752_v52, %v808_v51  ;;  %8063 = vmatprep.mubr.msk.f32.mxu1 %vm8365_vm0, %v10618_v1 }
  0xfe   : > { %v812_v56 = vpop.f32.mrf.mxu0 }
  0xff   : > { %v813_v57 = vadd.f32 %v8750_v50, %v812_v56  ;;  %v980_v58 = vsel %vm925_vm6, %v808_v51, %v953_v55 }
 0x100   : > { %v7979_v59 = vpop.f32.mrf.mxu0  ;;  %8064 = vmatmul.mubr.msk.f32.gmra.mxu1 %vm639_vm1, %v980_v58 }
 0x101   : > { %vm926_vm7 = vcmp.ge.f32.partialorder %v813_v57, 0.0  ;;  %v954_v60 = vmul.f32 %v8752_v52, %v813_v57  ;;  %8066 = vmatprep.mubr.msk.f32.mxu1 %vm8365_vm0, %v10618_v1 }
 0x102   : > { %v817_v61 = vpop.f32.mrf.mxu0 }
 0x103   : > { %v818_v62 = vadd.f32 %v8750_v50, %v817_v61  ;;  %v981_v63 = vsel %vm926_vm7, %v813_v57, %v954_v60 }
 0x104   : > { %v7982_v0 = vpop.f32.mrf.mxu0  ;;  %8067 = vmatmul.mubr.msk.f32.gmra.mxu1 %vm639_vm1, %v981_v63 }
 0x105   : > { %vm927_vm8 = vcmp.ge.f32.partialorder %v818_v62, 0.0  ;;  %v955_v2 = vmul.f32 %v8752_v52, %v818_v62  ;;  %8069 = vmatprep.mubr.msk.f32.mxu1 %vm8365_vm0, %v10618_v1 }
 0x106   : > { %v822_v3 = vpop.f32.mrf.mxu0 }
 0x107   : > { %v823_v4 = vadd.f32 %v8750_v50, %v822_v3  ;;  %v982_v5 = vsel %vm927_vm8, %v818_v62, %v955_v2 }
 0x108   : > { %v7985_v33 = vpop.f32.mrf.mxu0  ;;  %8070 = vmatmul.mubr.msk.f32.gmra.mxu1 %vm639_vm1, %v982_v5 }
 0x109   : > { %vm928_vm9 = vcmp.ge.f32.partialorder %v823_v4, 0.0  ;;  %v956_v35 = vmul.f32 %v8752_v52, %v823_v4  ;;  %8072 = vmatprep.mubr.msk.f32.mxu1 %vm8365_vm0, %v10618_v1 }
 0x10a   : > { %v827_v37 = vpop.f32.mrf.mxu0 }
 0x10b   : > { %v828_v51 = vadd.f32 %v8750_v50, %v827_v37  ;;  %v983_v53 = vsel %vm928_vm9, %v823_v4, %v956_v35 }
 0x10c   : > { %v7988_v54 = vpop.f32.mrf.mxu0  ;;  %8073 = vmatmul.mubr.msk.f32.gmra.mxu1 %vm639_vm1, %v983_v53 }
 0x10d   : > { %vm929_vm10 = vcmp.ge.f32.partialorder %v828_v51, 0.0  ;;  %v957_v55 = vmul.f32 %v8752_v52, %v828_v51  ;;  %8075 = vmatprep.mubr.msk.f32.mxu1 %vm8365_vm0, %v10618_v1 }
 0x10e   : > { %v832_v56 = vpop.f32.mrf.mxu0 }
 0x10f   : > { %v833_v57 = vadd.f32 %v8750_v50, %v832_v56  ;;  %v984_v58 = vsel %vm929_vm10, %v828_v51, %v957_v55 }
 0x110   : > { %v7991_v59 = vpop.f32.mrf.mxu0  ;;  %8076 = vmatmul.mubr.msk.f32.gmra.mxu1 %vm639_vm1, %v984_v58 }
 0x111   : > { %vm930_vm11 = vcmp.ge.f32.partialorder %v833_v57, 0.0  ;;  %v958_v60 = vmul.f32 %v8752_v52, %v833_v57  ;;  %8078 = vmatprep.mubr.msk.f32.mxu1 %vm8365_vm0, %v10618_v1 }
 0x112   : > { %v837_v61 = vpop.f32.mrf.mxu0 }
 0x113   : > { %v838_v62 = vadd.f32 %v8750_v50, %v837_v61  ;;  %v985_v63 = vsel %vm930_vm11, %v833_v57, %v958_v60 }
 0x114   : > { %v7994_v0 = vpop.f32.mrf.mxu0  ;;  %8079 = vmatmul.mubr.msk.f32.gmra.mxu1 %vm639_vm1, %v985_v63 }
 0x115   : > { %vm931_vm12 = vcmp.ge.f32.partialorder %v838_v62, 0.0  ;;  %v959_v2 = vmul.f32 %v8752_v52, %v838_v62  ;;  %8081 = vmatprep.mubr.msk.f32.mxu1 %vm8365_vm0, %v10618_v1 }
 0x116   : > { %v842_v3 = vpop.f32.mrf.mxu0 }
 0x117   : > { %v843_v4 = vadd.f32 %v8750_v50, %v842_v3  ;;  %v986_v5 = vsel %vm931_vm12, %v838_v62, %v959_v2 }
 0x118   : > { %v7997_v33 = vpop.f32.mrf.mxu0  ;;  %8082 = vmatmul.mubr.msk.f32.gmra.mxu1 %vm639_vm1, %v986_v5 }
 0x119   : > { %vm932_vm13 = vcmp.ge.f32.partialorder %v843_v4, 0.0  ;;  %v960_v35 = vmul.f32 %v8752_v52, %v843_v4  ;;  %8084 = vmatprep.mubr.msk.f32.mxu1 %vm8365_vm0, %v10618_v1 }
 0x11a   : > { %v847_v37 = vpop.f32.mrf.mxu0 }
 0x11b   : > { %v848_v51 = vadd.f32 %v8750_v50, %v847_v37  ;;  %v987_v53 = vsel %vm932_vm13, %v843_v4, %v960_v35 }
 0x11c   : > { %v8000_v54 = vpop.f32.mrf.mxu0  ;;  %8085 = vmatmul.mubr.msk.f32.gmra.mxu1 %vm639_vm1, %v987_v53 }
 0x11d   : > { %vm933_vm14 = vcmp.ge.f32.partialorder %v848_v51, 0.0  ;;  %v961_v55 = vmul.f32 %v8752_v52, %v848_v51  ;;  %8087 = vmatprep.mubr.msk.f32.mxu1 %vm8365_vm0, %v10618_v1 }
 0x11e   : > { %v852_v56 = vpop.f32.mrf.mxu0 }
 0x11f   : > { %v853_v57 = vadd.f32 %v8750_v50, %v852_v56  ;;  %v988_v58 = vsel %vm933_vm14, %v848_v51, %v961_v55 }
 0x120   : > { %v8003_v59 = vpop.f32.mrf.mxu0  ;;  %8088 = vmatmul.mubr.msk.f32.gmra.mxu1 %vm639_vm1, %v988_v58 }
 0x121   : > { %vm934_vm15 = vcmp.ge.f32.partialorder %v853_v57, 0.0  ;;  %v962_v60 = vmul.f32 %v8752_v52, %v853_v57  ;;  %8090 = vmatprep.mubr.msk.f32.mxu1 %vm8365_vm0, %v10618_v1 }
 0x122   : > { %v857_v61 = vpop.f32.mrf.mxu0 }
 0x123   : > { %v858_v62 = vadd.f32 %v8750_v50, %v857_v61  ;;  %v989_v63 = vsel %vm934_vm15, %v853_v57, %v962_v60 }
 0x124   : > { %v8006_v0 = vpop.f32.mrf.mxu0  ;;  %8091 = vmatmul.mubr.msk.f32.gmra.mxu1 %vm639_vm1, %v989_v63 }
 0x125   : > { %vm935_vm2 = vcmp.ge.f32.partialorder %v858_v62, 0.0  ;;  %v963_v2 = vmul.f32 %v8752_v52, %v858_v62  ;;  %8093 = vmatprep.mubr.msk.f32.mxu1 %vm8365_vm0, %v10618_v1 }
 0x126   : > { %v862_v3 = vpop.f32.mrf.mxu0 }
 0x127   : > { %v863_v4 = vadd.f32 %v8750_v50, %v862_v3  ;;  %v990_v5 = vsel %vm935_vm2, %v858_v62, %v963_v2 }
 0x128   : > { %v8009_v33 = vpop.f32.mrf.mxu0  ;;  %8094 = vmatmul.mubr.msk.f32.gmra.mxu1 %vm639_vm1, %v990_v5 }
 0x129   : > { %vm936_vm3 = vcmp.ge.f32.partialorder %v863_v4, 0.0  ;;  %v964_v35 = vmul.f32 %v8752_v52, %v863_v4  ;;  %8096 = vmatprep.mubr.msk.f32.mxu1 %vm8365_vm0, %v10618_v1 }
 0x12a   : > { %v867_v37 = vpop.f32.mrf.mxu0 }
 0x12b   : > { %v868_v51 = vadd.f32 %v8750_v50, %v867_v37  ;;  %v991_v53 = vsel %vm936_vm3, %v863_v4, %v964_v35  ;;  %vm4482_vm3 = vcmask 256000  }
 0x12c   : > { %v8012_v54 = vpop.f32.mrf.mxu0  ;;  %8097 = vmatmul.mubr.msk.f32.gmra.mxu1 %vm639_vm1, %v991_v53 }
 0x12d   : > { %vm937_vm4 = vcmp.ge.f32.partialorder %v868_v51, 0.0  ;;  %v965_v55 = vmul.f32 %v8752_v52, %v868_v51  ;;  %8099 = vmatprep.mubr.msk.f32.mxu1 %vm8365_vm0, %v10618_v1 }
 0x12e   : > { %v872_v56 = vpop.f32.mrf.mxu0 }
 0x12f   : > { %v873_v57 = vadd.f32 %v8750_v50, %v872_v56  ;;  %v992_v58 = vsel %vm937_vm4, %v868_v51, %v965_v55 }
 0x130   : > { %v8015_v59 = vpop.f32.mrf.mxu0  ;;  %8100 = vmatmul.mubr.msk.f32.gmra.mxu1 %vm639_vm1, %v992_v58 }
 0x131   : > { %vm938_vm5 = vcmp.ge.f32.partialorder %v873_v57, 0.0  ;;  %v966_v60 = vmul.f32 %v8752_v52, %v873_v57  ;;  %8102 = vmatprep.mubr.msk.f32.mxu1 %vm8365_vm0, %v10618_v1 }
 0x132   : > { %v877_v61 = vpop.f32.mrf.mxu0 }
 0x133   : > { %v878_v62 = vadd.f32 %v8750_v50, %v877_v61  ;;  %v993_v63 = vsel %vm938_vm5, %v873_v57, %v966_v60 }
 0x134   : > { %v8018_v0 = vpop.f32.mrf.mxu0  ;;  %8103 = vmatmul.mubr.msk.f32.gmra.mxu1 %vm639_vm1, %v993_v63 }
 0x135   : > { %vm939_vm6 = vcmp.ge.f32.partialorder %v878_v62, 0.0  ;;  %v967_v2 = vmul.f32 %v8752_v52, %v878_v62  ;;  %8105 = vmatprep.mubr.msk.f32.mxu1 %vm8365_vm0, %v10618_v1 }
 0x136   : > { %v882_v3 = vpop.f32.mrf.mxu0 }
 0x137   : > { %v883_v4 = vadd.f32 %v8750_v50, %v882_v3  ;;  %v994_v5 = vsel %vm939_vm6, %v878_v62, %v967_v2 }
 0x138   : > { %v8021_v33 = vpop.f32.mrf.mxu0  ;;  %8106 = vmatmul.mubr.msk.f32.gmra.mxu1 %vm639_vm1, %v994_v5 }
 0x139   : > { %vm940_vm7 = vcmp.ge.f32.partialorder %v883_v4, 0.0  ;;  %v968_v35 = vmul.f32 %v8752_v52, %v883_v4  ;;  %8108 = vmatprep.mubr.msk.f32.mxu1 %vm8365_vm0, %v10618_v1 }
 0x13a   : > { %v887_v37 = vpop.f32.mrf.mxu0 }
 0x13b   : > { %v888_v51 = vadd.f32 %v8750_v50, %v887_v37  ;;  %v995_v53 = vsel %vm940_vm7, %v883_v4, %v968_v35 }
 0x13c   : > { %v8024_v54 = vpop.f32.mrf.mxu0  ;;  %8109 = vmatmul.mubr.msk.f32.gmra.mxu1 %vm639_vm1, %v995_v53 }
 0x13d   : > { %vm941_vm8 = vcmp.ge.f32.partialorder %v888_v51, 0.0  ;;  %v969_v55 = vmul.f32 %v8752_v52, %v888_v51  ;;  %8111 = vmatprep.mubr.msk.f32.mxu1 %vm8365_vm0, %v10618_v1 }
 0x13e   : > { %v892_v56 = vpop.f32.mrf.mxu0 }
 0x13f   : > { %v893_v57 = vadd.f32 %v8750_v50, %v892_v56  ;;  %v996_v58 = vsel %vm941_vm8, %v888_v51, %v969_v55 }
 0x140   : > { %v8027_v59 = vpop.f32.mrf.mxu0  ;;  %8112 = vmatmul.mubr.msk.f32.gmra.mxu1 %vm639_vm1, %v996_v58 }
 0x141   : > { %vm942_vm9 = vcmp.ge.f32.partialorder %v893_v57, 0.0  ;;  %v970_v60 = vmul.f32 %v8752_v52, %v893_v57  ;;  %8114 = vmatprep.mubr.msk.f32.mxu1 %vm8365_vm0, %v10618_v1 }
 0x142   : > { %v897_v61 = vpop.f32.mrf.mxu0 }
 0x143   : > { %v898_v62 = vadd.f32 %v8750_v50, %v897_v61  ;;  %v997_v63 = vsel %vm942_vm9, %v893_v57, %v970_v60  ;;  %v4992_v61 = vld [vmem:[%s10594_s5 + $0x18] sm:$0xff] }
 0x144   : > { %v8030_v0 = vpop.f32.mrf.mxu0  ;;  %8115 = vmatmul.mubr.msk.f32.gmra.mxu1 %vm639_vm1, %v997_v63  ;;  %8133 = vmatpush3.msra.mxu0 %v4992_v61 }
 0x145   : > { %vm943_vm10 = vcmp.ge.f32.partialorder %v898_v62, 0.0  ;;  %v971_v2 = vmul.f32 %v8752_v52, %v898_v62  ;;  %8117 = vmatprep.mubr.msk.f32.mxu1 %vm8365_vm0, %v10618_v1  ;;  %8134 = vmatprep.subr.mxu0 %v10618_v1 }
 0x146   : > { %v902_v3 = vpop.f32.mrf.mxu0 }
 0x147   : > { %v903_v4 = vadd.f32 %v8750_v50, %v902_v3  ;;  %v998_v5 = vsel %vm943_vm10, %v898_v62, %v971_v2 }
 0x148   : > { %v8033_v33 = vpop.f32.mrf.mxu0  ;;  %8118 = vmatmul.mubr.msk.f32.gmra.mxu1 %vm639_vm1, %v998_v5  ;;  %v4989_v5 = vld [vmem:[%s10594_s5] sm:$0xff] }
 0x149   : > { %vm944_vm11 = vcmp.ge.f32.partialorder %v903_v4, 0.0  ;;  %v972_v35 = vmul.f32 %v8752_v52, %v903_v4  ;;  %8120 = vmatprep.mubr.msk.f32.mxu1 %vm8365_vm0, %v10618_v1  ;;  %v8366_v33 = vmov 1966171168  }
 0x14a   : > { %v907_v37 = vpop.f32.mrf.mxu0 }
 0x14b   : > { %v908_v51 = vadd.f32 %v8750_v50, %v907_v37  ;;  %v999_v53 = vsel %vm944_vm11, %v903_v4, %v972_v35  ;;  %v1433_v35 = vunpack.c.l.s4 %v8366_v33  ;;  %v1435_v37 = vlaneseq }
 0x14c   : > { %v8036_v54 = vpop.f32.mrf.mxu0  ;;  %8121 = vmatmul.mubr.msk.f32.gmra.mxu1 %vm639_vm1, %v999_v53 }
 0x14d   : > { %vm945_vm12 = vcmp.ge.f32.partialorder %v908_v51, 0.0  ;;  %v973_v55 = vmul.f32 %v8752_v52, %v908_v51  ;;  %8123 = vmatprep.mubr.msk.f32.mxu1 %vm8365_vm0, %v10618_v1  ;;  %v1434_v54 = vunpack.c.0.s8 %v1433_v35 }
 0x14e   : > { %v912_v56 = vpop.f32.mrf.mxu0 }
 0x14f   : > { %v913_v57 = vadd.f32 %v8750_v50, %v912_v56  ;;  %v1000_v58 = vsel %vm945_vm12, %v908_v51, %v973_v55  ;;  %v8908_v51 = vld [vmem:[%s10593_s4] ss:$0 sm:$0xff]  ;;  %v1436_v55 = vshrl.u32 %v1435_v37, 7 }
 0x150   : > { %v8039_v59 = vpop.f32.mrf.mxu0  ;;  %8124 = vmatmul.mubr.msk.f32.gmra.mxu1 %vm639_vm1, %v1000_v58 }
 0x151   : > { %vm946_vm13 = vcmp.ge.f32.partialorder %v913_v57, 0.0  ;;  %v974_v60 = vmul.f32 %v8752_v52, %v913_v57  ;;  %8126 = vmatprep.mubr.msk.f32.mxu1 %vm8365_vm0, %v10618_v1 }
 0x152   : > { %v917_v62 = vpop.f32.mrf.mxu0 }
 0x153   : > { %v918_v63 = vadd.f32 %v8750_v50, %v917_v62  ;;  %v1001_v0 = vsel %vm946_vm13, %v913_v57, %v974_v60  ;;  %v4991_v50 = vld [vmem:[%s10594_s5 + $0x10] sm:$0xff]  ;;  %v8911_v57 = vstv %s7647_s17  ;;  %v8915_v60 = vsub.s32 %v1434_v54, %v1436_v55  ;;  %s10076_s17 = sld [smem:[#allocation2 + $0x80]] }
 0x154   : > { %v8042_v2 = vpop.f32.mrf.mxu0  ;;  %8127 = vmatmul.mubr.msk.f32.gmra.mxu1 %vm639_vm1, %v1001_v0  ;;  %8135 = vmatpush3.msra.mxu0 %v4991_v50 }
 0x155   : > { %vm947_vm14 = vcmp.ge.f32.partialorder %v918_v63, 0.0  ;;  %v975_v3 = vmul.f32 %v8752_v52, %v918_v63  ;;  %8129 = vmatprep.mubr.msk.f32.mxu1 %vm8365_vm0, %v10618_v1  ;;  %8136 = vmatprep.subr.mxu0 %v10618_v1  ;;  %v4990_v52 = vld [vmem:[%s10594_s5 + $0x8] sm:$0xff] }
 0x156   : > { %8137 = vmatpush3.msra.mxu0 %v4990_v52 }
 0x157   : > { %v1002_v4 = vsel %vm947_vm14, %v918_v63, %v975_v3  ;;  %8138 = vmatprep.subr.mxu0 %v10618_v1  ;;  %vm5065_vm14 = vcmask 1041409  }
 0x158   : > { %8130 = vmatmul.mubr.msk.f32.gmra.mxu1 %vm639_vm1, %v1002_v4  ;;  %8139 = vmatpush3.msra.mxu0 %v4989_v5 }
 0x159   : > { %8183 = vmatprep.mubr.msk.f32.mxu1 %vm8365_vm0, %v10618_v1  ;;  %8210 = vmatprep.subr.mxu0 %v10618_v1 }
 0x1b0   : > { %v1161_v53 = vpop.f32.mrf.mxu1 }
 0x1b1   : > { %v1162_v56 = vadd.f32 %v8908_v51, %v1161_v53 }
 0x1b2   : > { %v8053_v58 = vpop.f32.mrf.mxu1 }
 0x1b3   : > { %v1295_v59 = vadd.f32 %v7769_v7, %v1162_v56 }
 0x1b4   : > { %v1166_v61 = vpop.f32.mrf.mxu1 }
 0x1b5   : > { %vm1322_vm15 = vcmp.ge.f32.partialorder %v1295_v59, 0.0  ;;  %v1350_v62 = vmul.f32 %v8911_v57, %v1295_v59  ;;  %v1167_v63 = vadd.f32 %v8908_v51, %v1166_v61 }
 0x1b6   : > { %v8056_v0 = vpop.f32.mrf.mxu1 }
 0x1b7   : > { %v1377_v2 = vsel %vm1322_vm15, %v1295_v59, %v1350_v62  ;;  %v1296_v3 = vadd.f32 %v7770_v8, %v1167_v63  ;;  %vm5067_vm15 = vcmask 1042434  }
 0x1b8   : > { %v1431_v4 = vcombine.high %v1377_v2, %v1377_v2  ;;  %v1438_v50 = vrot.slane %v1377_v2, %v8915_v60  ;;  %v1171_v52 = vpop.f32.mrf.mxu1 }
 0x1b9   : > { %vm1323_vm2 = vcmp.ge.f32.partialorder %v1296_v3, 0.0  ;;  %v1351_v7 = vmul.f32 %v8911_v57, %v1296_v3  ;;  %v1172_v5 = vadd.f32 %v8908_v51, %v1171_v52 }
 0x1ba   : > { %v1445_v33 = vrot.slane %v1431_v4, %v8915_v60  ;;  %v1446_v35 = vcombine.high %v1438_v50, %v1438_v50  ;;  %v1454_v37 = vrot.slane %v1438_v50, %v8915_v60  ;;  %v8059_v53 = vpop.f32.mrf.mxu1 }
 0x1bb   : > { %v1378_v54 = vsel %vm1323_vm2, %v1296_v3, %v1351_v7  ;;  %v1297_v6 = vadd.f32 %v7773_v10, %v1172_v5  ;;  %vm5069_vm2 = vcmask 1043459  }
 0x1bc   : > { %v1447_v8 = vcombine.high %v1445_v33, %v1445_v33  ;;  %v1461_v55 = vrot.slane %v1445_v33, %v8915_v60  ;;  %v1468_v56 = vrot.slane %v1446_v35, %v8915_v60  ;;  %v1476_v58 = vcombine.high %v1454_v37, %v1454_v37  ;;  %v8930_v59 = vpop.f32.mrf.mxu1 }
 0x1bd   : > { %v1480_v61 = vcombine.high %v1378_v54, %v1378_v54  ;;  %v1487_v62 = vrot.slane %v1378_v54, %v8915_v60  ;;  %vm1324_vm4 = vcmp.ge.f32.partialorder %v1297_v6, 0.0  ;;  %v1352_v63 = vmul.f32 %v8911_v57, %v1297_v6 }
 0x1be   : > { %v1475_v0 = vrot.slane %v1447_v8, %v8915_v60  ;;  %v1478_v2 = vcombine.high %v1468_v56, %v1468_v56  ;;  %v2754_v3 = vcombine.low %v1454_v37, %v1468_v56  ;;  %v2768_v10 = vrot.slane %v1476_v58, %v8915_v60  ;;  %v8062_v4 = vpop.f32.mrf.mxu1 }
 0x1bf   : > { %v1494_v50 = vrot.slane %v1480_v61, %v8915_v60  ;;  %v1495_v52 = vcombine.high %v1487_v62, %v1487_v62  ;;  %v1503_v7 = vrot.slane %v1487_v62, %v8915_v60  ;;  %v1379_v5 = vsel %vm1324_vm4, %v1297_v6, %v1352_v63 }
 0x1c0   : > { %v2761_v33 = vrot.slane %v2754_v3, %v8915_v60  ;;  %v2777_v35 = vcombine.low %v1478_v2, %v1461_v55  ;;  %v2791_v53 = vrot.slane %v1475_v0, %v8915_v60  ;;  %v7704_v54 = vcombine.high %v1461_v55, %v1475_v0  ;;  %v8940_v49 = vpop.f32.mrf.mxu1 }
 0x1c1   : > { %v1496_v8 = vcombine.high %v1494_v50, %v1494_v50  ;;  %v1510_v37 = vrot.slane %v1494_v50, %v8915_v60  ;;  %v1517_v56 = vrot.slane %v1495_v52, %v8915_v60  ;;  %v1525_v58 = vcombine.high %v1503_v7, %v1503_v7 }
 0x1c2   : > { %v2769_v4 = vcombine.low %v2761_v33, %v2768_v10  ;;  %v2784_v61 = vrot.slane %v2777_v35, %v8915_v60  ;;  %v2807_v62 = vrot.slane %v7704_v54, %v8915_v60  ;;  %v2814_v6 = vrot.slane %v1503_v7, %v8915_v60  ;;  %v8065_v63 = vpop.f32.mrf.mxu1 }
 0x1c3   : > { %v1524_v2 = vrot.slane %v1496_v8, %v8915_v60  ;;  %v1526_v3 = vcombine.high %v1510_v37, %v1510_v37  ;;  %v1527_v55 = vcombine.high %v1517_v56, %v1517_v56  ;;  %v2823_v0 = vcombine.low %v1517_v56, %v1525_v58 }
 0x1c4   : > { %v2776_v47 = vrot.slane %v2769_v4, %v8915_v60  ;;  %v2792_v46 = vcombine.low %v2784_v61, %v2791_v53  ;;  %v2815_v50 = vcombine.low %v2807_v62, %v2814_v6  ;;  %v1529_v44 = vcombine.high %v1379_v5, %v1379_v5  ;;  %v8949_v52 = vpop.f32.mrf.mxu1 }
 0x1c5   : > { %v2830_v10 = vrot.slane %v2823_v0, %v8915_v60  ;;  %v2837_v33 = vrot.slane %v1527_v55, %v8915_v60  ;;  %v2846_v35 = vcombine.low %v1510_v37, %v1524_v2  ;;  %v2860_v56 = vrot.slane %v1526_v3, %v8915_v60 }
 0x1c6   : > { %v2799_v7 = vrot.slane %v2792_v46, %v8915_v60  ;;  %v4483_v54 = vsel %vm4482_vm3, %v2776_v47, -inf  ;;  %v2822_v8 = vrot.slane %v2815_v50, %v8915_v60  ;;  %v8068_v58 = vpop.f32.mrf.mxu1  ;;  %v1536_v62 = vrot.slane %v1379_v5, %v8915_v60 }
 0x1c7   : > { %v4484_v4 = vrot.slane %v4483_v54, 4  ;;  %v2838_v53 = vcombine.low %v2830_v10, %v2837_v33  ;;  %v2853_v61 = vrot.slane %v2846_v35, %v8915_v60  ;;  %v1528_v37 = vcombine.high %v1524_v2, %v1524_v2 }
 0x1c8   : > { %v4490_v6 = vsel %vm4482_vm3, %v2799_v7, -inf  ;;  %v4497_v63 = vsel %vm4482_vm3, %v2822_v8, -inf  ;;  %v1543_v46 = vrot.slane %v1529_v44, %v8915_v60  ;;  %v1191_v55 = vpop.f32.mrf.mxu1  ;;  %v1544_v43 = vcombine.high %v1536_v62, %v1536_v62 }
 0x1c9   : > { %v4485_v47 = vmax.f32 %v4483_v54, %v4484_v4  ;;  %v4491_v0 = vrot.slane %v4490_v6, 4  ;;  %v2845_v50 = vrot.slane %v2838_v53, %v8915_v60  ;;  %v2861_v3 = vcombine.low %v2853_v61, %v2860_v56 }
 0x1ca   : > { %v4498_v58 = vrot.slane %v4497_v63, 4  ;;  %v1545_v10 = vcombine.high %v1543_v46, %v1543_v46  ;;  %v1552_v33 = vrot.slane %v1536_v62, %v8915_v60  ;;  %v8071_v35 = vpop.f32.mrf.mxu1  ;;  %v1559_v54 = vrot.slane %v1543_v46, %v8915_v60 }
 0x1cb   : > { %v4486_v5 = vrot.slane %v4485_v47, 2  ;;  %v4492_v41 = vmax.f32 %v4490_v6, %v4491_v0  ;;  %v2868_v7 = vrot.slane %v2861_v3, %v8915_v60  ;;  %v4504_v2 = vsel %vm4482_vm3, %v2845_v50, -inf }
 0x1cc   : > { %v4499_v8 = vmax.f32 %v4497_v63, %v4498_v58  ;;  %v4505_v44 = vrot.slane %v4504_v2, 4  ;;  %v1566_v4 = vrot.slane %v1544_v43, %v8915_v60  ;;  %v1196_v53 = vpop.f32.mrf.mxu1  ;;  %v1573_v62 = vrot.slane %v1545_v10, %v8915_v60 }
 0x1cd   : > { %v4487_v56 = vmax.f32 %v4485_v47, %v4486_v5  ;;  %v4493_v61 = vrot.slane %v4492_v41, 2  ;;  %v4511_v40 = vsel %vm4482_vm3, %v2868_v7, -inf  ;;  %v1575_v0 = vcombine.high %v1559_v54, %v1559_v54 }
 0x1ce   : > { %v4500_v35 = vrot.slane %v4499_v8, 2  ;;  %v8970_v38 = vmax.f32 %v4504_v2, %v4505_v44  ;;  %v4512_v6 = vrot.slane %v4511_v40, 4  ;;  %v8074_v3 = vpop.f32.mrf.mxu1  ;;  %v1577_v63 = vcombine.high %v1573_v62, %v1573_v62 }
 0x1cf   : > { %v4488_v50 = vrot.slane %v4487_v56, 1  ;;  %v2869_v58 = vcombine.low %v1528_v37, %v1552_v33  ;;  %v1177_v46 = vadd.f32 %v8908_v51, %v8930_v59  ;;  %v8974_v43 = vmax.f32 %v4492_v41, %v4493_v61 }
 0x1d0   : > { %v4501_v47 = vmax.f32 %v4499_v8, %v4500_v35  ;;  %v8977_v7 = vmax.f32 %v4511_v40, %v4512_v6  ;;  %v8979_v10 = vpop.f32.mrf.mxu1  ;;  %v2883_v3 = vrot.slane %v1566_v4, %v8915_v60  ;;  %v7705_v36 = vcombine.high %v1552_v33, %v1566_v4 }
 0x1d1   : > { %v8981_v2 = vmax.f32 %v4487_v56, %v4488_v50  ;;  %v2876_v44 = vrot.slane %v2869_v58, %v8915_v60  ;;  %v2906_v32 = vrot.slane %v1559_v54, %v8915_v60  ;;  %v2915_v59 = vcombine.low %v1573_v62, %v1575_v0 }
 0x1d2   : > { %v4502_v37 = vrot.slane %v4501_v47, 1  ;;  %v2929_v41 = vrot.slane %v1577_v63, %v8915_v60  ;;  %v8077_v8 = vpop.f32.mrf.mxu1  ;;  %v2899_v40 = vrot.slane %v7705_v36, %v8915_v60  ;;  %v1298_v35 = vadd.f32 %v7774_v11, %v1177_v46 }
 0x1d3   : > { %v2884_v61 = vcombine.low %v2876_v44, %v2883_v3  ;;  %v1182_v56 = vadd.f32 %v8908_v51, %v8940_v49  ;;  %v2922_v33 = vrot.slane %v2915_v59, %v8915_v60  ;;  %v1187_v54 = vadd.f32 %v8908_v51, %v8949_v52 }
 0x1d4   : > { %v1192_v4 = vadd.f32 %v8908_v51, %v1191_v55  ;;  %v8997_v62 = vpop.f32.mrf.mxu1  ;;  %v2907_v36 = vcombine.low %v2899_v40, %v2906_v32  ;;  %vm1325_vm5 = vcmp.ge.f32.partialorder %v1298_v35, 0.0  ;;  %v1353_v9 = vmul.f32 %v8911_v57, %v1298_v35 }
 0x1d5   : > { %v2891_v0 = vrot.slane %v2884_v61, %v8915_v60  ;;  %v9001_v11 = vmax.f32 %v4501_v47, %v4502_v37  ;;  %v9003_v49 = vcombine.low %v2922_v33, %v2929_v41  ;;  %v1299_v50 = vadd.f32 %v7777_v13, %v1182_v56 }
 0x1d6   : > { %v1300_v52 = vadd.f32 %v7778_v14, %v1187_v54  ;;  %v8080_v63 = vpop.f32.mrf.mxu1  ;;  %v2914_v55 = vrot.slane %v2907_v36, %v8915_v60  ;;  %v1380_v46 = vsel %vm1325_vm5, %v1298_v35, %v1353_v9  ;;  %v9013_v32 = vadd.f32 %v7781_v16, %v1192_v4 }
 0x1d7   : > { %v4518_v58 = vsel %vm4482_vm3, %v2891_v0, -inf  ;;  %v1578_v44 = vcombine.high %v1380_v46, %v1380_v46  ;;  %v1585_v3 = vrot.slane %v1380_v46, %v8915_v60  ;;  %vm1326_vm6 = vcmp.ge.f32.partialorder %v1299_v50, 0.0 }
 0x1d8   : > { %v4519_v47 = vrot.slane %v4518_v58, 4  ;;  %v9016_v37 = vpop.f32.mrf.mxu1  ;;  %v9019_v12 = vsel %vm4482_vm3, %v2914_v55, -inf  ;;  %v1354_v13 = vmul.f32 %v8911_v57, %v1299_v50  ;;  %vm1327_vm7 = vcmp.ge.f32.partialorder %v1300_v52, 0.0 }
 0x1d9   : > { %v1355_v14 = vmul.f32 %v8911_v57, %v1300_v52  ;;  %v1592_v16 = vrot.slane %v1578_v44, %v8915_v60  ;;  %v1593_v41 = vcombine.high %v1585_v3, %v1585_v3  ;;  %v9027_v8 = vadd.f32 %v8908_v51, %v1196_v53 }
 0x1da   : > { %v9023_v59 = vmax.f32 %v4518_v58, %v4519_v47  ;;  %v8083_v61 = vpop.f32.mrf.mxu1  ;;  %v1601_v35 = vrot.slane %v1585_v3, %v8915_v60  ;;  %v1381_v56 = vsel %vm1326_vm6, %v1299_v50, %v1354_v13  ;;  %vm1328_vm8 = vcmp.ge.f32.partialorder %v9013_v32, 0.0 }
 0x1db   : > { %v1382_v33 = vsel %vm1327_vm7, %v1300_v52, %v1355_v14  ;;  %v1594_v54 = vcombine.high %v1592_v16, %v1592_v16  ;;  %v1608_v4 = vrot.slane %v1592_v16, %v8915_v60  ;;  %v1615_v0 = vrot.slane %v1593_v41, %v8915_v60 }
 0x1dc   : > { %v1627_v36 = vcombine.high %v1381_v56, %v1381_v56  ;;  %v9033_v9 = vpop.f32.mrf.mxu1  ;;  %v1623_v63 = vcombine.high %v1601_v35, %v1601_v35  ;;  %v1634_v55 = vrot.slane %v1381_v56, %v8915_v60  ;;  %v1676_v53 = vcombine.high %v1382_v33, %v1382_v33 }
 0x1dd   : > { %v1683_v58 = vrot.slane %v1382_v33, %v8915_v60  ;;  %v1622_v46 = vrot.slane %v1594_v54, %v8915_v60  ;;  %v1625_v47 = vcombine.high %v1615_v0, %v1615_v0  ;;  %v2938_v44 = vcombine.low %v1601_v35, %v1615_v0 }
 0x1de   : > { %v1641_v50 = vrot.slane %v1627_v36, %v8915_v60  ;;  %v8086_v52 = vpop.f32.mrf.mxu1  ;;  %v2952_v3 = vrot.slane %v1623_v63, %v8915_v60  ;;  %v1642_v13 = vcombine.high %v1634_v55, %v1634_v55  ;;  %v1650_v14 = vrot.slane %v1634_v55, %v8915_v60 }
 0x1df   : > { %v1690_v16 = vrot.slane %v1676_v53, %v8915_v60  ;;  %v2945_v41 = vrot.slane %v2938_v44, %v8915_v60  ;;  %v2961_v61 = vcombine.low %v1625_v47, %v1608_v4  ;;  %v2975_v56 = vrot.slane %v1622_v46, %v8915_v60 }
 0x1e0   : > { %v7706_v33 = vcombine.high %v1608_v4, %v1622_v46  ;;  %v9044_v31 = vpop.f32.mrf.mxu1  ;;  %v1643_v54 = vcombine.high %v1641_v50, %v1641_v50  ;;  %v1657_v35 = vrot.slane %v1641_v50, %v8915_v60  ;;  %v1664_v0 = vrot.slane %v1642_v13, %v8915_v60 }
 0x1e1   : > { %v1672_v36 = vcombine.high %v1650_v14, %v1650_v14  ;;  %v2953_v63 = vcombine.low %v2945_v41, %v2952_v3  ;;  %v2968_v52 = vrot.slane %v2961_v61, %v8915_v60  ;;  %v2998_v53 = vrot.slane %v1650_v14, %v8915_v60 }
 0x1e2   : > { %v2991_v55 = vrot.slane %v7706_v33, %v8915_v60  ;;  %v8089_v44 = vpop.f32.mrf.mxu1  ;;  %v1671_v47 = vrot.slane %v1643_v54, %v8915_v60  ;;  %v1673_v29 = vcombine.high %v1657_v35, %v1657_v35  ;;  %v1674_v4 = vcombine.high %v1664_v0, %v1664_v0 }
 0x1e3   : > { %v3007_v46 = vcombine.low %v1664_v0, %v1672_v36  ;;  %v2960_v1 = vrot.slane %v2953_v63, %v8915_v60  ;;  %v2976_v28 = vcombine.low %v2968_v52, %v2975_v56  ;;  %v1691_v26 = vcombine.high %v1683_v58, %v1683_v58 }
 0x1e4   : > { %v2999_v50 = vcombine.low %v2991_v55, %v2998_v53  ;;  %v9053_v13 = vpop.f32.mrf.mxu1  ;;  %v3021_v41 = vrot.slane %v1674_v4, %v8915_v60  ;;  %v3030_v61 = vcombine.low %v1657_v35, %v1671_v47  ;;  %v3044_v14 = vrot.slane %v1673_v29, %v8915_v60 }
 0x1e5   : > { %v3014_v3 = vrot.slane %v3007_v46, %v8915_v60  ;;  %v2983_v33 = vrot.slane %v2976_v28, %v8915_v60  ;;  %v4539_v54 = vsel %vm4482_vm3, %v2960_v1, -inf  ;;  %v1675_v36 = vcombine.high %v1671_v47, %v1671_v47 }
 0x1e6   : > { %v3006_v0 = vrot.slane %v2999_v50, %v8915_v60  ;;  %v8092_v63 = vpop.f32.mrf.mxu1  ;;  %v4540_v56 = vrot.slane %v4539_v54, 4  ;;  %v3037_v55 = vrot.slane %v3030_v61, %v8915_v60  ;;  %v1692_v53 = vcombine.high %v1690_v16, %v1690_v16 }
 0x1e7   : > { %v9061_v52 = vcombine.low %v3014_v3, %v3021_v41  ;;  %v4546_v44 = vsel %vm4482_vm3, %v2983_v33, -inf  ;;  %v1706_v29 = vrot.slane %v1690_v16, %v8915_v60  ;;  %v1699_v46 = vrot.slane %v1683_v58, %v8915_v60 }
 0x1e8   : > { %v4553_v35 = vsel %vm4482_vm3, %v3006_v0, -inf  ;;  %v9068_v28 = vpop.f32.mrf.mxu1  ;;  %v4541_v1 = vmax.f32 %v4539_v54, %v4540_v56  ;;  %v4547_v4 = vrot.slane %v4546_v44, 4  ;;  %v3045_v47 = vcombine.low %v3037_v55, %v3044_v14 }
 0x1e9   : > { %v4554_v50 = vrot.slane %v4553_v35, 4  ;;  %v1713_v3 = vrot.slane %v1691_v26, %v8915_v60  ;;  %v1720_v41 = vrot.slane %v1692_v53, %v8915_v60  ;;  %v1722_v61 = vcombine.high %v1706_v29, %v1706_v29 }
 0x1ea   : > { %v8095_v33 = vpop.f32.mrf.mxu1  ;;  %v4542_v63 = vrot.slane %v4541_v1, 2  ;;  %v9073_v0 = vmax.f32 %v4546_v44, %v4547_v4  ;;  %v3053_v25 = vcombine.low %v1675_v36, %v1699_v46  ;;  %v9078_v54 = vrot.slane %v3045_v47, %v8915_v60 }
 0x1eb   : > { %v4555_v14 = vmax.f32 %v4553_v35, %v4554_v50  ;;  %v1724_v56 = vcombine.high %v1720_v41, %v1720_v41  ;;  %v7707_v58 = vcombine.high %v1699_v46, %v1713_v3  ;;  %v3067_v44 = vrot.slane %v1713_v3, %v8915_v60 }
 0x1ec   : > { %v9080_v55 = vpop.f32.mrf.mxu1  ;;  %v9082_v26 = vmax.f32 %v4541_v1, %v4542_v63  ;;  %v3060_v33 = vrot.slane %v3053_v25, %v8915_v60  ;;  %v3090_v36 = vrot.slane %v1706_v29, %v8915_v60  ;;  %v9089_v47 = vcombine.low %v1720_v41, %v1722_v61 }
 0x1ed   : > { %v4556_v4 = vrot.slane %v4555_v14, 2  ;;  %v3083_v16 = vrot.slane %v7707_v58, %v8915_v60  ;;  %v1356_v1 = vmul.f32 %v8911_v57, %v9013_v32  ;;  %v1302_v46 = vadd.f32 %v7782_v17, %v9027_v8 }
 0x1ee   : > { %v8098_v35 = vpop.f32.mrf.mxu1  ;;  %v9091_v50 = vcombine.low %v3060_v33, %v3067_v44  ;;  %v1202_v25 = vadd.f32 %v8908_v51, %v8979_v10  ;;  %v9105_v29 = vrot.slane %v1724_v56, %v8915_v60  ;;  %v1207_v41 = vadd.f32 %v8908_v51, %v8997_v62 }
 0x1ef   : > { %v9100_v3 = vmax.f32 %v4555_v14, %v4556_v4  ;;  %v9102_v63 = vcombine.low %v3083_v16, %v3090_v36  ;;  %v1383_v15 = vsel %vm1328_vm8, %v9013_v32, %v1356_v1  ;;  %vm1329_vm9 = vcmp.ge.f32.partialorder %v1302_v46, 0.0 }
 0x1f0   : > { %v9109_v61 = vpop.f32.mrf.mxu1  ;;  %v1357_v17 = vmul.f32 %v8911_v57, %v1302_v46  ;;  %v1725_v8 = vcombine.high %v1383_v15, %v1383_v15  ;;  %v1732_v16 = vrot.slane %v1383_v15, %v8915_v60  ;;  %v1303_v62 = vadd.f32 %v7785_v19, %v1202_v25 }
 0x1f1   : > { %v9124_v33 = vadd.f32 %v7786_v20, %v1207_v41  ;;  %v9128_v32 = vadd.f32 %v8908_v51, %v9016_v37  ;;  %v9132_v44 = vadd.f32 %v8908_v51, %v9033_v9  ;;  %vm5071_vm4 = vcmask 1044484  }
 0x1f2   : > { %v8101_v14 = vpop.f32.mrf.mxu1  ;;  %v1384_v56 = vsel %vm1329_vm9, %v1302_v46, %v1357_v17  ;;  %v1739_v4 = vrot.slane %v1725_v8, %v8915_v60  ;;  %v1740_v36 = vcombine.high %v1732_v16, %v1732_v16  ;;  %v1748_v35 = vrot.slane %v1732_v16, %v8915_v60 }
 0x1f3   : > { %v1774_v19 = vcombine.high %v1384_v56, %v1384_v56  ;;  %v1781_v18 = vrot.slane %v1384_v56, %v8915_v60  ;;  %vm1330_vm10 = vcmp.ge.f32.partialorder %v1303_v62, 0.0  ;;  %v1358_v20 = vmul.f32 %v8911_v57, %v1303_v62 }
 0x1f4   : > { %v9136_v1 = vpop.f32.mrf.mxu1  ;;  %v1741_v46 = vcombine.high %v1739_v4, %v1739_v4  ;;  %v1755_v9 = vrot.slane %v1739_v4, %v8915_v60  ;;  %v1762_v25 = vrot.slane %v1740_v36, %v8915_v60  ;;  %v1770_v41 = vcombine.high %v1748_v35, %v1748_v35 }
 0x1f5   : > { %v1788_v17 = vrot.slane %v1774_v19, %v8915_v60  ;;  %v1789_v8 = vcombine.high %v1781_v18, %v1781_v18  ;;  %v1797_v16 = vrot.slane %v1781_v18, %v8915_v60  ;;  %v1385_v14 = vsel %vm1330_vm10, %v1303_v62, %v1358_v20 }
 0x1f6   : > { %v8104_v15 = vpop.f32.mrf.mxu1  ;;  %v1769_v56 = vrot.slane %v1741_v46, %v8915_v60  ;;  %v1772_v10 = vcombine.high %v1762_v25, %v1762_v25  ;;  %v3122_v53 = vcombine.low %v1748_v35, %v1762_v25  ;;  %v3136_v58 = vrot.slane %v1770_v41, %v8915_v60 }
 0x1f7   : > { %v1790_v37 = vcombine.high %v1788_v17, %v1788_v17  ;;  %v1804_v40 = vrot.slane %v1788_v17, %v8915_v60  ;;  %v1811_v4 = vrot.slane %v1789_v8, %v8915_v60  ;;  %v1819_v36 = vcombine.high %v1797_v16, %v1797_v16 }
 0x1f8   : > { %v3129_v15 = vrot.slane %v3122_v53, %v8915_v60  ;;  %v3145_v5 = vcombine.low %v1772_v10, %v1755_v9  ;;  %v3159_v19 = vrot.slane %v1769_v56, %v8915_v60  ;;  %v7708_v6 = vcombine.high %v1755_v9, %v1769_v56  ;;  %v9159_v56 = vpop.f32.mrf.mxu1 }
 0x1f9   : > { %vm1331_vm11 = vcmp.ge.f32.partialorder %v9124_v33, 0.0  ;;  %v1818_v62 = vrot.slane %v1790_v37, %v8915_v60  ;;  %v1820_v18 = vcombine.high %v1804_v40, %v1804_v40  ;;  %v1821_v35 = vcombine.high %v1811_v4, %v1811_v4 }
 0x1fa   : > { %v3182_v20 = vrot.slane %v1797_v16, %v8915_v60  ;;  %v3137_v46 = vcombine.low %v3129_v15, %v3136_v58  ;;  %v3152_v25 = vrot.slane %v3145_v5, %v8915_v60  ;;  %v3175_v41 = vrot.slane %v7708_v6, %v8915_v60 }
 0x1fb   : > { %v3191_v17 = vcombine.low %v1811_v4, %v1819_v36  ;;  %v3205_v53 = vrot.slane %v1821_v35, %v8915_v60  ;;  %v3214_v10 = vcombine.low %v1804_v40, %v1818_v62  ;;  %v3228_v8 = vrot.slane %v1820_v18, %v8915_v60  ;;  %v8107_v40 = vpop.f32.mrf.mxu1 }
 0x1fc   : > { %v1822_v9 = vcombine.high %v1818_v62, %v1818_v62  ;;  %v3144_v37 = vrot.slane %v3137_v46, %v8915_v60  ;;  %v3160_v23 = vcombine.low %v3152_v25, %v3159_v19  ;;  %v3183_v22 = vcombine.low %v3175_v41, %v3182_v20 }
 0x1fd   : > { %v3198_v16 = vrot.slane %v3191_v17, %v8915_v60  ;;  %v3221_v58 = vrot.slane %v3214_v10, %v8915_v60  ;;  %v1823_v5 = vcombine.high %v1385_v14, %v1385_v14  ;;  %v1830_v6 = vrot.slane %v1385_v14, %v8915_v60 }
 0x1fe   : > { %v1359_v4 = vmul.f32 %v8911_v57, %v9124_v33  ;;  %v3167_v36 = vrot.slane %v3160_v23, %v8915_v60  ;;  %v4595_v15 = vsel %vm4482_vm3, %v3144_v37, -inf  ;;  %v3190_v62 = vrot.slane %v3183_v22, %v8915_v60 }
 0x1ff   : > { %v9170_v18 = vcombine.low %v3198_v16, %v3205_v53  ;;  %v4596_v19 = vrot.slane %v4595_v15, 4  ;;  %v3229_v35 = vcombine.low %v3221_v58, %v3228_v8  ;;  %v1837_v20 = vrot.slane %v1823_v5, %v8915_v60 }
 0x200   : > { %v1838_v46 = vcombine.high %v1830_v6, %v1830_v6  ;;  %v4602_v25 = vsel %vm4482_vm3, %v3167_v36, -inf  ;;  %v4609_v41 = vsel %vm4482_vm3, %v3190_v62, -inf  ;;  %v1846_v23 = vrot.slane %v1830_v6, %v8915_v60 }
 0x201   : > { %v4597_v17 = vmax.f32 %v4595_v15, %v4596_v19  ;;  %v4603_v10 = vrot.slane %v4602_v25, 4  ;;  %v9179_v22 = vrot.slane %v3229_v35, %v8915_v60  ;;  %v4610_v53 = vrot.slane %v4609_v41, 4  ;;  %v9188_v15 = vpop.f32.mrf.mxu1 }
 0x202   : > { %v1839_v37 = vcombine.high %v1837_v20, %v1837_v20  ;;  %v1853_v8 = vrot.slane %v1837_v20, %v8915_v60  ;;  %v1860_v16 = vrot.slane %v1838_v46, %v8915_v60  ;;  %v3237_v58 = vcombine.low %v1822_v9, %v1846_v23  ;;  %10644 = vst [vmem:[#allocation10_spill] sm:$0xff] %v9188_v15 }
 0x203   : > { %v4598_v5 = vrot.slane %v4597_v17, 2  ;;  %v9183_v40 = vmax.f32 %v4602_v25, %v4603_v10  ;;  %v4611_v36 = vmax.f32 %v4609_v41, %v4610_v53  ;;  %v1386_v6 = vsel %vm1331_vm11, %v9124_v33, %v1359_v4  ;;  %v8110_v41 = vpop.f32.mrf.mxu1 }
 0x204   : > { %v1867_v62 = vrot.slane %v1839_v37, %v8915_v60  ;;  %v1869_v19 = vcombine.high %v1853_v8, %v1853_v8  ;;  %v3244_v35 = vrot.slane %v3237_v58, %v8915_v60  ;;  %v3251_v20 = vrot.slane %v1860_v16, %v8915_v60 }
 0x205   : > { %v9193_v14 = vmax.f32 %v4597_v17, %v4598_v5  ;;  %v4612_v46 = vrot.slane %v4611_v36, 2  ;;  %v7709_v25 = vcombine.high %v1846_v23, %v1860_v16  ;;  %v3274_v33 = vrot.slane %v1853_v8, %v8915_v60  ;;  %v9205_v5 = vpop.f32.mrf.mxu1 }
 0x206   : > { %v1871_v10 = vcombine.high %v1867_v62, %v1867_v62  ;;  %v9196_v53 = vcombine.low %v3244_v35, %v3251_v20  ;;  %v9199_v4 = vcombine.low %v1867_v62, %v1869_v19  ;;  %v1872_v48 = vcombine.high %v1386_v6, %v1386_v6  ;;  %10645 = vst [vmem:[#allocation11_spill] sm:$0xff] %v9205_v5 }
 0x207   : > { %v9201_v37 = vmax.f32 %v4611_v36, %v4612_v46  ;;  %v3267_v58 = vrot.slane %v7709_v25, %v8915_v60  ;;  %v1879_v17 = vrot.slane %v1386_v6, %v8915_v60  ;;  %v10646_v8 = vunpack.c.l.bf16 %v8602_v21  ;;  %v8113_v46 = vpop.f32.mrf.mxu1 }
 0x208   : > { %v9212_v35 = vrot.slane %v1871_v10, %v8915_v60  ;;  %v1886_v19 = vrot.slane %v1872_v48, %v8915_v60  ;;  %v10647_v41 = vunpack.c.h.bf16 %v8602_v21  ;;  %v10648_v23 = vrot.slane %v8974_v43, 1 }
 0x209   : > { %v1305_v36 = vadd.f32 %v10646_v8, %v9128_v32  ;;  %v9217_v62 = vcombine.low %v3267_v58, %v3274_v33  ;;  %v1887_v6 = vcombine.high %v1879_v17, %v1879_v17  ;;  %v1895_v20 = vrot.slane %v1879_v17, %v8915_v60 }
 0x20a   : > { %v1306_v10 = vadd.f32 %v10647_v41, %v9132_v44  ;;  %v9228_v9 = vmax.f32 %v8974_v43, %v10648_v23  ;;  %v1888_v32 = vcombine.high %v1886_v19, %v1886_v19  ;;  %v1902_v33 = vrot.slane %v1886_v19, %v8915_v60 }
 0x20b   : > { %vm1332_vm12 = vcmp.ge.f32.partialorder %v1305_v36, 0.0  ;;  %v1360_v25 = vmul.f32 %v8911_v57, %v1305_v36  ;;  %v1909_v48 = vrot.slane %v1887_v6, %v8915_v60  ;;  %v1917_v58 = vcombine.high %v1895_v20, %v1895_v20 }
 0x20c   : > { %vm1333_vm13 = vcmp.ge.f32.partialorder %v1306_v10, 0.0  ;;  %v1361_v8 = vmul.f32 %v8911_v57, %v1306_v10  ;;  %v10649_v46 = vrot.slane %v8970_v38, 2  ;;  %v1916_v44 = vrot.slane %v1888_v32, %v8915_v60 }
 0x20d   : > { %v1387_v17 = vsel %vm1332_vm12, %v1305_v36, %v1360_v25  ;;  %v1919_v41 = vcombine.high %v1909_v48, %v1909_v48  ;;  %v3306_v43 = vcombine.low %v1895_v20, %v1909_v48  ;;  %v3320_v23 = vrot.slane %v1917_v58, %v8915_v60 }
 0x20e   : > { %v9236_v21 = vmax.f32 %v8970_v38, %v10649_v46  ;;  %v1921_v16 = vcombine.high %v1387_v17, %v1387_v17  ;;  %v1928_v19 = vrot.slane %v1387_v17, %v8915_v60  ;;  %v1388_v6 = vsel %vm1333_vm13, %v1306_v10, %v1361_v8 }
 0x20f   : > { %v3313_v25 = vrot.slane %v3306_v43, %v8915_v60  ;;  %v3329_v45 = vcombine.low %v1919_v41, %v1902_v33  ;;  %v3343_v42 = vrot.slane %v1916_v44, %v8915_v60  ;;  %v7710_v39 = vcombine.high %v1902_v33, %v1916_v44 }
 0x210   : > { %v1935_v38 = vrot.slane %v1921_v16, %v8915_v60  ;;  %v1936_v46 = vcombine.high %v1928_v19, %v1928_v19  ;;  %v1944_v32 = vrot.slane %v1928_v19, %v8915_v60  ;;  %v1970_v20 = vcombine.high %v1388_v6, %v1388_v6 }
 0x211   : > { %v3321_v48 = vcombine.low %v3313_v25, %v3320_v23  ;;  %v3336_v58 = vrot.slane %v3329_v45, %v8915_v60  ;;  %v3359_v17 = vrot.slane %v7710_v39, %v8915_v60  ;;  %v1977_v10 = vrot.slane %v1388_v6, %v8915_v60 }
 0x212   : > { %v1937_v8 = vcombine.high %v1935_v38, %v1935_v38  ;;  %v1951_v43 = vrot.slane %v1935_v38, %v8915_v60  ;;  %v1958_v41 = vrot.slane %v1936_v46, %v8915_v60  ;;  %v1966_v36 = vcombine.high %v1944_v32, %v1944_v32 }
 0x213   : > { %v3328_v33 = vrot.slane %v3321_v48, %v8915_v60  ;;  %v3344_v16 = vcombine.low %v3336_v58, %v3343_v42  ;;  %v3366_v44 = vrot.slane %v1944_v32, %v8915_v60  ;;  %v1984_v19 = vrot.slane %v1970_v20, %v8915_v60 }
 0x214   : > { %v1965_v23 = vrot.slane %v1937_v8, %v8915_v60  ;;  %v1967_v45 = vcombine.high %v1951_v43, %v1951_v43  ;;  %v1968_v25 = vcombine.high %v1958_v41, %v1958_v41  ;;  %v3375_v39 = vcombine.low %v1958_v41, %v1966_v36 }
 0x215   : > { %v3351_v6 = vrot.slane %v3344_v16, %v8915_v60  ;;  %v4651_v5 = vsel %vm4482_vm3, %v3328_v33, -inf  ;;  %v3367_v38 = vcombine.low %v3359_v17, %v3366_v44  ;;  %v1985_v34 = vcombine.high %v1977_v10, %v1977_v10 }
 0x216   : > { %v4652_v46 = vrot.slane %v4651_v5, 4  ;;  %v3382_v15 = vrot.slane %v3375_v39, %v8915_v60  ;;  %v3389_v42 = vrot.slane %v1968_v25, %v8915_v60  ;;  %v3398_v48 = vcombine.low %v1951_v43, %v1965_v23 }
 0x217   : > { %v4658_v32 = vsel %vm4482_vm3, %v3351_v6, -inf  ;;  %v3374_v20 = vrot.slane %v3367_v38, %v8915_v60  ;;  %v3412_v58 = vrot.slane %v1967_v45, %v8915_v60  ;;  %v1969_v8 = vcombine.high %v1965_v23, %v1965_v23 }
 0x218   : > { %v4653_v36 = vmax.f32 %v4651_v5, %v4652_v46  ;;  %v4659_v41 = vrot.slane %v4658_v32, 4  ;;  %v9262_v16 = vcombine.low %v3382_v15, %v3389_v42  ;;  %v3405_v17 = vrot.slane %v3398_v48, %v8915_v60 }
 0x219   : > { %v4665_v33 = vsel %vm4482_vm3, %v3374_v20, -inf  ;;  %v1986_v44 = vcombine.high %v1984_v19, %v1984_v19  ;;  %v1993_v25 = vrot.slane %v1977_v10, %v8915_v60  ;;  %v2000_v43 = vrot.slane %v1984_v19, %v8915_v60 }
 0x21a   : > { %v4654_v39 = vrot.slane %v4653_v36, 2  ;;  %v9268_v6 = vmax.f32 %v4658_v32, %v4659_v41  ;;  %v3413_v23 = vcombine.low %v3405_v17, %v3412_v58  ;;  %v4666_v15 = vrot.slane %v4665_v33, 4 }
 0x21b   : > { %v2007_v45 = vrot.slane %v1985_v34, %v8915_v60  ;;  %v2014_v38 = vrot.slane %v1986_v44, %v8915_v60  ;;  %v2016_v46 = vcombine.high %v2000_v43, %v2000_v43  ;;  %v3421_v48 = vcombine.low %v1969_v8, %v1993_v25 }
 0x21c   : > { %v9274_v42 = vmax.f32 %v4653_v36, %v4654_v39  ;;  %v9278_v19 = vrot.slane %v3413_v23, %v8915_v60  ;;  %v4667_v32 = vmax.f32 %v4665_v33, %v4666_v15  ;;  %vm5073_vm5 = vcmask 1045509  }
 0x21d   : > { %v2018_v20 = vcombine.high %v2014_v38, %v2014_v38  ;;  %v3435_v58 = vrot.slane %v2007_v45, %v8915_v60  ;;  %v7711_v41 = vcombine.high %v1993_v25, %v2007_v45  ;;  %v3428_v34 = vrot.slane %v3421_v48, %v8915_v60 }
 0x21e   : > { %v3458_v17 = vrot.slane %v2000_v43, %v8915_v60  ;;  %v9283_v44 = vcombine.low %v2014_v38, %v2016_v46  ;;  %v10650_v36 = vrot.slane %v9236_v21, 1  ;;  %v4668_v23 = vrot.slane %v4667_v32, 2 }
 0x21f   : > { %v3451_v8 = vrot.slane %v7711_v41, %v8915_v60  ;;  %v9290_v33 = vrot.slane %v2018_v20, %v8915_v60  ;;  %v4514_v15 = vrot.slane %v8977_v7, 2  ;;  %vm5075_vm6 = vcmask 1046534  }
 0x220   : > { %v4510_v39 = vmax.f32 %v9236_v21, %v10650_v36  ;;  %v9293_v25 = vcombine.low %v3428_v34, %v3435_v58  ;;  %v4521_v45 = vrot.slane %v9023_v59, 2  ;;  %v10652_v38 = vrot.slane %v9019_v12, 4  ;;  %v9310_v34 = vpop.f32.mrf.mxu1 }
 0x221   : > { %v9301_v46 = vmax.f32 %v4667_v32, %v4668_v23  ;;  %v9303_v48 = vcombine.low %v3451_v8, %v3458_v17  ;;  %v4515_v20 = vmax.f32 %v8977_v7, %v4514_v15  ;;  %v10653_v41 = vrot.slane %v9003_v49, %v8915_v60  ;;  %10654 = vst [vmem:[#allocation13_spill] sm:$0xff] %v9310_v34 }
 0x222   : > { %10651 = vst [vmem:[#allocation12_spill] sm:$0xff] %v9293_v25  ;;  %v4527_v21 = vmax.f32 %v9019_v12, %v10652_v38  ;;  %v4522_v5 = vmax.f32 %v9023_v59, %v4521_v45  ;;  %v5066_v17 = vsel %vm5065_vm14, %v9228_v9, %v8981_v2  ;;  %vm5077_vm7 = vcmask 1047559   ;;  %v8116_v23 = vpop.f32.mrf.mxu1 }
 0x223   : > { %v4532_v58 = vsel %vm4482_vm3, %v10653_v41, -inf  ;;  %v4516_v32 = vrot.slane %v4515_v20, 1  ;;  %v1222_v7 = vadd.f32 %v8908_v51, %v9044_v31  ;;  %v1227_v49 = vadd.f32 %v8908_v51, %v9053_v13 }
 0x224   : > { %v4528_v10 = vrot.slane %v4527_v21, 2  ;;  %v4533_v12 = vrot.slane %v4532_v58, 4  ;;  %v4523_v8 = vrot.slane %v4522_v5, 1  ;;  %v5068_v59 = vsel %vm5067_vm15, %v9001_v11, %v5066_v17 }
 0x225   : > { %v4517_v45 = vmax.f32 %v4515_v20, %v4516_v32  ;;  %v5070_v41 = vsel %vm5069_vm2, %v4510_v39, %v5068_v59  ;;  %v10655_v36 = vunpack.c.l.bf16 %v8617_v24  ;;  %v10656_v9 = vunpack.c.h.bf16 %v8617_v24  ;;  %v9345_v32 = vpop.f32.mrf.mxu1 }
 0x226   : > { %v4529_v15 = vmax.f32 %v4527_v21, %v4528_v10  ;;  %v4534_v38 = vmax.f32 %v4532_v58, %v4533_v12  ;;  %v4524_v31 = vmax.f32 %v4522_v5, %v4523_v8  ;;  %v1232_v13 = vadd.f32 %v8908_v51, %v9068_v28 }
 0x227   : > { %v1307_v2 = vadd.f32 %v10655_v36, %v1222_v7  ;;  %v1308_v43 = vadd.f32 %v10656_v9, %v1227_v49  ;;  %v5072_v10 = vsel %vm5071_vm4, %v4517_v45, %v5070_v41  ;;  %v10657_v5 = vunpack.c.l.bf16 %v8632_v27 }
 0x228   : > { %v4530_v34 = vrot.slane %v4529_v15, 1  ;;  %v4535_v25 = vrot.slane %v4534_v38, 2  ;;  %v5074_v20 = vsel %vm5073_vm5, %v4524_v31, %v5072_v10  ;;  %v10658_v51 = vrot.slane %v9089_v47, %v8915_v60 }
 0x229   : > { %vm1334_vm8 = vcmp.ge.f32.partialorder %v1307_v2, 0.0  ;;  %v1362_v11 = vmul.f32 %v8911_v57, %v1307_v2  ;;  %vm1335_vm9 = vcmp.ge.f32.partialorder %v1308_v43, 0.0  ;;  %v1363_v58 = vmul.f32 %v8911_v57, %v1308_v43 }
 0x22a   : > { %v4531_v21 = vmax.f32 %v4529_v15, %v4530_v34  ;;  %v4536_v39 = vmax.f32 %v4534_v38, %v4535_v25  ;;  %v1309_v36 = vadd.f32 %v10657_v5, %v1232_v13  ;;  %v9343_v28 = vcombine.low %v10658_v51, %v9105_v29  ;;  %v8119_v15 = vpop.f32.mrf.mxu1 }
 0x22b   : > { %v1389_v24 = vsel %vm1334_vm8, %v1307_v2, %v1362_v11  ;;  %v1390_v49 = vsel %vm1335_vm9, %v1308_v43, %v1363_v58  ;;  %v4544_v9 = vrot.slane %v9082_v26, 1 }
 0x22c   : > { %v4537_v25 = vrot.slane %v4536_v39, 1  ;;  %v5076_v34 = vsel %vm5075_vm6, %v4531_v21, %v5074_v20  ;;  %v2019_v17 = vcombine.high %v1389_v24, %v1389_v24  ;;  %v2026_v7 = vrot.slane %v1389_v24, %v8915_v60  ;;  %v9356_v43 = vpop.f32.mrf.mxu1 }
 0x22d   : > { %vm1336_vm10 = vcmp.ge.f32.partialorder %v1309_v36, 0.0  ;;  %v1364_v23 = vmul.f32 %v8911_v57, %v1309_v36  ;;  %v2068_v45 = vcombine.high %v1390_v49, %v1390_v49  ;;  %v2075_v41 = vrot.slane %v1390_v49, %v8915_v60 }
 0x22e   : > { %v4538_v38 = vmax.f32 %v4536_v39, %v4537_v25  ;;  %v2033_v47 = vrot.slane %v2019_v17, %v8915_v60  ;;  %v2034_v29 = vcombine.high %v2026_v7, %v2026_v7  ;;  %v2042_v59 = vrot.slane %v2026_v7, %v8915_v60  ;;  %v8122_v24 = vpop.f32.mrf.mxu1 }
 0x22f   : > { %v1391_v2 = vsel %vm1336_vm10, %v1309_v36, %v1364_v23  ;;  %v2082_v39 = vrot.slane %v2068_v45, %v8915_v60  ;;  %v2083_v20 = vcombine.high %v2075_v41, %v2075_v41  ;;  %v2091_v58 = vrot.slane %v2075_v41, %v8915_v60 }
 0x230   : > { %v5078_v31 = vsel %vm5077_vm7, %v4538_v38, %v5076_v34  ;;  %v2035_v13 = vcombine.high %v2033_v47, %v2033_v47  ;;  %v2049_v10 = vrot.slane %v2033_v47, %v8915_v60  ;;  %v2056_v11 = vrot.slane %v2034_v29, %v8915_v60 }
 0x231   : > { %8141 = vmatmul.mubr.msk.f32.vlgmr.msra.gmra.mxu0 %vm639_vm1, %v5078_v31  ;;  %v2064_v21 = vcombine.high %v2042_v59, %v2042_v59  ;;  %v2117_v25 = vcombine.high %v1391_v2, %v1391_v2  ;;  %v10659_v34 = vmov 0.0   ;;  %v2084_v7 = vcombine.high %v2082_v39, %v2082_v39 }
 0x232   : > { %v2063_v5 = vrot.slane %v2035_v13, %v8915_v60  ;;  %v2066_v36 = vcombine.high %v2056_v11, %v2056_v11  ;;  %v3490_v51 = vcombine.low %v2042_v59, %v2056_v11  ;;  %8143 = vmatprep.mubr.msk.f32.mxu0 %vm8365_vm0, %v10659_v34  ;;  %v2098_v49 = vrot.slane %v2082_v39, %v8915_v60 }
 0x233   : > { %v3504_v17 = vrot.slane %v2064_v21, %v8915_v60  ;;  %v2105_v23 = vrot.slane %v2083_v20, %v8915_v60  ;;  %v2112_v45 = vrot.slane %v2084_v7, %v8915_v60  ;;  %v2113_v59 = vcombine.high %v2091_v58, %v2091_v58 }
 0x234   : > { %v3497_v15 = vrot.slane %v3490_v51, %v8915_v60  ;;  %v3513_v38 = vcombine.low %v2066_v36, %v2049_v10  ;;  %v3527_v47 = vrot.slane %v2063_v5, %v8915_v60  ;;  %v7712_v29 = vcombine.high %v2049_v10, %v2063_v5 }
 0x235   : > { %v2114_v41 = vcombine.high %v2098_v49, %v2098_v49  ;;  %v2115_v31 = vcombine.high %v2105_v23, %v2105_v23  ;;  %v3550_v39 = vrot.slane %v2091_v58, %v8915_v60  ;;  %v3559_v24 = vcombine.low %v2105_v23, %v2113_v59 }
 0x236   : > { %v3505_v13 = vcombine.low %v3497_v15, %v3504_v17  ;;  %v3520_v11 = vrot.slane %v3513_v38, %v8915_v60  ;;  %v3543_v21 = vrot.slane %v7712_v29, %v8915_v60  ;;  %v3582_v51 = vcombine.low %v2098_v49, %v2112_v45 }
 0x237   : > { %v3573_v20 = vrot.slane %v2115_v31, %v8915_v60  ;;  %v3596_v36 = vrot.slane %v2114_v41, %v8915_v60  ;;  %v2116_v8 = vcombine.high %v2112_v45, %v2112_v45  ;;  %v3566_v12 = vrot.slane %v3559_v24, %v8915_v60 }
 0x238   : > { %v3512_v10 = vrot.slane %v3505_v13, %v8915_v60  ;;  %v3528_v5 = vcombine.low %v3520_v11, %v3527_v47  ;;  %v3551_v7 = vcombine.low %v3543_v21, %v3550_v39  ;;  %v3589_v17 = vrot.slane %v3582_v51, %v8915_v60 }
 0x239   : > { %v2124_v15 = vrot.slane %v1391_v2, %v8915_v60  ;;  %v2131_v38 = vrot.slane %v2117_v25, %v8915_v60  ;;  %v4545_v29 = vmax.f32 %v9082_v26, %v4544_v9  ;;  %v9387_v47 = vcombine.low %v3566_v12, %v3573_v20 }
 0x23a   : > { %v3535_v58 = vrot.slane %v3528_v5, %v8915_v60  ;;  %v4707_v23 = vsel %vm4482_vm3, %v3512_v10, -inf  ;;  %v3558_v49 = vrot.slane %v3551_v7, %v8915_v60  ;;  %v3597_v45 = vcombine.low %v3589_v17, %v3596_v36 }
 0x23b   : > { %v4708_v59 = vrot.slane %v4707_v23, 4  ;;  %v2132_v41 = vcombine.high %v2124_v15, %v2124_v15  ;;  %v2133_v2 = vcombine.high %v2131_v38, %v2131_v38  ;;  %v2140_v25 = vrot.slane %v2124_v15, %v8915_v60 }
 0x23c   : > { %v4714_v31 = vsel %vm4482_vm3, %v3535_v58, -inf  ;;  %v4721_v13 = vsel %vm4482_vm3, %v3558_v49, -inf  ;;  %v9395_v24 = vrot.slane %v3597_v45, %v8915_v60  ;;  %v2147_v12 = vrot.slane %v2131_v38, %v8915_v60 }
 0x23d   : > { %v4709_v11 = vmax.f32 %v4707_v23, %v4708_v59  ;;  %v4715_v21 = vrot.slane %v4714_v31, 4  ;;  %v4722_v26 = vrot.slane %v4721_v13, 4  ;;  %v2154_v9 = vrot.slane %v2132_v41, %v8915_v60 }
 0x23e   : > { %v2161_v20 = vrot.slane %v2133_v2, %v8915_v60  ;;  %v3605_v10 = vcombine.low %v2116_v8, %v2140_v25  ;;  %v10660_v5 = vrot.slane %v9073_v0, 2  ;;  %v2163_v15 = vcombine.high %v2147_v12, %v2147_v12 }
 0x23f   : > { %v4710_v51 = vrot.slane %v4709_v11, 2  ;;  %v9400_v36 = vmax.f32 %v4714_v31, %v4715_v21  ;;  %v4723_v17 = vmax.f32 %v4721_v13, %v4722_v26  ;;  %v3619_v23 = vrot.slane %v2154_v9, %v8915_v60 }
 0x240   : > { %v4550_v7 = vmax.f32 %v9073_v0, %v10660_v5  ;;  %v2165_v58 = vcombine.high %v2161_v20, %v2161_v20  ;;  %v3612_v59 = vrot.slane %v3605_v10, %v8915_v60  ;;  %v7713_v45 = vcombine.high %v2140_v25, %v2154_v9 }
 0x241   : > { %v9406_v49 = vmax.f32 %v4709_v11, %v4710_v51  ;;  %v4724_v41 = vrot.slane %v4723_v17, 2  ;;  %v3642_v31 = vrot.slane %v2147_v12, %v8915_v60  ;;  %v9411_v8 = vcombine.low %v2161_v20, %v2163_v15 }
 0x242   : > { %v9414_v2 = vrot.slane %v2165_v58, %v8915_v60  ;;  %v9416_v0 = vcombine.low %v3612_v59, %v3619_v23  ;;  %v3635_v13 = vrot.slane %v7713_v45, %v8915_v60  ;;  %v4551_v21 = vrot.slane %v4550_v7, 1 }
 0x243   : > { %v4558_v11 = vrot.slane %v9100_v3, 1  ;;  %v9420_v26 = vmax.f32 %v4723_v17, %v4724_v41  ;;  %v10661_v12 = vrot.slane %v9061_v52, %v8915_v60  ;;  %v4567_v20 = vsel %vm4482_vm3, %v9078_v54, -inf }
 0x244   : > { %v9432_v10 = vcombine.low %v3635_v13, %v3642_v31  ;;  %v4552_v5 = vmax.f32 %v4550_v7, %v4551_v21  ;;  %v4568_v58 = vrot.slane %v4567_v20, 4  ;;  %v10662_v23 = vrot.slane %v9091_v50, %v8915_v60 }
 0x245   : > { %v4560_v9 = vsel %vm4482_vm3, %v10661_v12, -inf  ;;  %v4559_v17 = vmax.f32 %v9100_v3, %v4558_v11  ;;  %v10663_v59 = vrot.slane %v9102_v63, %v8915_v60  ;;  %v10664_v31 = vrot.slane %v9343_v28, %v8915_v60  ;;  %v9452_v63 = vld [vmem:[%s10593_s4] ss:$0 sm:$0xff] }
 0x246   : > { %v4561_v15 = vrot.slane %v4560_v9, 4  ;;  %v4574_v52 = vsel %vm4482_vm3, %v10662_v23, -inf  ;;  %v5079_v3 = vsel %vm5065_vm14, %v4552_v5, %v4545_v29  ;;  %v4569_v21 = vmax.f32 %v4567_v20, %v4568_v58 }
 0x247   : > { %v4581_v54 = vsel %vm4482_vm3, %v10663_v59, -inf  ;;  %v4575_v45 = vrot.slane %v4574_v52, 4  ;;  %v4588_v7 = vsel %vm4482_vm3, %v10664_v31, -inf  ;;  %v5080_v50 = vsel %vm5067_vm15, %v4559_v17, %v5079_v3  ;;  %v9458_v31 = vpop.f32.mrf.mxu1 }
 0x248   : > { %v4582_v41 = vrot.slane %v4581_v54, 4  ;;  %v4562_v13 = vmax.f32 %v4560_v9, %v4561_v15  ;;  %v4589_v11 = vrot.slane %v4588_v7, 4  ;;  %v1237_v59 = vadd.f32 %v9452_v63, %v9080_v55 }
 0x249   : > { %v4576_v12 = vmax.f32 %v4574_v52, %v4575_v45  ;;  %v1242_v28 = vadd.f32 %v9452_v63, %v9109_v61  ;;  %v4570_v9 = vrot.slane %v4569_v21, 2  ;;  %v1247_v5 = vadd.f32 %v9452_v63, %v9136_v1  ;;  %v8125_v55 = vpop.f32.mrf.mxu1 }
 0x24a   : > { %v4583_v23 = vmax.f32 %v4581_v54, %v4582_v41  ;;  %v4563_v29 = vrot.slane %v4562_v13, 2  ;;  %v4590_v20 = vmax.f32 %v4588_v7, %v4589_v11  ;;  %v10665_v58 = vunpack.c.h.bf16 %v8632_v27 }
 0x24b   : > { %v4577_v17 = vrot.slane %v4576_v12, 2  ;;  %v10666_v54 = vunpack.c.l.bf16 %v8647_v30  ;;  %v4571_v3 = vmax.f32 %v4569_v21, %v4570_v9  ;;  %v10667_v51 = vunpack.c.h.bf16 %v8647_v30 }
 0x24c   : > { %v4584_v15 = vrot.slane %v4583_v23, 2  ;;  %v1310_v52 = vadd.f32 %v10665_v58, %v1237_v59  ;;  %v4564_v41 = vmax.f32 %v4562_v13, %v4563_v29  ;;  %v4591_v61 = vrot.slane %v4590_v20, 2 }
 0x24d   : > { %v1311_v45 = vadd.f32 %v10666_v54, %v1242_v28  ;;  %v9468_v39 = vadd.f32 %v10667_v51, %v1247_v5  ;;  %v4578_v7 = vmax.f32 %v4576_v12, %v4577_v17  ;;  %v4572_v25 = vrot.slane %v4571_v3, 1  ;;  %v9472_v51 = vpop.f32.mrf.mxu1 }
 0x24e   : > { %v4585_v11 = vmax.f32 %v4583_v23, %v4584_v15  ;;  %vm1337_vm11 = vcmp.ge.f32.partialorder %v1310_v52, 0.0  ;;  %v1365_v1 = vmul.f32 %v8911_v57, %v1310_v52  ;;  %v4565_v38 = vrot.slane %v4564_v41, 1 }
 0x24f   : > { %v4592_v27 = vmax.f32 %v4590_v20, %v4591_v61  ;;  %vm1338_vm12 = vcmp.ge.f32.partialorder %v1311_v45, 0.0  ;;  %v4579_v59 = vrot.slane %v4578_v7, 1  ;;  %v1366_v13 = vmul.f32 %v8911_v57, %v1311_v45 }
 0x250   : > { %v4586_v58 = vrot.slane %v4585_v11, 1  ;;  %v1392_v28 = vsel %vm1337_vm11, %v1310_v52, %v1365_v1  ;;  %v4566_v21 = vmax.f32 %v4564_v41, %v4565_v38  ;;  %v4573_v29 = vmax.f32 %v4571_v3, %v4572_v25  ;;  %v8128_v52 = vpop.f32.mrf.mxu1 }
 0x251   : > { %v4593_v9 = vrot.slane %v4592_v27, 1  ;;  %v2166_v30 = vcombine.high %v1392_v28, %v1392_v28  ;;  %v4580_v12 = vmax.f32 %v4578_v7, %v4579_v59  ;;  %v2173_v5 = vrot.slane %v1392_v28, %v8915_v60 }
 0x252   : > { %v4587_v23 = vmax.f32 %v4585_v11, %v4586_v58  ;;  %v1393_v17 = vsel %vm1338_vm12, %v1311_v45, %v1366_v13  ;;  %v5081_v20 = vsel %vm5069_vm2, %v4566_v21, %v5080_v50  ;;  %v9483_v1 = vpop.f32.mrf.mxu1  ;;  %vm1339_vm13 = vcmp.ge.f32.partialorder %v9468_v39, 0.0 }
 0x253   : > { %v4594_v15 = vmax.f32 %v4592_v27, %v4593_v9  ;;  %v2180_v54 = vrot.slane %v2166_v30, %v8915_v60  ;;  %v2215_v55 = vcombine.high %v1393_v17, %v1393_v17  ;;  %v5082_v61 = vsel %vm5071_vm4, %v4573_v29, %v5081_v20 }
 0x254   : > { %v2181_v38 = vcombine.high %v2173_v5, %v2173_v5  ;;  %v2189_v25 = vrot.slane %v2173_v5, %v8915_v60  ;;  %v2222_v41 = vrot.slane %v1393_v17, %v8915_v60  ;;  %v5083_v3 = vsel %vm5073_vm5, %v4580_v12, %v5082_v61  ;;  %v8131_v9 = vpop.f32.mrf.mxu1 }
 0x255   : > { %v2182_v7 = vcombine.high %v2180_v54, %v2180_v54  ;;  %v2196_v11 = vrot.slane %v2180_v54, %v8915_v60  ;;  %v2229_v45 = vrot.slane %v2215_v55, %v8915_v60  ;;  %v5084_v50 = vsel %vm5075_vm6, %v4587_v23, %v5083_v3 }
 0x256   : > { %v2203_v27 = vrot.slane %v2181_v38, %v8915_v60  ;;  %v2211_v59 = vcombine.high %v2189_v25, %v2189_v25  ;;  %v2230_v58 = vcombine.high %v2222_v41, %v2222_v41  ;;  %v5085_v28 = vsel %vm5077_vm7, %v4594_v15, %v5084_v50 }
 0x257   : > { %v2210_v13 = vrot.slane %v2182_v7, %v8915_v60  ;;  %v2231_v21 = vcombine.high %v2229_v45, %v2229_v45  ;;  %v2238_v29 = vrot.slane %v2222_v41, %v8915_v60  ;;  %8144 = vmatmul.mubr.msk.f32.gmra.mxu0 %vm639_vm1, %v5085_v28  ;;  %v2245_v23 = vrot.slane %v2229_v45, %v8915_v60 }
 0x258   : > { %v2213_v30 = vcombine.high %v2203_v27, %v2203_v27  ;;  %v3674_v12 = vcombine.low %v2189_v25, %v2203_v27  ;;  %v3688_v5 = vrot.slane %v2211_v59, %v8915_v60  ;;  %v2252_v54 = vrot.slane %v2230_v58, %v8915_v60  ;;  %8146 = vmatprep.mubr.msk.f32.mxu0 %vm8365_vm0, %v10659_v34 }
 0x259   : > { %v3711_v17 = vrot.slane %v2210_v13, %v8915_v60  ;;  %v7714_v20 = vcombine.high %v2196_v11, %v2210_v13  ;;  %v2259_v15 = vrot.slane %v2231_v21, %v8915_v60  ;;  %v2260_v61 = vcombine.high %v2238_v29, %v2238_v29 }
 0x25a   : > { %v3681_v55 = vrot.slane %v3674_v12, %v8915_v60  ;;  %v3697_v52 = vcombine.low %v2213_v30, %v2196_v11  ;;  %v2261_v38 = vcombine.high %v2245_v23, %v2245_v23  ;;  %v2262_v25 = vcombine.high %v2252_v54, %v2252_v54 }
 0x25b   : > { %v3727_v41 = vrot.slane %v7714_v20, %v8915_v60  ;;  %v3734_v3 = vrot.slane %v2238_v29, %v8915_v60  ;;  %v3766_v7 = vcombine.low %v2245_v23, %v2259_v15  ;;  %v3743_v27 = vcombine.low %v2252_v54, %v2260_v61 }
 0x25c   : > { %v3689_v45 = vcombine.low %v3681_v55, %v3688_v5  ;;  %v3704_v50 = vrot.slane %v3697_v52, %v8915_v60  ;;  %v3780_v59 = vrot.slane %v2261_v38, %v8915_v60  ;;  %v3757_v28 = vrot.slane %v2262_v25, %v8915_v60 }
 0x25d   : > { %v3735_v58 = vcombine.low %v3727_v41, %v3734_v3  ;;  %v3773_v13 = vrot.slane %v3766_v7, %v8915_v60  ;;  %v3750_v9 = vrot.slane %v3743_v27, %v8915_v60  ;;  %v1367_v29 = vmul.f32 %v8911_v57, %v9468_v39 }
 0x25e   : > { %v3696_v11 = vrot.slane %v3689_v45, %v8915_v60  ;;  %v3712_v21 = vcombine.low %v3704_v50, %v3711_v17  ;;  %v2263_v5 = vcombine.high %v2259_v15, %v2259_v15  ;;  %v3282_v23 = vrot.slane %v9217_v62, %v8915_v60 }
 0x25f   : > { %v3742_v30 = vrot.slane %v3735_v58, %v8915_v60  ;;  %v3781_v12 = vcombine.low %v3773_v13, %v3780_v59  ;;  %v9515_v55 = vcombine.low %v3750_v9, %v3757_v28  ;;  %v1394_v17 = vsel %vm1339_vm13, %v9468_v39, %v1367_v29 }
 0x260   : > { %v3719_v20 = vrot.slane %v3712_v21, %v8915_v60  ;;  %v4763_v54 = vsel %vm4482_vm3, %v3696_v11, -inf  ;;  %v2264_v25 = vcombine.high %v1394_v17, %v1394_v17  ;;  %v2271_v3 = vrot.slane %v1394_v17, %v8915_v60 }
 0x261   : > { %v4764_v52 = vrot.slane %v4763_v54, 4  ;;  %v9519_v61 = vrot.slane %v3781_v12, %v8915_v60  ;;  %v4777_v38 = vsel %vm4482_vm3, %v3742_v30, -inf  ;;  %v10668_v39 = vrot.slane %v9199_v4, %v8915_v60 }
 0x262   : > { %v4770_v15 = vsel %vm4482_vm3, %v3719_v20, -inf  ;;  %v4778_v41 = vrot.slane %v4777_v38, 4  ;;  %v2278_v50 = vrot.slane %v2264_v25, %v8915_v60  ;;  %v2279_v58 = vcombine.high %v2271_v3, %v2271_v3 }
 0x263   : > { %v4765_v7 = vmax.f32 %v4763_v54, %v4764_v52  ;;  %v4771_v45 = vrot.slane %v4770_v15, 4  ;;  %v3298_v27 = vcombine.low %v10668_v39, %v9212_v35  ;;  %v2287_v28 = vrot.slane %v2271_v3, %v8915_v60 }
 0x264   : > { %v4779_v59 = vmax.f32 %v4777_v38, %v4778_v41  ;;  %v4600_v13 = vrot.slane %v9193_v14, 1  ;;  %v2280_v9 = vcombine.high %v2278_v50, %v2278_v50  ;;  %v2294_v29 = vrot.slane %v2278_v50, %v8915_v60 }
 0x265   : > { %v4766_v11 = vrot.slane %v4765_v7, 2  ;;  %v9533_v21 = vmax.f32 %v4770_v15, %v4771_v45  ;;  %v2301_v12 = vrot.slane %v2279_v58, %v8915_v60  ;;  %v3789_v20 = vcombine.low %v2263_v5, %v2287_v28 }
 0x266   : > { %v4780_v30 = vrot.slane %v4779_v59, 2  ;;  %v3305_v54 = vrot.slane %v3298_v27, %v8915_v60  ;;  %v2308_v17 = vrot.slane %v2280_v9, %v8915_v60  ;;  %v2310_v52 = vcombine.high %v2294_v29, %v2294_v29 }
 0x267   : > { %v9538_v4 = vmax.f32 %v4765_v7, %v4766_v11  ;;  %v3796_v25 = vrot.slane %v3789_v20, %v8915_v60  ;;  %v3803_v15 = vrot.slane %v2301_v12, %v8915_v60  ;;  %v7715_v41 = vcombine.high %v2287_v28, %v2301_v12 }
 0x268   : > { %v9542_v38 = vmax.f32 %v4779_v59, %v4780_v30  ;;  %v2312_v3 = vcombine.high %v2308_v17, %v2308_v17  ;;  %v3826_v45 = vrot.slane %v2294_v29, %v8915_v60  ;;  %v9547_v5 = vcombine.low %v2308_v17, %v2310_v52 }
 0x269   : > { %v4601_v7 = vmax.f32 %v9193_v14, %v4600_v13  ;;  %v9550_v50 = vcombine.low %v3796_v25, %v3803_v15  ;;  %v3819_v39 = vrot.slane %v7715_v41, %v8915_v60  ;;  %v10669_v27 = vrot.slane %v9183_v40, 2 }
 0x26a   : > { %v4614_v58 = vrot.slane %v9201_v37, 1  ;;  %v9560_v11 = vrot.slane %v2312_v3, %v8915_v60  ;;  %v10670_v9 = vrot.slane %v9170_v18, %v8915_v60  ;;  %v4623_v13 = vsel %vm4482_vm3, %v9179_v22, -inf }
 0x26b   : > { %v4606_v59 = vmax.f32 %v9183_v40, %v10669_v27  ;;  %v9570_v40 = vcombine.low %v3819_v39, %v3826_v45  ;;  %v4624_v17 = vrot.slane %v4623_v13, 4  ;;  %v10671_v52 = vrot.slane %v9196_v53, %v8915_v60  ;;  %v10672_v53 = vld [vmem:[#allocation10_spill] sm:$0xff] }
 0x26c   : > { %v4616_v14 = vsel %vm4482_vm3, %v10670_v9, -inf  ;;  %v4615_v12 = vmax.f32 %v9201_v37, %v4614_v58  ;;  %v4637_v25 = vsel %vm4482_vm3, %v3282_v23, -inf  ;;  %v4644_v3 = vsel %vm4482_vm3, %v3305_v54, -inf }
 0x26d   : > { %v4607_v30 = vrot.slane %v4606_v59, 1  ;;  %v4617_v20 = vrot.slane %v4616_v14, 4  ;;  %v4630_v18 = vsel %vm4482_vm3, %v10671_v52, -inf  ;;  %v4638_v22 = vrot.slane %v4637_v25, 4 }
 0x26e   : > { %v4631_v41 = vrot.slane %v4630_v18, 4  ;;  %v4625_v45 = vmax.f32 %v4623_v13, %v4624_v17  ;;  %v4645_v39 = vrot.slane %v4644_v3, 4  ;;  %v1252_v37 = vadd.f32 %v9452_v63, %v9159_v56 }
 0x26f   : > { %v4608_v15 = vmax.f32 %v4606_v59, %v4607_v30  ;;  %v4618_v27 = vmax.f32 %v4616_v14, %v4617_v20  ;;  %v4639_v9 = vmax.f32 %v4637_v25, %v4638_v22  ;;  %v1257_v52 = vadd.f32 %v9452_v63, %v10672_v53  ;;  %v10673_v14 = vld [vmem:[#allocation5_spill] sm:$0xff] }
 0x270   : > { %v4632_v58 = vmax.f32 %v4630_v18, %v4631_v41  ;;  %v4626_v23 = vrot.slane %v4625_v45, 2  ;;  %v4646_v59 = vmax.f32 %v4644_v3, %v4645_v39  ;;  %v10674_v13 = vunpack.c.l.bf16 %v10673_v14 }
 0x271   : > { %v5086_v29 = vsel %vm5065_vm14, %v4608_v15, %v4601_v7  ;;  %v4619_v62 = vrot.slane %v4618_v27, 2  ;;  %v4640_v54 = vrot.slane %v4639_v9, 2  ;;  %v10675_v17 = vunpack.c.h.bf16 %v10673_v14  ;;  %v10676_v7 = vld [vmem:[#allocation11_spill] sm:$0xff] }
 0x272   : > { %v5087_v30 = vsel %vm5067_vm15, %v4615_v12, %v5086_v29  ;;  %v4633_v35 = vrot.slane %v4632_v58, 2  ;;  %v1313_v20 = vadd.f32 %v10674_v13, %v1252_v37  ;;  %v4627_v25 = vmax.f32 %v4625_v45, %v4626_v23 }
 0x273   : > { %v1314_v56 = vadd.f32 %v10675_v17, %v1257_v52  ;;  %v4620_v18 = vmax.f32 %v4618_v27, %v4619_v62  ;;  %v4647_v41 = vrot.slane %v4646_v59, 2  ;;  %v9591_v15 = vadd.f32 %v9452_v63, %v10676_v7 }
 0x274   : > { %v4634_v22 = vmax.f32 %v4632_v58, %v4633_v35  ;;  %v4641_v53 = vmax.f32 %v4639_v9, %v4640_v54  ;;  %vm1340_vm8 = vcmp.ge.f32.partialorder %v1313_v20, 0.0  ;;  %v1368_v29 = vmul.f32 %v8911_v57, %v1313_v20 }
 0x275   : > { %v4621_v12 = vrot.slane %v4620_v18, 1  ;;  %v4628_v3 = vrot.slane %v4627_v25, 1  ;;  %v4648_v39 = vmax.f32 %v4646_v59, %v4647_v41  ;;  %vm1341_vm9 = vcmp.ge.f32.partialorder %v1314_v56, 0.0 }
 0x276   : > { %v4635_v37 = vrot.slane %v4634_v22, 1  ;;  %v4642_v13 = vrot.slane %v4641_v53, 1  ;;  %v1395_v14 = vsel %vm1340_vm8, %v1313_v20, %v1368_v29  ;;  %v1369_v62 = vmul.f32 %v8911_v57, %v1314_v56 }
 0x277   : > { %v4622_v27 = vmax.f32 %v4620_v18, %v4621_v12  ;;  %v4629_v45 = vmax.f32 %v4627_v25, %v4628_v3  ;;  %v4649_v52 = vrot.slane %v4648_v39, 1  ;;  %v2313_v23 = vcombine.high %v1395_v14, %v1395_v14 }
 0x278   : > { %v4636_v17 = vmax.f32 %v4634_v22, %v4635_v37  ;;  %v4643_v7 = vmax.f32 %v4641_v53, %v4642_v13  ;;  %v2320_v35 = vrot.slane %v1395_v14, %v8915_v60  ;;  %v1396_v58 = vsel %vm1341_vm9, %v1314_v56, %v1369_v62 }
 0x279   : > { %v4650_v9 = vmax.f32 %v4648_v39, %v4649_v52  ;;  %v5088_v54 = vsel %vm5069_vm2, %v4622_v27, %v5087_v30  ;;  %v2327_v59 = vrot.slane %v2313_v23, %v8915_v60  ;;  %v2362_v41 = vcombine.high %v1396_v58, %v1396_v58 }
 0x27a   : > { %v5089_v28 = vsel %vm5071_vm4, %v4629_v45, %v5088_v54  ;;  %v2328_v20 = vcombine.high %v2320_v35, %v2320_v35  ;;  %v2336_v29 = vrot.slane %v2320_v35, %v8915_v60  ;;  %v2369_v18 = vrot.slane %v1396_v58, %v8915_v60 }
 0x27b   : > { %v5090_v25 = vsel %vm5073_vm5, %v4636_v17, %v5089_v28  ;;  %v2329_v22 = vcombine.high %v2327_v59, %v2327_v59  ;;  %v2343_v53 = vrot.slane %v2327_v59, %v8915_v60  ;;  %v2376_v56 = vrot.slane %v2362_v41, %v8915_v60 }
 0x27c   : > { %v5091_v12 = vsel %vm5075_vm6, %v4643_v7, %v5090_v25  ;;  %v2350_v30 = vrot.slane %v2328_v20, %v8915_v60  ;;  %v2358_v3 = vcombine.high %v2336_v29, %v2336_v29  ;;  %v2377_v39 = vcombine.high %v2369_v18, %v2369_v18 }
 0x27d   : > { %v5092_v37 = vsel %vm5077_vm7, %v4650_v9, %v5091_v12  ;;  %v2357_v13 = vrot.slane %v2329_v22, %v8915_v60  ;;  %v2378_v14 = vcombine.high %v2376_v56, %v2376_v56  ;;  %v2385_v62 = vrot.slane %v2369_v18, %v8915_v60 }
 0x27e   : > { %8147 = vmatmul.mubr.msk.f32.gmra.mxu0 %vm639_vm1, %v5092_v37  ;;  %v2360_v28 = vcombine.high %v2350_v30, %v2350_v30  ;;  %v3858_v27 = vcombine.low %v2336_v29, %v2350_v30  ;;  %v3872_v45 = vrot.slane %v2358_v3, %v8915_v60  ;;  %v2392_v52 = vrot.slane %v2376_v56, %v8915_v60 }
 0x27f   : > { %v3895_v23 = vrot.slane %v2357_v13, %v8915_v60  ;;  %v7716_v17 = vcombine.high %v2343_v53, %v2357_v13  ;;  %v2399_v7 = vrot.slane %v2377_v39, %v8915_v60  ;;  %v2406_v35 = vrot.slane %v2378_v14, %v8915_v60  ;;  %8149 = vmatprep.mubr.msk.f32.mxu0 %vm8365_vm0, %v10659_v34 }
 0x280   : > { %v3865_v58 = vrot.slane %v3858_v27, %v8915_v60  ;;  %v3881_v9 = vcombine.low %v2360_v28, %v2343_v53  ;;  %v2407_v54 = vcombine.high %v2385_v62, %v2385_v62  ;;  %v2408_v59 = vcombine.high %v2392_v52, %v2392_v52  ;;  %v10677_v53 = vld [vmem:[#allocation6_spill] sm:$0xff] }
 0x281   : > { %v2409_v41 = vcombine.high %v2399_v7, %v2399_v7  ;;  %v3911_v20 = vrot.slane %v7716_v17, %v8915_v60  ;;  %v3918_v29 = vrot.slane %v2385_v62, %v8915_v60  ;;  %v3950_v18 = vcombine.low %v2392_v52, %v2406_v35 }
 0x282   : > { %v3873_v25 = vcombine.low %v3865_v58, %v3872_v45  ;;  %v3888_v22 = vrot.slane %v3881_v9, %v8915_v60  ;;  %v3927_v56 = vcombine.low %v2399_v7, %v2407_v54  ;;  %v3964_v12 = vrot.slane %v2408_v59, %v8915_v60 }
 0x283   : > { %v3919_v30 = vcombine.low %v3911_v20, %v3918_v29  ;;  %v3941_v3 = vrot.slane %v2409_v41, %v8915_v60  ;;  %v3957_v39 = vrot.slane %v3950_v18, %v8915_v60  ;;  %v10678_v37 = vunpack.c.l.bf16 %v10677_v53 }
 0x284   : > { %v3880_v14 = vrot.slane %v3873_v25, %v8915_v60  ;;  %v3896_v28 = vcombine.low %v3888_v22, %v3895_v23  ;;  %v3934_v62 = vrot.slane %v3927_v56, %v8915_v60  ;;  %v2410_v27 = vcombine.high %v2406_v35, %v2406_v35 }
 0x285   : > { %v1315_v13 = vadd.f32 %v10678_v37, %v9591_v15  ;;  %v3926_v45 = vrot.slane %v3919_v30, %v8915_v60  ;;  %v3965_v52 = vcombine.low %v3957_v39, %v3964_v12  ;;  %v3466_v15 = vrot.slane %v9303_v48, %v8915_v60 }
 0x286   : > { %v3903_v7 = vrot.slane %v3896_v28, %v8915_v60  ;;  %v4819_v58 = vsel %vm4482_vm3, %v3880_v14, -inf  ;;  %v9633_v9 = vcombine.low %v3934_v62, %v3941_v3  ;;  %v10679_v48 = vrot.slane %v9283_v44, %v8915_v60 }
 0x287   : > { %vm1342_vm10 = vcmp.ge.f32.partialorder %v1315_v13, 0.0  ;;  %v1370_v17 = vmul.f32 %v8911_v57, %v1315_v13  ;;  %v4820_v54 = vrot.slane %v4819_v58, 4  ;;  %v9638_v23 = vrot.slane %v3965_v52, %v8915_v60 }
 0x288   : > { %v4833_v35 = vsel %vm4482_vm3, %v3926_v45, -inf  ;;  %v4826_v41 = vsel %vm4482_vm3, %v3903_v7, -inf  ;;  %v3482_v12 = vcombine.low %v10679_v48, %v9290_v33  ;;  %v4656_v39 = vrot.slane %v9274_v42, 1 }
 0x289   : > { %v1397_v59 = vsel %vm1342_vm10, %v1315_v13, %v1370_v17  ;;  %v4834_v29 = vrot.slane %v4833_v35, 4  ;;  %v4821_v25 = vmax.f32 %v4819_v58, %v4820_v54  ;;  %v4827_v22 = vrot.slane %v4826_v41, 4 }
 0x28a   : > { %v2411_v18 = vcombine.high %v1397_v59, %v1397_v59  ;;  %v2418_v56 = vrot.slane %v1397_v59, %v8915_v60  ;;  %v10680_v37 = vrot.slane %v9268_v6, 2  ;;  %v3489_v33 = vrot.slane %v3482_v12, %v8915_v60 }
 0x28b   : > { %v4835_v30 = vmax.f32 %v4833_v35, %v4834_v29  ;;  %v4822_v14 = vrot.slane %v4821_v25, 2  ;;  %v9654_v28 = vmax.f32 %v4826_v41, %v4827_v22 }
 0x28c   : > { %v2425_v3 = vrot.slane %v2411_v18, %v8915_v60  ;;  %v4662_v13 = vmax.f32 %v9268_v6, %v10680_v37  ;;  %v2426_v62 = vcombine.high %v2418_v56, %v2418_v56  ;;  %v2434_v45 = vrot.slane %v2418_v56, %v8915_v60 }
 0x28d   : > { %v4836_v52 = vrot.slane %v4835_v30, 2  ;;  %v9659_v7 = vmax.f32 %v4821_v25, %v4822_v14  ;;  %v4829_v58 = vrot.slane %v9654_v28, 2  ;;  %v4657_v25 = vmax.f32 %v9274_v42, %v4656_v39 }
 0x28e   : > { %v2427_v17 = vcombine.high %v2425_v3, %v2425_v3  ;;  %v2441_v44 = vrot.slane %v2425_v3, %v8915_v60  ;;  %v2448_v54 = vrot.slane %v2426_v62, %v8915_v60  ;;  %v3973_v35 = vcombine.low %v2410_v27, %v2434_v45 }
 0x28f   : > { %v9663_v6 = vmax.f32 %v4835_v30, %v4836_v52  ;;  %v4663_v3 = vrot.slane %v4662_v13, 1  ;;  %v4670_v27 = vrot.slane %v9301_v46, 1  ;;  %v10681_v14 = vrot.slane %v9262_v16, %v8915_v60 }
 0x290   : > { %v2455_v59 = vrot.slane %v2427_v17, %v8915_v60  ;;  %v2457_v41 = vcombine.high %v2441_v44, %v2441_v44  ;;  %v4010_v29 = vrot.slane %v2441_v44, %v8915_v60  ;;  %v3980_v18 = vrot.slane %v3973_v35, %v8915_v60 }
 0x291   : > { %v3987_v22 = vrot.slane %v2448_v54, %v8915_v60  ;;  %v7717_v56 = vcombine.high %v2434_v45, %v2448_v54  ;;  %v4672_v62 = vsel %vm4482_vm3, %v10681_v14, -inf  ;;  %v4679_v45 = vsel %vm4482_vm3, %v9278_v19, -inf }
 0x292   : > { %v2459_v48 = vcombine.high %v2455_v59, %v2455_v59  ;;  %v9670_v12 = vcombine.low %v2455_v59, %v2457_v41  ;;  %v4664_v52 = vmax.f32 %v4662_v13, %v4663_v3  ;;  %v4671_v17 = vmax.f32 %v9301_v46, %v4670_v27  ;;  %v10682_v59 = vld [vmem:[#allocation12_spill] sm:$0xff] }
 0x293   : > { %v9673_v30 = vcombine.low %v3980_v18, %v3987_v22  ;;  %v4003_v37 = vrot.slane %v7717_v56, %v8915_v60  ;;  %v4673_v16 = vrot.slane %v4672_v62, 4  ;;  %v4680_v35 = vrot.slane %v4679_v45, 4 }
 0x294   : > { %v4026_v42 = vrot.slane %v9670_v12, %v8915_v60  ;;  %v9685_v39 = vrot.slane %v2459_v48, %v8915_v60  ;;  %v10683_v41 = vrot.slane %v10682_v59, %v8915_v60  ;;  %v4693_v18 = vsel %vm4482_vm3, %v3466_v15, -inf }
 0x295   : > { %v9690_v54 = vcombine.low %v4003_v37, %v4010_v29  ;;  %v4700_v22 = vsel %vm4482_vm3, %v3489_v33, -inf  ;;  %v5093_v13 = vsel %vm5065_vm14, %v4664_v52, %v4657_v25  ;;  %v4674_v56 = vmax.f32 %v4672_v62, %v4673_v16  ;;  %v10684_v37 = vld [vmem:[#allocation13_spill] sm:$0xff]  ;;  %v5314_v33 = vld [vmem:[%s10596_s7 + $0x38] sm:$0xff]  ;;  %v5313_v25 = vld [vmem:[%s10596_s7 + $0x30] sm:$0xff] }
 0x296   : > { %v4686_v19 = vsel %vm4482_vm3, %v10683_v41, -inf  ;;  %v4681_v46 = vmax.f32 %v4679_v45, %v4680_v35  ;;  %v4694_v3 = vrot.slane %v4693_v18, 4  ;;  %v4701_v27 = vrot.slane %v4700_v22, 4  ;;  %8168 = vmatpush3.msra.mxu1 %v5314_v33 }
 0x297   : > { %v4687_v48 = vrot.slane %v4686_v19, 4  ;;  %v5094_v29 = vsel %vm5067_vm15, %v4671_v17, %v5093_v13  ;;  %v1267_v14 = vadd.f32 %v9452_v63, %v10684_v37  ;;  %v1272_v59 = vadd.f32 %v9452_v63, %v9345_v32  ;;  %v10686_v17 = vld [vmem:[#allocation7_spill] sm:$0xff]  ;;  %8169 = vmatprep.subr.mxu1 %v10659_v34 }
 0x298   : > { %v4675_v41 = vrot.slane %v4674_v56, 2  ;;  %v4682_v44 = vrot.slane %v4681_v46, 2  ;;  %v4695_v20 = vmax.f32 %v4693_v18, %v4694_v3  ;;  %v4702_v62 = vmax.f32 %v4700_v22, %v4701_v27  ;;  %v5312_v22 = vld [vmem:[%s10596_s7 + $0x28] sm:$0xff]  ;;  %8170 = vmatpush3.msra.mxu1 %v5313_v25 }
 0x299   : > { %v4688_v15 = vmax.f32 %v4686_v19, %v4687_v48  ;;  %v10685_v45 = vunpack.c.h.bf16 %v10677_v53  ;;  %v10687_v16 = vunpack.c.l.bf16 %v10686_v17  ;;  %v1277_v32 = vadd.f32 %v9452_v63, %v9356_v43  ;;  %8171 = vmatprep.subr.mxu1 %v10659_v34 }
 0x29a   : > { %v4676_v19 = vmax.f32 %v4674_v56, %v4675_v41  ;;  %v4683_v18 = vmax.f32 %v4681_v46, %v4682_v44  ;;  %v4696_v48 = vrot.slane %v4695_v20, 2  ;;  %v4703_v3 = vrot.slane %v4702_v62, 2  ;;  %v5311_v44 = vld [vmem:[%s10596_s7 + $0x20] sm:$0xff]  ;;  %8172 = vmatpush3.msra.mxu1 %v5312_v22  ;;  %v5309_v22 = vld [vmem:[%s10596_s7 + $0x10] sm:$0xff] }
 0x29b   : > { %v1316_v52 = vadd.f32 %v10685_v45, %v1267_v14  ;;  %v1317_v35 = vadd.f32 %v10687_v16, %v1272_v59  ;;  %v4689_v13 = vrot.slane %v4688_v15, 2  ;;  %v10688_v41 = vunpack.c.h.bf16 %v10686_v17  ;;  %8173 = vmatprep.subr.mxu1 %v10659_v34 }
 0x29c   : > { %v4677_v27 = vrot.slane %v4676_v19, 1  ;;  %v4684_v37 = vrot.slane %v4683_v18, 1  ;;  %v4697_v14 = vmax.f32 %v4695_v20, %v4696_v48  ;;  %v4704_v56 = vmax.f32 %v4702_v62, %v4703_v3  ;;  %v5310_v20 = vld [vmem:[%s10596_s7 + $0x18] sm:$0xff]  ;;  %8174 = vmatpush3.msra.mxu1 %v5311_v44 }
 0x29d   : > { %vm1343_vm11 = vcmp.ge.f32.partialorder %v1316_v52, 0.0  ;;  %v1371_v53 = vmul.f32 %v8911_v57, %v1316_v52  ;;  %vm1344_vm12 = vcmp.ge.f32.partialorder %v1317_v35, 0.0  ;;  %v4690_v43 = vmax.f32 %v4688_v15, %v4689_v13  ;;  %8175 = vmatprep.subr.mxu1 %v10659_v34 }
 0x29e   : > { %v1372_v59 = vmul.f32 %v8911_v57, %v1317_v35  ;;  %v9728_v33 = vadd.f32 %v10688_v41, %v1277_v32  ;;  %v4678_v25 = vmax.f32 %v4676_v19, %v4677_v27  ;;  %v4685_v45 = vmax.f32 %v4683_v18, %v4684_v37  ;;  %8176 = vmatpush3.msra.mxu1 %v5310_v20 }
 0x29f   : > { %v1398_v46 = vsel %vm1343_vm11, %v1316_v52, %v1371_v53  ;;  %v4691_v16 = vrot.slane %v4690_v43, 1  ;;  %v4698_v15 = vrot.slane %v4697_v14, 1  ;;  %v4705_v13 = vrot.slane %v4704_v56, 1  ;;  %8177 = vmatprep.subr.mxu1 %v10659_v34 }
 0x2a0   : > { %v2460_v62 = vcombine.high %v1398_v46, %v1398_v46  ;;  %v2467_v52 = vrot.slane %v1398_v46, %v8915_v60  ;;  %v1399_v48 = vsel %vm1344_vm12, %v1317_v35, %v1372_v59  ;;  %v5095_v19 = vsel %vm5069_vm2, %v4678_v25, %v5094_v29  ;;  %8178 = vmatpush3.msra.mxu1 %v5309_v22 }
 0x2a1   : > { %v4692_v17 = vmax.f32 %v4690_v43, %v4691_v16  ;;  %v4699_v32 = vmax.f32 %v4697_v14, %v4698_v15  ;;  %v2509_v18 = vcombine.high %v1399_v48, %v1399_v48  ;;  %v4706_v3 = vmax.f32 %v4704_v56, %v4705_v13  ;;  %8179 = vmatprep.subr.mxu1 %v10659_v34  ;;  %v5308_v15 = vld [vmem:[%s10596_s7 + $0x8] sm:$0xff] }
 0x2a2   : > { %v5096_v53 = vsel %vm5071_vm4, %v4685_v45, %v5095_v19  ;;  %v2474_v27 = vrot.slane %v2460_v62, %v8915_v60  ;;  %v2475_v37 = vcombine.high %v2467_v52, %v2467_v52  ;;  %v2483_v43 = vrot.slane %v2467_v52, %v8915_v60  ;;  %8180 = vmatpush3.msra.mxu1 %v5308_v15 }
 0x2a3   : > { %v5097_v35 = vsel %vm5073_vm5, %v4692_v17, %v5096_v53  ;;  %v2516_v29 = vrot.slane %v1399_v48, %v8915_v60  ;;  %v2523_v14 = vrot.slane %v2509_v18, %v8915_v60  ;;  %v5307_v18 = vld [vmem:[%s10596_s7] sm:$0xff]  ;;  %8181 = vmatprep.subr.mxu1 %v10659_v34  ;;  %vm1345_vm13 = vcmp.ge.f32.partialorder %v9728_v33, 0.0 }
 0x2a4   : > { %v5098_v44 = vsel %vm5075_vm6, %v4699_v32, %v5097_v35  ;;  %v2476_v46 = vcombine.high %v2474_v27, %v2474_v27  ;;  %v2490_v56 = vrot.slane %v2474_v27, %v8915_v60  ;;  %v2497_v59 = vrot.slane %v2475_v37, %v8915_v60  ;;  %8182 = vmatpush3.msra.mxu1 %v5307_v18 }
 0x2a5   : > { %v5099_v41 = vsel %vm5077_vm7, %v4706_v3, %v5098_v44  ;;  %v2505_v25 = vcombine.high %v2483_v43, %v2483_v43  ;;  %v2524_v45 = vcombine.high %v2516_v29, %v2516_v29  ;;  %v2525_v16 = vcombine.high %v2523_v14, %v2523_v14  ;;  %8235 = vmatprep.subr.mxu1 %v10659_v34 }
 0x2a6   : > { %8150 = vmatmul.mubr.msk.f32.gmra.mxu0 %vm639_vm1, %v5099_v41  ;;  %v2504_v20 = vrot.slane %v2476_v46, %v8915_v60  ;;  %v2507_v13 = vcombine.high %v2497_v59, %v2497_v59  ;;  %v4042_v62 = vcombine.low %v2483_v43, %v2497_v59  ;;  %v2532_v52 = vrot.slane %v2516_v29, %v8915_v60 }
 0x2a7   : > { %v4056_v48 = vrot.slane %v2505_v25, %v8915_v60  ;;  %v2539_v17 = vrot.slane %v2523_v14, %v8915_v60  ;;  %v2546_v32 = vrot.slane %v2524_v45, %v8915_v60  ;;  %v9763_v19 = vrot.slane %v2525_v16, %v8915_v60  ;;  %8152 = vmatprep.mubr.msk.f32.mxu0 %vm8365_vm0, %v10659_v34 }
 0x2a8   : > { %v4049_v22 = vrot.slane %v4042_v62, %v8915_v60  ;;  %v4065_v3 = vcombine.low %v2507_v13, %v2490_v56  ;;  %v4079_v53 = vrot.slane %v2504_v20, %v8915_v60  ;;  %v7718_v27 = vcombine.high %v2490_v56, %v2504_v20 }
 0x2a9   : > { %v2554_v37 = vcombine.high %v2532_v52, %v2532_v52  ;;  %v2555_v35 = vcombine.high %v2539_v17, %v2539_v17  ;;  %v2556_v43 = vcombine.high %v2546_v32, %v2546_v32  ;;  %v4102_v29 = vrot.slane %v2532_v52, %v8915_v60 }
 0x2aa   : > { %v4057_v14 = vcombine.low %v4049_v22, %v4056_v48  ;;  %v4072_v44 = vrot.slane %v4065_v3, %v8915_v60  ;;  %v4095_v46 = vrot.slane %v7718_v27, %v8915_v60  ;;  %v4134_v59 = vcombine.low %v2539_v17, %v9763_v19 }
 0x2ab   : > { %v4111_v41 = vcombine.low %v2546_v32, %v2554_v37  ;;  %v4125_v25 = vrot.slane %v2556_v43, %v8915_v60  ;;  %v4148_v56 = vrot.slane %v2555_v35, %v8915_v60  ;;  %v1373_v62 = vmul.f32 %v8911_v57, %v9728_v33 }
 0x2ac   : > { %v4064_v45 = vrot.slane %v4057_v14, %v8915_v60  ;;  %v4080_v16 = vcombine.low %v4072_v44, %v4079_v53  ;;  %v4103_v15 = vcombine.low %v4095_v46, %v4102_v29  ;;  %v4141_v20 = vrot.slane %v4134_v59, %v8915_v60 }
 0x2ad   : > { %v4118_v13 = vrot.slane %v4111_v41, %v8915_v60  ;;  %v2557_v52 = vcombine.high %v9763_v19, %v9763_v19  ;;  %v3650_v48 = vrot.slane %v9432_v10, %v8915_v60  ;;  %v1400_v27 = vsel %vm1345_vm13, %v9728_v33, %v1373_v62 }
 0x2ae   : > { %v4087_v17 = vrot.slane %v4080_v16, %v8915_v60  ;;  %v4875_v32 = vsel %vm4482_vm3, %v4064_v45, -inf  ;;  %v4110_v18 = vrot.slane %v4103_v15, %v8915_v60  ;;  %v4149_v22 = vcombine.low %v4141_v20, %v4148_v56 }
 0x2af   : > { %v4876_v3 = vrot.slane %v4875_v32, 4  ;;  %v9793_v53 = vcombine.low %v4118_v13, %v4125_v25  ;;  %v10689_v19 = vrot.slane %v9411_v8, %v8915_v60  ;;  %v2558_v29 = vcombine.high %v1400_v27, %v1400_v27 }
 0x2b0   : > { %v4882_v10 = vsel %vm4482_vm3, %v4087_v17, -inf  ;;  %v9804_v35 = vrot.slane %v4149_v22, %v8915_v60  ;;  %v4889_v43 = vsel %vm4482_vm3, %v4110_v18, -inf  ;;  %v2565_v33 = vrot.slane %v1400_v27, %v8915_v60 }
 0x2b1   : > { %v3666_v37 = vcombine.low %v10689_v19, %v9414_v2  ;;  %v4877_v14 = vmax.f32 %v4875_v32, %v4876_v3  ;;  %v4883_v44 = vrot.slane %v4882_v10, 4  ;;  %v4133_v46 = vrot.slane %v9793_v53, %v8915_v60 }
 0x2b2   : > { %v4890_v59 = vrot.slane %v4889_v43, 4  ;;  %v2572_v41 = vrot.slane %v2558_v29, %v8915_v60  ;;  %v4712_v2 = vrot.slane %v9406_v49, 1  ;;  %v10690_v16 = vrot.slane %v9400_v36, 2 }
 0x2b3   : > { %v3673_v8 = vrot.slane %v3666_v37, %v8915_v60  ;;  %v4878_v25 = vrot.slane %v4877_v14, 2  ;;  %v9813_v56 = vmax.f32 %v4882_v10, %v4883_v44  ;;  %v2573_v20 = vcombine.high %v2565_v33, %v2565_v33 }
 0x2b4   : > { %v4891_v45 = vmax.f32 %v4889_v43, %v4890_v59  ;;  %v4718_v15 = vmax.f32 %v9400_v36, %v10690_v16  ;;  %v2574_v13 = vcombine.high %v2572_v41, %v2572_v41  ;;  %v2581_v62 = vrot.slane %v2565_v33, %v8915_v60 }
 0x2b5   : > { %v2588_v17 = vrot.slane %v2572_v41, %v8915_v60  ;;  %v9820_v32 = vmax.f32 %v4877_v14, %v4878_v25  ;;  %v4885_v18 = vrot.slane %v9813_v56, 2  ;;  %v4713_v3 = vmax.f32 %v9406_v49, %v4712_v2 }
 0x2b6   : > { %v4892_v22 = vrot.slane %v4891_v45, 2  ;;  %v2595_v27 = vrot.slane %v2573_v20, %v8915_v60  ;;  %v2602_v19 = vrot.slane %v2574_v13, %v8915_v60  ;;  %v4157_v10 = vcombine.low %v2557_v52, %v2581_v62 }
 0x2b7   : > { %v2604_v37 = vcombine.high %v2588_v17, %v2588_v17  ;;  %v4194_v43 = vrot.slane %v2588_v17, %v8915_v60  ;;  %v4719_v29 = vrot.slane %v4718_v15, 1  ;;  %v4726_v44 = vrot.slane %v9420_v26, 1 }
 0x2b8   : > { %v9826_v36 = vmax.f32 %v4891_v45, %v4892_v22  ;;  %v2606_v14 = vcombine.high %v2602_v19, %v2602_v19  ;;  %v4164_v59 = vrot.slane %v4157_v10, %v8915_v60  ;;  %v4171_v33 = vrot.slane %v2595_v27, %v8915_v60 }
 0x2b9   : > { %v7719_v41 = vcombine.high %v2581_v62, %v2595_v27  ;;  %v9832_v49 = vcombine.low %v2602_v19, %v2604_v37  ;;  %v4720_v2 = vmax.f32 %v4718_v15, %v4719_v29  ;;  %v4727_v25 = vmax.f32 %v9420_v26, %v4726_v44 }
 0x2ba   : > { %v10691_v52 = vrot.slane %v9387_v47, %v8915_v60  ;;  %v9839_v16 = vcombine.low %v4164_v59, %v4171_v33  ;;  %v9843_v13 = vrot.slane %v2606_v14, %v8915_v60  ;;  %v4735_v15 = vsel %vm4482_vm3, %v9395_v24, -inf }
 0x2bb   : > { %v4187_v20 = vrot.slane %v7719_v41, %v8915_v60  ;;  %v4210_v62 = vrot.slane %v9832_v49, %v8915_v60  ;;  %v10692_v26 = vrot.slane %v9416_v0, %v8915_v60  ;;  %v4749_v22 = vsel %vm4482_vm3, %v3650_v48, -inf }
 0x2bc   : > { %v4728_v45 = vsel %vm4482_vm3, %v10691_v52, -inf  ;;  %v4736_v10 = vrot.slane %v4735_v15, 4  ;;  %v4750_v44 = vrot.slane %v4749_v22, 4  ;;  %v4756_v14 = vsel %vm4482_vm3, %v3673_v8, -inf }
 0x2bd   : > { %v4729_v17 = vrot.slane %v4728_v45, 4  ;;  %v4742_v47 = vsel %vm4482_vm3, %v10692_v26, -inf  ;;  %v9856_v19 = vcombine.low %v4187_v20, %v4194_v43  ;;  %v5100_v24 = vsel %vm5065_vm14, %v4720_v2, %v4713_v3 }
 0x2be   : > { %v4743_v29 = vrot.slane %v4742_v47, 4  ;;  %v4737_v33 = vmax.f32 %v4735_v15, %v4736_v10  ;;  %v4757_v0 = vrot.slane %v4756_v14, 4  ;;  %v5101_v41 = vsel %vm5067_vm15, %v4727_v25, %v5100_v24  ;;  %v10693_v15 = vld [vmem:[#allocation8_spill] sm:$0xff] }
 0x2bf   : > { %v4730_v37 = vmax.f32 %v4728_v45, %v4729_v17  ;;  %v4751_v48 = vmax.f32 %v4749_v22, %v4750_v44  ;;  %v1282_v26 = vadd.f32 %v9452_v63, %v9458_v31  ;;  %v1287_v43 = vadd.f32 %v9452_v63, %v9472_v51  ;;  %v10696_v44 = vld [vmem:[#allocation9_spill] sm:$0xff] }
 0x2c0   : > { %v4744_v52 = vmax.f32 %v4742_v47, %v4743_v29  ;;  %v4738_v20 = vrot.slane %v4737_v33, 2  ;;  %v4758_v17 = vmax.f32 %v4756_v14, %v4757_v0  ;;  %v1292_v8 = vadd.f32 %v9452_v63, %v9483_v1 }
 0x2c1   : > { %v4731_v59 = vrot.slane %v4730_v37, 2  ;;  %v4752_v2 = vrot.slane %v4751_v48, 2  ;;  %v10694_v10 = vunpack.c.l.bf16 %v10693_v15  ;;  %v10695_v25 = vunpack.c.h.bf16 %v10693_v15 }
 0x2c2   : > { %v4745_v3 = vrot.slane %v4744_v52, 2  ;;  %v4739_v29 = vmax.f32 %v4737_v33, %v4738_v20  ;;  %v4759_v31 = vrot.slane %v4758_v17, 2  ;;  %v10697_v24 = vunpack.c.l.bf16 %v10696_v44 }
 0x2c3   : > { %v4732_v45 = vmax.f32 %v4730_v37, %v4731_v59  ;;  %v1319_v27 = vadd.f32 %v10694_v10, %v1282_v26  ;;  %v1320_v47 = vadd.f32 %v10695_v25, %v1287_v43  ;;  %v4753_v14 = vmax.f32 %v4751_v48, %v4752_v2 }
 0x2c4   : > { %v9873_v51 = vadd.f32 %v1292_v8, %v10697_v24  ;;  %v4746_v37 = vmax.f32 %v4744_v52, %v4745_v3  ;;  %v4740_v59 = vrot.slane %v4739_v29, 1  ;;  %v4760_v0 = vmax.f32 %v4758_v17, %v4759_v31 }
 0x2c5   : > { %v4733_v22 = vrot.slane %v4732_v45, 1  ;;  %vm1346_vm8 = vcmp.ge.f32.partialorder %v1319_v27, 0.0  ;;  %v1374_v63 = vmul.f32 %v8911_v57, %v1319_v27  ;;  %vm1347_vm9 = vcmp.ge.f32.partialorder %v1320_v47, 0.0 }
 0x2c6   : > { %v4747_v26 = vrot.slane %v4746_v37, 1  ;;  %v4754_v10 = vrot.slane %v4753_v14, 1  ;;  %v1375_v43 = vmul.f32 %v8911_v57, %v1320_v47  ;;  %v4741_v33 = vmax.f32 %v4739_v29, %v4740_v59 }
 0x2c7   : > { %v4734_v1 = vmax.f32 %v4732_v45, %v4733_v22  ;;  %v1401_v15 = vsel %vm1346_vm8, %v1319_v27, %v1374_v63  ;;  %v4761_v20 = vrot.slane %v4760_v0, 1  ;;  %vm1348_vm10 = vcmp.ge.f32.partialorder %v9873_v51, 0.0 }
 0x2c8   : > { %v2607_v8 = vcombine.high %v1401_v15, %v1401_v15  ;;  %v4748_v44 = vmax.f32 %v4746_v37, %v4747_v26  ;;  %v4755_v52 = vmax.f32 %v4753_v14, %v4754_v10  ;;  %v2614_v48 = vrot.slane %v1401_v15, %v8915_v60 }
 0x2c9   : > { %v5102_v25 = vsel %vm5069_vm2, %v4734_v1, %v5101_v41  ;;  %v1402_v3 = vsel %vm1347_vm9, %v1320_v47, %v1375_v43  ;;  %v4762_v2 = vmax.f32 %v4760_v0, %v4761_v20  ;;  %v10704_v53 = vrot.slane %v9839_v16, %v8915_v60 }
 0x2ca   : > { %v5103_v45 = vsel %vm5071_vm4, %v4741_v33, %v5102_v25  ;;  %v2621_v17 = vrot.slane %v2607_v8, %v8915_v60  ;;  %v2656_v22 = vcombine.high %v1402_v3, %v1402_v3  ;;  %v2622_v31 = vcombine.high %v2614_v48, %v2614_v48 }
 0x2cb   : > { %v5104_v27 = vsel %vm5073_vm5, %v4748_v44, %v5103_v45  ;;  %v2630_v29 = vrot.slane %v2614_v48, %v8915_v60  ;;  %v2663_v24 = vrot.slane %v1402_v3, %v8915_v60  ;;  %vm5322_vm11 = vcmask 523264  }
 0x2cc   : > { %v5105_v41 = vsel %vm5075_vm6, %v4755_v52, %v5104_v27  ;;  %v2623_v37 = vcombine.high %v2621_v17, %v2621_v17  ;;  %v2637_v14 = vrot.slane %v2621_v17, %v8915_v60  ;;  %v2670_v47 = vrot.slane %v2656_v22, %v8915_v60 }
 0x2cd   : > { %v5106_v63 = vsel %vm5077_vm7, %v4762_v2, %v5105_v41  ;;  %v2644_v1 = vrot.slane %v2622_v31, %v8915_v60  ;;  %v2652_v59 = vcombine.high %v2630_v29, %v2630_v29  ;;  %v2671_v0 = vcombine.high %v2663_v24, %v2663_v24 }
 0x2ce   : > { %8153 = vmatmul.mubr.msk.f32.gmra.mxu0 %vm639_vm1, %v5106_v63  ;;  %v2651_v26 = vrot.slane %v2623_v37, %v8915_v60  ;;  %v2672_v10 = vcombine.high %v2670_v47, %v2670_v47  ;;  %v2679_v15 = vrot.slane %v2663_v24, %v8915_v60  ;;  %v2686_v43 = vrot.slane %v2670_v47, %v8915_v60 }
 0x2cf   : > { %v2654_v33 = vcombine.high %v2644_v1, %v2644_v1  ;;  %v4226_v20 = vcombine.low %v2630_v29, %v2644_v1  ;;  %v4240_v25 = vrot.slane %v2652_v59, %v8915_v60  ;;  %v2693_v8 = vrot.slane %v2671_v0, %v8915_v60  ;;  %8155 = vmatprep.mubr.msk.f32.mxu0 %vm8365_vm0, %v10659_v34 }
 0x2d0   : > { %v4263_v44 = vrot.slane %v2651_v26, %v8915_v60  ;;  %v7720_v52 = vcombine.high %v2637_v14, %v2651_v26  ;;  %v2700_v48 = vrot.slane %v2672_v10, %v8915_v60  ;;  %v2701_v3 = vcombine.high %v2679_v15, %v2679_v15 }
 0x2d1   : > { %v4233_v2 = vrot.slane %v4226_v20, %v8915_v60  ;;  %v4249_v45 = vcombine.low %v2654_v33, %v2637_v14  ;;  %v2702_v17 = vcombine.high %v2686_v43, %v2686_v43  ;;  %v2703_v22 = vcombine.high %v2693_v8, %v2693_v8 }
 0x2d2   : > { %v4279_v27 = vrot.slane %v7720_v52, %v8915_v60  ;;  %v4286_v31 = vrot.slane %v2679_v15, %v8915_v60  ;;  %v4295_v29 = vcombine.low %v2693_v8, %v2701_v3  ;;  %v4318_v24 = vcombine.low %v2686_v43, %v2700_v48 }
 0x2d3   : > { %v4241_v41 = vcombine.low %v4233_v2, %v4240_v25  ;;  %v4256_v37 = vrot.slane %v4249_v45, %v8915_v60  ;;  %v4309_v47 = vrot.slane %v2703_v22, %v8915_v60  ;;  %v4332_v63 = vrot.slane %v2702_v17, %v8915_v60 }
 0x2d4   : > { %v4287_v1 = vcombine.low %v4279_v27, %v4286_v31  ;;  %v4302_v59 = vrot.slane %v4295_v29, %v8915_v60  ;;  %v4325_v14 = vrot.slane %v4318_v24, %v8915_v60  ;;  %v1376_v10 = vmul.f32 %v8911_v57, %v9873_v51 }
 0x2d5   : > { %v4248_v0 = vrot.slane %v4241_v41, %v8915_v60  ;;  %v4264_v26 = vcombine.low %v4256_v37, %v4263_v44  ;;  %v2704_v15 = vcombine.high %v2700_v48, %v2700_v48  ;;  %v3834_v25 = vrot.slane %v9570_v40, %v8915_v60 }
 0x2d6   : > { %v4294_v43 = vrot.slane %v4287_v1, %v8915_v60  ;;  %v9912_v33 = vcombine.low %v4302_v59, %v4309_v47  ;;  %v4333_v20 = vcombine.low %v4325_v14, %v4332_v63  ;;  %v1403_v3 = vsel %vm1348_vm10, %v9873_v51, %v1376_v10 }
 0x2d7   : > { %v4271_v8 = vrot.slane %v4264_v26, %v8915_v60  ;;  %v4931_v52 = vsel %vm4482_vm3, %v4248_v0, -inf  ;;  %v10698_v44 = vrot.slane %v9547_v5, %v8915_v60  ;;  %v2705_v27 = vcombine.high %v1403_v3, %v1403_v3 }
 0x2d8   : > { %v4932_v48 = vrot.slane %v4931_v52, 4  ;;  %v4317_v2 = vrot.slane %v9912_v33, %v8915_v60  ;;  %v9926_v45 = vrot.slane %v4333_v20, %v8915_v60  ;;  %v4945_v40 = vsel %vm4482_vm3, %v4294_v43, -inf }
 0x2d9   : > { %v3850_v57 = vcombine.low %v10698_v44, %v9560_v11  ;;  %v4938_v17 = vsel %vm4482_vm3, %v4271_v8, -inf  ;;  %v4946_v22 = vrot.slane %v4945_v40, 4  ;;  %v2712_v51 = vrot.slane %v1403_v3, %v8915_v60 }
 0x2da   : > { %v4933_v31 = vmax.f32 %v4931_v52, %v4932_v48  ;;  %v4939_v29 = vrot.slane %v4938_v17, 4  ;;  %v4768_v11 = vrot.slane %v9538_v4, 1  ;;  %v2719_v41 = vrot.slane %v2705_v27, %v8915_v60 }
 0x2db   : > { %v3857_v5 = vrot.slane %v3850_v57, %v8915_v60  ;;  %v4947_v24 = vmax.f32 %v4945_v40, %v4946_v22  ;;  %v2720_v37 = vcombine.high %v2712_v51, %v2712_v51  ;;  %v2728_v47 = vrot.slane %v2712_v51, %v8915_v60 }
 0x2dc   : > { %v4934_v63 = vrot.slane %v4933_v31, 2  ;;  %v9935_v1 = vmax.f32 %v4938_v17, %v4939_v29  ;;  %v4769_v59 = vmax.f32 %v9538_v4, %v4768_v11  ;;  %v10699_v14 = vrot.slane %v9533_v21, 2 }
 0x2dd   : > { %v4948_v26 = vrot.slane %v4947_v24, 2  ;;  %v2721_v10 = vcombine.high %v2719_v41, %v2719_v41  ;;  %v2735_v43 = vrot.slane %v2719_v41, %v8915_v60  ;;  %v2742_v20 = vrot.slane %v2720_v37, %v8915_v60 }
 0x2de   : > { %v4774_v0 = vmax.f32 %v9533_v21, %v10699_v14  ;;  %v9943_v8 = vmax.f32 %v4933_v31, %v4934_v63  ;;  %v4941_v52 = vrot.slane %v9935_v1, 2  ;;  %v4341_v3 = vcombine.low %v2704_v15, %v2728_v47 }
 0x2df   : > { %v9946_v57 = vmax.f32 %v4947_v24, %v4948_v26  ;;  %v2749_v4 = vrot.slane %v2721_v10, %v8915_v60  ;;  %v2751_v48 = vcombine.high %v2735_v43, %v2735_v43  ;;  %v4355_v40 = vrot.slane %v2742_v20, %v8915_v60 }
 0x2e0   : > { %v4775_v44 = vrot.slane %v4774_v0, 1  ;;  %v4348_v21 = vrot.slane %v4341_v3, %v8915_v60  ;;  %v7721_v17 = vcombine.high %v2728_v47, %v2742_v20  ;;  %v4378_v22 = vrot.slane %v2735_v43, %v8915_v60 }
 0x2e1   : > { %v2753_v51 = vcombine.high %v2749_v4, %v2749_v4  ;;  %v9952_v31 = vcombine.low %v2749_v4, %v2751_v48  ;;  %v4782_v29 = vrot.slane %v9542_v38, 1  ;;  %v10700_v15 = vrot.slane %v9515_v55, %v8915_v60 }
 0x2e2   : > { %v4776_v27 = vmax.f32 %v4774_v0, %v4775_v44  ;;  %v9959_v24 = vcombine.low %v4348_v21, %v4355_v40  ;;  %v4371_v41 = vrot.slane %v7721_v17, %v8915_v60  ;;  %v4791_v47 = vsel %vm4482_vm3, %v9519_v61, -inf }
 0x2e3   : > { %v4784_v11 = vsel %vm4482_vm3, %v10700_v15, -inf  ;;  %v4394_v63 = vrot.slane %v9952_v31, %v8915_v60  ;;  %v9967_v14 = vrot.slane %v2753_v51, %v8915_v60  ;;  %v4783_v0 = vmax.f32 %v9542_v38, %v4782_v29 }
 0x2e4   : > { %v4785_v37 = vrot.slane %v4784_v11, 4  ;;  %v4792_v26 = vrot.slane %v4791_v47, 4  ;;  %v4363_v55 = vrot.slane %v9959_v24, %v8915_v60  ;;  %v9972_v10 = vcombine.low %v4371_v41, %v4378_v22  ;;  %v10092_v24 = vld [vmem:[%s10595_s6] ss:$0 sm:$0xff] }
 0x2e5   : > { %v10701_v20 = vrot.slane %v9550_v50, %v8915_v60  ;;  %v4805_v4 = vsel %vm4482_vm3, %v3834_v25, -inf  ;;  %v4812_v48 = vsel %vm4482_vm3, %v3857_v5, -inf  ;;  %v5107_v17 = vsel %vm5065_vm14, %v4776_v27, %v4769_v59 }
 0x2e6   : > { %v4786_v43 = vmax.f32 %v4784_v11, %v4785_v37  ;;  %v4793_v3 = vmax.f32 %v4791_v47, %v4792_v26  ;;  %v4806_v38 = vrot.slane %v4805_v4, 4  ;;  %v4813_v21 = vrot.slane %v4812_v48, 4 }
 0x2e7   : > { %v4798_v61 = vsel %vm4482_vm3, %v10701_v20, -inf  ;;  %v5108_v29 = vsel %vm5067_vm15, %v4783_v0, %v5107_v17  ;;  %v4018_v50 = vrot.slane %v9690_v54, %v8915_v60  ;;  %v4034_v25 = vcombine.low %v4026_v42, %v9685_v39 }
 0x2e8   : > { %v4799_v44 = vrot.slane %v4798_v61, 4  ;;  %v4787_v40 = vrot.slane %v4786_v43, 2  ;;  %v4794_v51 = vrot.slane %v4793_v3, 2  ;;  %v4807_v11 = vmax.f32 %v4805_v4, %v4806_v38 }
 0x2e9   : > { %v4814_v41 = vmax.f32 %v4812_v48, %v4813_v21  ;;  %v4824_v47 = vrot.slane %v9659_v7, 1  ;;  %v4830_v59 = vmax.f32 %v9654_v28, %v4829_v58  ;;  %v4041_v54 = vrot.slane %v4034_v25, %v8915_v60 }
 0x2ea   : > { %v4800_v22 = vmax.f32 %v4798_v61, %v4799_v44  ;;  %v4788_v15 = vmax.f32 %v4786_v43, %v4787_v40  ;;  %v4795_v5 = vmax.f32 %v4793_v3, %v4794_v51  ;;  %v4808_v0 = vrot.slane %v4807_v11, 2 }
 0x2eb   : > { %v4815_v26 = vrot.slane %v4814_v41, 2  ;;  %v4825_v61 = vmax.f32 %v9659_v7, %v4824_v47  ;;  %v4831_v44 = vrot.slane %v4830_v59, 1  ;;  %v4838_v3 = vrot.slane %v9663_v6, 1 }
 0x2ec   : > { %v4801_v37 = vrot.slane %v4800_v22, 2  ;;  %v4789_v27 = vrot.slane %v4788_v15, 1  ;;  %v4796_v43 = vrot.slane %v4795_v5, 1  ;;  %v4809_v42 = vmax.f32 %v4807_v11, %v4808_v0 }
 0x2ed   : > { %v4816_v39 = vmax.f32 %v4814_v41, %v4815_v26  ;;  %v4832_v40 = vmax.f32 %v4830_v59, %v4831_v44  ;;  %v10702_v28 = vrot.slane %v9633_v9, %v8915_v60  ;;  %v4839_v7 = vmax.f32 %v9663_v6, %v4838_v3 }
 0x2ee   : > { %v4802_v20 = vmax.f32 %v4800_v22, %v4801_v37  ;;  %v4790_v12 = vmax.f32 %v4788_v15, %v4789_v27  ;;  %v4797_v4 = vmax.f32 %v4795_v5, %v4796_v43  ;;  %v4810_v38 = vrot.slane %v4809_v42, 1 }
 0x2ef   : > { %v4840_v58 = vsel %vm4482_vm3, %v10702_v28, -inf  ;;  %v4817_v21 = vrot.slane %v4816_v39, 1  ;;  %v4847_v11 = vsel %vm4482_vm3, %v9638_v23, -inf  ;;  %v10703_v9 = vrot.slane %v9673_v30, %v8915_v60 }
 0x2f0   : > { %v4803_v48 = vrot.slane %v4802_v20, 1  ;;  %v5109_v17 = vsel %vm5069_vm2, %v4790_v12, %v5108_v29  ;;  %v4841_v15 = vrot.slane %v4840_v58, 4  ;;  %v4811_v41 = vmax.f32 %v4809_v42, %v4810_v38 }
 0x2f1   : > { %v5110_v22 = vsel %vm5071_vm4, %v4797_v4, %v5109_v17  ;;  %v4818_v25 = vmax.f32 %v4816_v39, %v4817_v21  ;;  %v4848_v5 = vrot.slane %v4847_v11, 4  ;;  %v4854_v37 = vsel %vm4482_vm3, %v10703_v9, -inf }
 0x2f2   : > { %v4804_v51 = vmax.f32 %v4802_v20, %v4803_v48  ;;  %v4842_v29 = vmax.f32 %v4840_v58, %v4841_v15  ;;  %v4855_v59 = vrot.slane %v4854_v37, 4  ;;  %v4861_v6 = vsel %vm4482_vm3, %v4018_v50, -inf }
 0x2f3   : > { %v4849_v0 = vmax.f32 %v4847_v11, %v4848_v5  ;;  %v4862_v26 = vrot.slane %v4861_v6, 4  ;;  %v4868_v23 = vsel %vm4482_vm3, %v4041_v54, -inf  ;;  %v5114_v39 = vsel %vm5065_vm14, %v4832_v40, %v4825_v61  ;;  %v10025_v40 = vpop.f32.mrf.mxu0 }
 0x2f4   : > { %v5111_v47 = vsel %vm5073_vm5, %v4804_v51, %v5110_v22  ;;  %v4843_v20 = vrot.slane %v4842_v29, 2  ;;  %v4856_v44 = vmax.f32 %v4854_v37, %v4855_v59  ;;  %v4869_v12 = vrot.slane %v4868_v23, 4  ;;  %5469 = vrot.lane.b32.xlu0 %v10025_v40, %s8367_s0 }
 0x2f5   : > { %v5112_v27 = vsel %vm5075_vm6, %v4811_v41, %v5111_v47  ;;  %v4850_v30 = vrot.slane %v4849_v0, 2  ;;  %v4863_v42 = vmax.f32 %v4861_v6, %v4862_v26  ;;  %v4202_v50 = vrot.slane %v9856_v19, %v8915_v60 }
 0x2f6   : > { %v5113_v43 = vsel %vm5077_vm7, %v4818_v25, %v5112_v27  ;;  %v4844_v3 = vmax.f32 %v4842_v29, %v4843_v20  ;;  %v4857_v4 = vrot.slane %v4856_v44, 2  ;;  %v4870_v54 = vmax.f32 %v4868_v23, %v4869_v12 }
 0x2f7   : > { %8156 = vmatmul.mubr.msk.f32.gmra.mxu0 %vm639_vm1, %v5113_v43  ;;  %v5115_v48 = vsel %vm5067_vm15, %v4839_v7, %v5114_v39  ;;  %v4851_v28 = vmax.f32 %v4849_v0, %v4850_v30  ;;  %v4864_v58 = vrot.slane %v4863_v42, 2  ;;  %v4218_v38 = vcombine.low %v4210_v62, %v9843_v13  ;;  %v8142_v62 = vpop.f32.mrf.mxu0 }
 0x2f8   : > { %8158 = vmatprep.mubr.msk.f32.mxu0 %vm8365_vm0, %v10659_v34  ;;  %v4880_v61 = vrot.slane %v9820_v32, 1  ;;  %v4845_v19 = vrot.slane %v4844_v3, 1  ;;  %v4858_v21 = vmax.f32 %v4856_v44, %v4857_v4  ;;  %v4871_v17 = vrot.slane %v4870_v54, 2 }
 0x2f9   : > { %v4886_v51 = vmax.f32 %v9813_v56, %v4885_v18  ;;  %v4852_v7 = vrot.slane %v4851_v28, 1  ;;  %v4865_v22 = vmax.f32 %v4863_v42, %v4864_v58  ;;  %v4225_v49 = vrot.slane %v4218_v38, %v8915_v60 }
 0x2fa   : > { %v4881_v13 = vmax.f32 %v9820_v32, %v4880_v61  ;;  %v4846_v15 = vmax.f32 %v4844_v3, %v4845_v19  ;;  %v4859_v11 = vrot.slane %v4858_v21, 1  ;;  %v4872_v41 = vmax.f32 %v4870_v54, %v4871_v17 }
 0x2fb   : > { %v4887_v25 = vrot.slane %v4886_v51, 1  ;;  %v4853_v5 = vmax.f32 %v4851_v28, %v4852_v7  ;;  %v4866_v9 = vrot.slane %v4865_v22, 1  ;;  %v4894_v37 = vrot.slane %v9826_v36, 1 }
 0x2fc   : > { %v4896_v56 = vsel %vm4482_vm3, %v4133_v46, -inf  ;;  %v4860_v18 = vmax.f32 %v4858_v21, %v4859_v11  ;;  %v4873_v47 = vrot.slane %v4872_v41, 1  ;;  %v5116_v29 = vsel %vm5069_vm2, %v4846_v15, %v5115_v48 }
 0x2fd   : > { %v4888_v59 = vmax.f32 %v4886_v51, %v4887_v25  ;;  %v4867_v32 = vmax.f32 %v4865_v22, %v4866_v9  ;;  %v5117_v6 = vsel %vm5071_vm4, %v4853_v5, %v5116_v29  ;;  %v4895_v27 = vmax.f32 %v9826_v36, %v4894_v37 }
 0x2fe   : > { %v4897_v0 = vrot.slane %v4896_v56, 4  ;;  %v4874_v26 = vmax.f32 %v4872_v41, %v4873_v47  ;;  %v5118_v23 = vsel %vm5073_vm5, %v4860_v18, %v5117_v6  ;;  %v4903_v43 = vsel %vm4482_vm3, %v9804_v35, -inf }
 0x2ff   : > { %v4910_v46 = vsel %vm4482_vm3, %v10704_v53, -inf  ;;  %v5119_v20 = vsel %vm5075_vm6, %v4867_v32, %v5118_v23  ;;  %v4904_v12 = vrot.slane %v4903_v43, 4  ;;  %v4917_v36 = vsel %vm4482_vm3, %v4202_v50, -inf }
 0x300   : > { %v4898_v44 = vmax.f32 %v4896_v56, %v4897_v0  ;;  %v4911_v30 = vrot.slane %v4910_v46, 4  ;;  %v5120_v42 = vsel %vm5077_vm7, %v4874_v26, %v5119_v20  ;;  %v4924_v39 = vsel %vm4482_vm3, %v4225_v49, -inf }
 0x301   : > { %v5121_v3 = vsel %vm5065_vm14, %v4888_v59, %v4881_v13  ;;  %8159 = vmatmul.mubr.msk.f32.gmra.mxu0 %vm639_vm1, %v5120_v42  ;;  %v4905_v4 = vmax.f32 %v4903_v43, %v4904_v12  ;;  %v4918_v54 = vrot.slane %v4917_v36, 4  ;;  %v4925_v48 = vrot.slane %v4924_v39, 4 }
 0x302   : > { %v4899_v35 = vrot.slane %v4898_v44, 2  ;;  %v4912_v16 = vmax.f32 %v4910_v46, %v4911_v30  ;;  %8161 = vmatprep.mubr.msk.f32.mxu0 %vm8365_vm0, %v10659_v34  ;;  %v5122_v28 = vsel %vm5067_vm15, %v4895_v27, %v5121_v3  ;;  %v4386_v58 = vrot.slane %v9972_v10, %v8915_v60 }
 0x303   : > { %v4402_v50 = vcombine.low %v4394_v63, %v9967_v14  ;;  %v4906_v61 = vrot.slane %v4905_v4, 2  ;;  %v4919_v21 = vmax.f32 %v4917_v36, %v4918_v54  ;;  %v4926_v17 = vmax.f32 %v4924_v39, %v4925_v48 }
 0x304   : > { %v4900_v38 = vmax.f32 %v4898_v44, %v4899_v35  ;;  %v4913_v19 = vrot.slane %v4912_v16, 2  ;;  %v4936_v7 = vrot.slane %v9943_v8, 1  ;;  %v4942_v22 = vmax.f32 %v9935_v1, %v4941_v52 }
 0x305   : > { %v4409_v51 = vrot.slane %v4402_v50, %v8915_v60  ;;  %v4907_v10 = vmax.f32 %v4905_v4, %v4906_v61  ;;  %v4920_v62 = vrot.slane %v4919_v21, 2  ;;  %v4927_v15 = vrot.slane %v4926_v17, 2 }
 0x306   : > { %v4901_v49 = vrot.slane %v4900_v38, 1  ;;  %v4914_v13 = vmax.f32 %v4912_v16, %v4913_v19  ;;  %v4937_v31 = vmax.f32 %v9943_v8, %v4936_v7  ;;  %v4943_v63 = vrot.slane %v4942_v22, 1 }
 0x307   : > { %v4950_v14 = vrot.slane %v9946_v57, 1  ;;  %v4908_v41 = vrot.slane %v4907_v10, 1  ;;  %v4921_v5 = vmax.f32 %v4919_v21, %v4920_v62  ;;  %v4928_v9 = vmax.f32 %v4926_v17, %v4927_v15 }
 0x308   : > { %v4902_v11 = vmax.f32 %v4900_v38, %v4901_v49  ;;  %v4915_v25 = vrot.slane %v4914_v13, 1  ;;  %v4944_v37 = vmax.f32 %v4942_v22, %v4943_v63  ;;  %v4952_v1 = vsel %vm4482_vm3, %v4317_v2, -inf }
 0x309   : > { %v4951_v56 = vmax.f32 %v9946_v57, %v4950_v14  ;;  %v4909_v52 = vmax.f32 %v4907_v10, %v4908_v41  ;;  %v4922_v18 = vrot.slane %v4921_v5, 1  ;;  %v4929_v29 = vrot.slane %v4928_v9, 1 }
 0x30a   : > { %v4916_v8 = vmax.f32 %v4914_v13, %v4915_v25  ;;  %v5123_v47 = vsel %vm5069_vm2, %v4902_v11, %v5122_v28  ;;  %v4953_v59 = vrot.slane %v4952_v1, 4  ;;  %v4959_v32 = vsel %vm4482_vm3, %v9926_v45, -inf }
 0x30b   : > { %v4966_v57 = vsel %vm4482_vm3, %v4363_v55, -inf  ;;  %v4923_v33 = vmax.f32 %v4921_v5, %v4922_v18  ;;  %v5124_v2 = vsel %vm5071_vm4, %v4909_v52, %v5123_v47  ;;  %v4960_v6 = vrot.slane %v4959_v32, 4 }
 0x30c   : > { %v4967_v27 = vrot.slane %v4966_v57, 4  ;;  %v4930_v0 = vmax.f32 %v4928_v9, %v4929_v29  ;;  %v5125_v26 = vsel %vm5073_vm5, %v4916_v8, %v5124_v2  ;;  %v4954_v23 = vmax.f32 %v4952_v1, %v4953_v59 }
 0x30d   : > { %v4973_v43 = vsel %vm4482_vm3, %v4386_v58, -inf  ;;  %v5126_v53 = vsel %vm5075_vm6, %v4923_v33, %v5125_v26  ;;  %v4961_v46 = vmax.f32 %v4959_v32, %v4960_v6  ;;  %v4980_v12 = vsel %vm4482_vm3, %v4409_v51, -inf }
 0x30e   : > { %v4968_v45 = vmax.f32 %v4966_v57, %v4967_v27  ;;  %v4974_v20 = vrot.slane %v4973_v43, 4  ;;  %v5127_v55 = vsel %vm5077_vm7, %v4930_v0, %v5126_v53  ;;  %v4955_v44 = vrot.slane %v4954_v23, 2 }
 0x30f   : > { %v5128_v30 = vsel %vm5065_vm14, %v4944_v37, %v4937_v31  ;;  %8162 = vmatmul.mubr.msk.f32.gmra.mxu0 %vm639_vm1, %v5127_v55  ;;  %v4962_v42 = vrot.slane %v4961_v46, 2  ;;  %v4981_v3 = vrot.slane %v4980_v12, 4  ;;  %v5270_v16 = vadd.f32 %v10092_v24, %v10025_v40 }
 0x310   : > { %v4969_v36 = vrot.slane %v4968_v45, 2  ;;  %v4975_v39 = vmax.f32 %v4973_v43, %v4974_v20  ;;  %8164 = vmatprep.mubr.msk.f32.mxu0 %vm8365_vm0, %v10659_v34  ;;  %v4956_v35 = vmax.f32 %v4954_v23, %v4955_v44  ;;  %v5129_v4 = vsel %vm5067_vm15, %v4951_v56, %v5128_v30 }
 0x311   : > { %v10104_v54 = vstv %s10076_s17  ;;  %v4963_v48 = vmax.f32 %v4961_v46, %v4962_v42  ;;  %v4982_v50 = vmax.f32 %v4980_v12, %v4981_v3  ;;  %vm5279_vm3 = vcmp.ge.f32.partialorder %v5270_v16, 0.0 }
 0x312   : > { %v4970_v28 = vmax.f32 %v4968_v45, %v4969_v36  ;;  %v4976_v58 = vrot.slane %v4975_v39, 2  ;;  %v4957_v38 = vrot.slane %v4956_v35, 1  ;;  %v5289_v61 = vmul.f32 %v10104_v54, %v5270_v16 }
 0x313   : > { %v4964_v19 = vrot.slane %v4963_v48, 1  ;;  %v4983_v51 = vrot.slane %v4982_v50, 2 }
 0x314   : > { %v4971_v21 = vrot.slane %v4970_v28, 1  ;;  %v4977_v17 = vmax.f32 %v4975_v39, %v4976_v58  ;;  %v4958_v7 = vmax.f32 %v4956_v35, %v4957_v38  ;;  %v5298_v22 = vsel %vm5279_vm3, %v5270_v16, %v5289_v61  ;;  %v6737_v39 = vld [vmem:[%s10598_s9 + $0x38] sm:$0xff] }
 0x315   : > { %v4965_v49 = vmax.f32 %v4963_v48, %v4964_v19  ;;  %v4984_v13 = vmax.f32 %v4982_v50, %v4983_v51  ;;  %8184 = vmatmul.mubr.msk.f32.vlgmr.msra.gmra.mxu1 %vm5322_vm11, %v5298_v22  ;;  %8211 = vmatpush3.msra.mxu0 %v6737_v39 }
 0x316   : > { %v4972_v10 = vmax.f32 %v4970_v28, %v4971_v21  ;;  %v4978_v40 = vrot.slane %v4977_v17, 1  ;;  %v5130_v62 = vsel %vm5069_vm2, %v4958_v7, %v5129_v4  ;;  %8186 = vmatprep.mubr.msk.f32.mxu1 %vm8365_vm0, %v10659_v34  ;;  %8212 = vmatprep.subr.mxu0 %v10659_v34  ;;  %v10167_v28 = vld [vmem:[%s10597_s8] ss:$0 sm:$0xff]  ;;  %v10173_v7 = vstv %s7723_s26  ;;  %s7750_s26 = sld [smem:[#allocation2 + $0x100]] }
 0x317   : > { %v4985_v31 = vrot.slane %v4984_v13, 1  ;;  %v5131_v63 = vsel %vm5071_vm4, %v4965_v49, %v5130_v62  ;;  %v5224_v5 = vpop.f32.mrf.mxu0 }
 0x318   : > { %v4979_v15 = vmax.f32 %v4977_v17, %v4978_v40  ;;  %v5132_v14 = vsel %vm5073_vm5, %v4972_v10, %v5131_v63  ;;  %v5271_v9 = vadd.f32 %v10092_v24, %v5224_v5  ;;  %5471 = vrot.lane.b32.xlu0 %v5224_v5, %s8367_s0 }
 0x319   : > { %v4986_v11 = vmax.f32 %v4984_v13, %v4985_v31  ;;  %v8145_v37 = vpop.f32.mrf.mxu0 }
 0x31a   : > { %v5133_v41 = vsel %vm5075_vm6, %v4979_v15, %v5132_v14  ;;  %v5290_v56 = vmul.f32 %v10104_v54, %v5271_v9  ;;  %vm5280_vm12 = vcmp.ge.f32.partialorder %v5271_v9, 0.0  ;;  %v6735_v37 = vld [vmem:[%s10598_s9 + $0x28] sm:$0xff] }
 0x31b   : > { %v5134_v25 = vsel %vm5077_vm7, %v4986_v11, %v5133_v41 }
 0x31c   : > { %8165 = vmatmul.mubr.msk.f32.gmra.mxu0 %vm639_vm1, %v5134_v25  ;;  %v5299_v1 = vsel %vm5280_vm12, %v5271_v9, %v5290_v56  ;;  %v6736_v9 = vld [vmem:[%s10598_s9 + $0x30] sm:$0xff] }
 0x31d   : > { %8226 = vmatprep.mubr.msk.f32.mxu0 %vm8365_vm0, %v10659_v34  ;;  %8187 = vmatmul.mubr.msk.f32.gmra.mxu1 %vm5322_vm11, %v5299_v1 }
 0x31e   : > { %8189 = vmatprep.mubr.msk.f32.mxu1 %vm8365_vm0, %v10659_v34  ;;  %8213 = vmatpush3.msra.mxu0 %v6736_v9 }
 0x31f   : > { %8214 = vmatprep.subr.mxu0 %v10659_v34 }
 0x320   : > { %8215 = vmatpush3.msra.mxu0 %v6735_v37 }
 0x321   : > { %8216 = vmatprep.subr.mxu0 %v10659_v34 }
 0x33e   : > { %v5229_v52 = vpop.f32.mrf.mxu0 }
 0x33f   : > { %v5272_v8 = vadd.f32 %v10092_v24, %v5229_v52  ;;  %5473 = vrot.lane.b32.xlu1 %v5229_v52, %s8367_s0  ;;  %v6734_v52 = vld [vmem:[%s10598_s9 + $0x20] sm:$0xff] }
 0x340   : > { %v8148_v18 = vpop.f32.mrf.mxu0  ;;  %8217 = vmatpush3.msra.mxu0 %v6734_v52 }
 0x341   : > { %v5291_v47 = vmul.f32 %v10104_v54, %v5272_v8  ;;  %vm5281_vm1 = vcmp.ge.f32.partialorder %v5272_v8, 0.0  ;;  %8218 = vmatprep.subr.mxu0 %v10659_v34 }
 0x343   : > { %v5300_v29 = vsel %vm5281_vm1, %v5272_v8, %v5291_v47 }
 0x344   : > { %8190 = vmatmul.mubr.msk.f32.gmra.mxu1 %vm5322_vm11, %v5300_v29  ;;  %v6733_v29 = vld [vmem:[%s10598_s9 + $0x18] sm:$0xff] }
 0x345   : > { %8192 = vmatprep.mubr.msk.f32.mxu1 %vm8365_vm0, %v10659_v34  ;;  %8219 = vmatpush3.msra.mxu0 %v6733_v29 }
 0x346   : > { %8220 = vmatprep.subr.mxu0 %v10659_v34 }
 0x366   : > { %v5234_v59 = vpop.f32.mrf.mxu0  ;;  %v5470_v19 = vpop.permute.xlu0 %5469 }
 0x367   : > { %v5273_v32 = vadd.f32 %v10092_v24, %v5234_v59  ;;  %5475 = vrot.lane.b32.xlu1 %v5234_v59, %s8367_s0 }
 0x368   : > { %v8151_v57 = vpop.f32.mrf.mxu0 }
 0x369   : > { %v5292_v33 = vmul.f32 %v10104_v54, %v5273_v32  ;;  %vm5282_vm13 = vcmp.ge.f32.partialorder %v5273_v32, 0.0  ;;  %v6732_v57 = vld [vmem:[%s10598_s9 + $0x10] sm:$0xff] }
 0x36a   : > { %8221 = vmatpush3.msra.mxu0 %v6732_v57 }
 0x36b   : > { %v5301_v2 = vsel %vm5282_vm13, %v5273_v32, %v5292_v33  ;;  %8222 = vmatprep.subr.mxu0 %v10659_v34 }
 0x36c   : > { %8193 = vmatmul.mubr.msk.f32.gmra.mxu1 %vm5322_vm11, %v5301_v2 }
 0x36d   : > { %8195 = vmatprep.mubr.msk.f32.mxu1 %vm8365_vm0, %v10659_v34 }
 0x38a   : > { %v5472_v40 = vpop.permute.xlu0 %5471 }
 0x38e   : > { %v5239_v6 = vpop.f32.mrf.mxu0 }
 0x38f   : > { %v5274_v27 = vadd.f32 %v10092_v24, %v5239_v6  ;;  %5477 = vrot.lane.b32.xlu0 %v5239_v6, %s8367_s0 }
 0x390   : > { %v8154_v0 = vpop.f32.mrf.mxu0 }
 0x391   : > { %v5293_v26 = vmul.f32 %v10104_v54, %v5274_v27  ;;  %vm5283_vm8 = vcmp.ge.f32.partialorder %v5274_v27, 0.0  ;;  %v6731_v0 = vld [vmem:[%s10598_s9 + $0x8] sm:$0xff] }
 0x392   : > { %8223 = vmatpush3.msra.mxu0 %v6731_v0 }
 0x393   : > { %v5302_v23 = vsel %vm5283_vm8, %v5274_v27, %v5293_v26  ;;  %8224 = vmatprep.subr.mxu0 %v10659_v34  ;;  %vm6559_vm8 = vcmask 518144  }
 0x394   : > { %8196 = vmatmul.mubr.msk.f32.gmra.mxu1 %vm5322_vm11, %v5302_v23 }
 0x395   : > { %8198 = vmatprep.mubr.msk.f32.mxu1 %vm8365_vm0, %v10659_v34 }
 0x3b7   : > { %v5244_v43 = vpop.f32.mrf.mxu0 }
 0x3b8   : > { %v5275_v53 = vadd.f32 %v10092_v24, %v5244_v43  ;;  %5479 = vrot.lane.b32.xlu0 %v5244_v43, %s8367_s0 }
 0x3b9   : > { %v8157_v46 = vpop.f32.mrf.mxu0 }
 0x3ba   : > { %v5294_v45 = vmul.f32 %v10104_v54, %v5275_v53  ;;  %vm5284_vm9 = vcmp.ge.f32.partialorder %v5275_v53, 0.0 }
 0x3bc   : > { %v5303_v20 = vsel %vm5284_vm9, %v5275_v53, %v5294_v45 }
 0x3bd   : > { %8199 = vmatmul.mubr.msk.f32.gmra.mxu1 %vm5322_vm11, %v5303_v20 }
 0x3be   : > { %8201 = vmatprep.mubr.msk.f32.mxu1 %vm8365_vm0, %v10659_v34 }
 0x3c1   : > { %v5249_v55 = vpop.f32.mrf.mxu0 }
 0x3c2   : > { %v5276_v44 = vadd.f32 %v10092_v24, %v5249_v55  ;;  %5481 = vrot.lane.b32.xlu1 %v5249_v55, %s8367_s0 }
 0x3c3   : > { %v8160_v12 = vpop.f32.mrf.mxu0 }
 0x3c4   : > { %v5295_v30 = vmul.f32 %v10104_v54, %v5276_v44  ;;  %vm5285_vm10 = vcmp.ge.f32.partialorder %v5276_v44, 0.0 }
 0x3c6   : > { %v5304_v42 = vsel %vm5285_vm10, %v5276_v44, %v5295_v30 }
 0x3c7   : > { %8202 = vmatmul.mubr.msk.f32.gmra.mxu1 %vm5322_vm11, %v5304_v42 }
 0x3c8   : > { %8204 = vmatprep.mubr.msk.f32.mxu1 %vm8365_vm0, %v10659_v34 }
 0x3cf   : > { %v5254_v36 = vpop.f32.mrf.mxu0 }
 0x3d0   : > { %v5277_v3 = vadd.f32 %v10092_v24, %v5254_v36  ;;  %5483 = vrot.lane.b32.xlu1 %v5254_v36, %s8367_s0 }
 0x3d1   : > { %v8163_v35 = vpop.f32.mrf.mxu0 }
 0x3d2   : > { %v5296_v4 = vmul.f32 %v10104_v54, %v5277_v3  ;;  %vm5286_vm3 = vcmp.ge.f32.partialorder %v5277_v3, 0.0 }
 0x3d4   : > { %v5305_v16 = vsel %vm5286_vm3, %v5277_v3, %v5296_v4 }
 0x3d5   : > { %8205 = vmatmul.mubr.msk.f32.gmra.mxu1 %vm5322_vm11, %v5305_v16  ;;  %v5416_v48 = vpop.f32.mrf.mxu1 }
 0x3d6   : > { %8207 = vmatprep.mubr.msk.f32.mxu1 %vm8365_vm0, %v10659_v34  ;;  %v5417_v50 = vadd.f32 %v10167_v28, %v5416_v48  ;;  %v6730_v48 = vld [vmem:[%s10598_s9] sm:$0xff] }
 0x3d7   : > { %v8185_v58 = vpop.f32.mrf.mxu1  ;;  %8225 = vmatpush3.msra.mxu0 %v6730_v48 }
 0x3d8   : > { %v5496_v17 = vadd.f32 %v5470_v19, %v5417_v50  ;;  %8260 = vmatprep.subr.mxu0 %v10659_v34 }
 0x3da   : > { %v5515_v49 = vmul.f32 %v10173_v7, %v5496_v17  ;;  %vm5505_vm1 = vcmp.ge.f32.partialorder %v5496_v17, 0.0 }
 0x3dc   : > { %v5259_v38 = vpop.f32.mrf.mxu0  ;;  %v5524_v62 = vsel %vm5505_vm1, %v5496_v17, %v5515_v49 }
 0x3dd   : > { %v5278_v61 = vadd.f32 %v10092_v24, %v5259_v38  ;;  %5485 = vrot.lane.b32.xlu0 %v5259_v38, %s8367_s0  ;;  %v5421_v10 = vpop.f32.mrf.mxu1  ;;  %v5549_v31 = vrot.slane %v5524_v62, %v8915_v60  ;;  %v5542_v14 = vcombine.high %v5524_v62, %v5524_v62  ;;  %s571_s0 = scalar_lea.vmem %s10605_s16, %s7766_s28 }
 0x3de   : > { %v8166_v21 = vpop.f32.mrf.mxu0  ;;  %v5422_v24 = vadd.f32 %v10167_v28, %v5421_v10 }
 0x3df   : > { %v5297_v51 = vmul.f32 %v10104_v54, %v5278_v61  ;;  %vm5287_vm12 = vcmp.ge.f32.partialorder %v5278_v61, 0.0  ;;  %v8188_v13 = vpop.f32.mrf.mxu1  ;;  %v5557_v11 = vcombine.high %v5549_v31, %v5549_v31  ;;  %v5556_v25 = vrot.slane %v5542_v14, %v8915_v60 }
 0x3e0   : > { %v5497_v15 = vadd.f32 %v5472_v40, %v5422_v24  ;;  %v5565_v26 = vrot.slane %v5549_v31, %v8915_v60  ;;  %v5474_v31 = vpop.permute.xlu1 %5473 }
 0x3e1   : > { %v5306_v22 = vsel %vm5287_vm12, %v5278_v61, %v5297_v51  ;;  %v5579_v56 = vrot.slane %v5557_v11, %v8915_v60  ;;  %v5558_v8 = vcombine.high %v5556_v25, %v5556_v25  ;;  %v5572_v33 = vrot.slane %v5556_v25, %v8915_v60 }
 0x3e2   : > { %8208 = vmatmul.mubr.msk.f32.gmra.mxu1 %vm5322_vm11, %v5306_v22  ;;  %vm5506_vm13 = vcmp.ge.f32.partialorder %v5497_v15, 0.0  ;;  %v5516_v54 = vmul.f32 %v10173_v7, %v5497_v15  ;;  %v5587_v44 = vcombine.high %v5565_v26, %v5565_v26 }
 0x3e3   : > { %8251 = vmatprep.mubr.msk.f32.mxu1 %vm8365_vm0, %v10659_v34  ;;  %v5589_v59 = vcombine.high %v5579_v56, %v5579_v56  ;;  %v5586_v2 = vrot.slane %v5558_v8, %v8915_v60  ;;  %v5983_v53 = vcombine.low %v5565_v26, %v5579_v56 }
 0x3e4   : > { %v5525_v63 = vsel %vm5506_vm13, %v5497_v15, %v5516_v54  ;;  %v5997_v58 = vrot.slane %v5587_v44, %v8915_v60 }
 0x3e5   : > { %v5591_v41 = vcombine.high %v5525_v63, %v5525_v63  ;;  %v5598_v5 = vrot.slane %v5525_v63, %v8915_v60  ;;  %v6006_v23 = vcombine.low %v5589_v59, %v5572_v33  ;;  %v7744_v46 = vcombine.high %v5572_v33, %v5586_v2 }
 0x3e6   : > { %v5990_v36 = vrot.slane %v5983_v53, %v8915_v60  ;;  %v6020_v39 = vrot.slane %v5586_v2, %v8915_v60 }
 0x3e7   : > { %v5605_v1 = vrot.slane %v5591_v41, %v8915_v60  ;;  %v5606_v18 = vcombine.high %v5598_v5, %v5598_v5  ;;  %v5614_v47 = vrot.slane %v5598_v5, %v8915_v60  ;;  %v6013_v12 = vrot.slane %v6006_v23, %v8915_v60 }
 0x3e8   : > { %v6036_v35 = vrot.slane %v7744_v46, %v8915_v60  ;;  %v5998_v19 = vcombine.low %v5990_v36, %v5997_v58 }
 0x3e9   : > { %v5607_v32 = vcombine.high %v5605_v1, %v5605_v1  ;;  %v5628_v6 = vrot.slane %v5606_v18, %v8915_v60  ;;  %v5636_v27 = vcombine.high %v5614_v47, %v5614_v47  ;;  %v5621_v45 = vrot.slane %v5605_v1, %v8915_v60 }
 0x3ea   : > { %v6043_v30 = vrot.slane %v5614_v47, %v8915_v60  ;;  %v6021_v50 = vcombine.low %v6013_v12, %v6020_v39  ;;  %v6005_v10 = vrot.slane %v5998_v19, %v8915_v60 }
 0x3eb   : > { %v10214_v43 = vrot.slane %v5607_v32, %v8915_v60  ;;  %v5638_v20 = vcombine.high %v5628_v6, %v5628_v6  ;;  %v6052_v55 = vcombine.low %v5628_v6, %v5636_v27  ;;  %v5637_v3 = vcombine.high %v5621_v45, %v5621_v45 }
 0x3ec   : > { %v6044_v38 = vcombine.low %v6036_v35, %v6043_v30  ;;  %v6028_v51 = vrot.slane %v6021_v50, %v8915_v60  ;;  %v6560_v63 = vsel %vm6559_vm8, %v6005_v10, -inf }
 0x3ed   : > { %v6075_v42 = vcombine.low %v5621_v45, %v10214_v43  ;;  %v6059_v4 = vrot.slane %v6052_v55, %v8915_v60  ;;  %v6066_v16 = vrot.slane %v5638_v20, %v8915_v60  ;;  %v6089_v17 = vrot.slane %v5637_v3, %v8915_v60 }
 0x3ee   : > { %v6051_v22 = vrot.slane %v6044_v38, %v8915_v60  ;;  %v6567_v40 = vsel %vm6559_vm8, %v6028_v51, -inf  ;;  %v6561_v37 = vrot.slane %v6560_v63, 4  ;;  %v5639_v33 = vcombine.high %v10214_v43, %v10214_v43 }
 0x3ef   : > { %v6082_v61 = vrot.slane %v6075_v42, %v8915_v60  ;;  %v6067_v21 = vcombine.low %v6059_v4, %v6066_v16  ;;  %v6568_v41 = vrot.slane %v6567_v40, 4 }
 0x3f0   : > { %v6574_v62 = vsel %vm6559_vm8, %v6051_v22, -inf  ;;  %v6562_v32 = vmax.f32 %v6560_v63, %v6561_v37 }
 0x3f1   : > { %v6090_v49 = vcombine.low %v6082_v61, %v6089_v17  ;;  %v6074_v24 = vrot.slane %v6067_v21, %v8915_v60  ;;  %v6575_v25 = vrot.slane %v6574_v62, 4  ;;  %v6569_v52 = vmax.f32 %v6567_v40, %v6568_v41 }
 0x3f2   : > { %v6563_v55 = vrot.slane %v6562_v32, 2 }
 0x3f3   : > { %v6097_v13 = vrot.slane %v6090_v49, %v8915_v60  ;;  %v6581_v14 = vsel %vm6559_vm8, %v6074_v24, -inf  ;;  %v6576_v8 = vmax.f32 %v6574_v62, %v6575_v25  ;;  %v6570_v0 = vrot.slane %v6569_v52, 2 }
 0x3f4   : > { %v6582_v56 = vrot.slane %v6581_v14, 4  ;;  %v6564_v58 = vmax.f32 %v6562_v32, %v6563_v55 }
 0x3f5   : > { %v6588_v9 = vsel %vm6559_vm8, %v6097_v13, -inf  ;;  %v6577_v26 = vrot.slane %v6576_v8, 2  ;;  %v6571_v36 = vmax.f32 %v6569_v52, %v6570_v0 }
 0x3f6   : > { %v6589_v18 = vrot.slane %v6588_v9, 4  ;;  %v6583_v57 = vmax.f32 %v6581_v14, %v6582_v56  ;;  %v6565_v13 = vrot.slane %v6564_v58, 1 }
 0x3f7   : > { %v6578_v39 = vmax.f32 %v6576_v8, %v6577_v26  ;;  %v6572_v51 = vrot.slane %v6571_v36, 1 }
 0x3f8   : > { %v6590_v23 = vmax.f32 %v6588_v9, %v6589_v18  ;;  %v6584_v44 = vrot.slane %v6583_v57, 2  ;;  %v6566_v37 = vmax.f32 %v6564_v58, %v6565_v13 }
 0x3f9   : > { %v6579_v49 = vrot.slane %v6578_v39, 1 }
 0x3fa   : > { %v6591_v48 = vrot.slane %v6590_v23, 2  ;;  %v6585_v61 = vmax.f32 %v6583_v57, %v6584_v44 }
 0x3fb   : > { %v6580_v41 = vmax.f32 %v6578_v39, %v6579_v49  ;;  %v6892_v39 = vld [vmem:[%s10600_s11 + $0x30] sm:$0xff] }
 0x3fc   : > { %v6592_v40 = vmax.f32 %v6590_v23, %v6591_v48  ;;  %v6889_v48 = vld [vmem:[%s10600_s11 + $0x18] sm:$0xff] }
 0x404   : > { %v5426_v15 = vpop.f32.mrf.mxu1 }
 0x405   : > { %v5427_v54 = vadd.f32 %v10167_v28, %v5426_v15 }
 0x406   : > { %v8191_v11 = vpop.f32.mrf.mxu1 }
 0x407   : > { %v5498_v5 = vadd.f32 %v5474_v31, %v5427_v54  ;;  %v6586_v54 = vrot.slane %v6585_v61, 1  ;;  %v6573_v11 = vmax.f32 %v6571_v36, %v6572_v51  ;;  %v6893_v36 = vld [vmem:[%s10600_s11 + $0x38] sm:$0xff] }
 0x408   : > { %8236 = vmatpush3.msra.mxu1 %v6893_v36  ;;  %v6887_v36 = vld [vmem:[%s10600_s11 + $0x8] sm:$0xff] }
 0x409   : > { %vm5507_vm9 = vcmp.ge.f32.partialorder %v5498_v5, 0.0  ;;  %v5517_v1 = vmul.f32 %v10173_v7, %v5498_v5  ;;  %v6587_v56 = vmax.f32 %v6585_v61, %v6586_v54  ;;  %8237 = vmatprep.subr.mxu1 %v10659_v34 }
 0x40a   : > { %8238 = vmatpush3.msra.mxu1 %v6892_v39 }
 0x40b   : > { %v5526_v47 = vsel %vm5507_vm9, %v5498_v5, %v5517_v1  ;;  %v6593_v5 = vrot.slane %v6592_v40, 1  ;;  %8239 = vmatprep.subr.mxu1 %v10659_v34 }
 0x40c   : > { %v5640_v29 = vcombine.high %v5526_v47, %v5526_v47  ;;  %v5647_v59 = vrot.slane %v5526_v47, %v8915_v60 }
 0x40e   : > { %v5654_v2 = vrot.slane %v5640_v29, %v8915_v60  ;;  %v5655_v6 = vcombine.high %v5647_v59, %v5647_v59  ;;  %v5663_v27 = vrot.slane %v5647_v59, %v8915_v60  ;;  %v6769_v29 = vsel %vm5065_vm14, %v6573_v11, %v6566_v37 }
 0x40f   : > { %v6594_v59 = vmax.f32 %v6592_v40, %v6593_v5  ;;  %v6770_v57 = vsel %vm5067_vm15, %v6580_v41, %v6769_v29 }
 0x410   : > { %v5656_v53 = vcombine.high %v5654_v2, %v5654_v2  ;;  %v5670_v46 = vrot.slane %v5654_v2, %v8915_v60  ;;  %v5677_v45 = vrot.slane %v5655_v6, %v8915_v60  ;;  %v6098_v20 = vcombine.low %v5639_v33, %v5663_v27 }
 0x411   : > { %v6771_v6 = vsel %vm5069_vm2, %v6587_v56, %v6770_v57 }
 0x412   : > { %v5684_v12 = vrot.slane %v5656_v53, %v8915_v60  ;;  %v5686_v30 = vcombine.high %v5670_v46, %v5670_v46  ;;  %v6105_v43 = vrot.slane %v6098_v20, %v8915_v60  ;;  %v6112_v42 = vrot.slane %v5677_v45, %v8915_v60 }
 0x413   : > { %v7745_v3 = vcombine.high %v5663_v27, %v5677_v45  ;;  %v6135_v38 = vrot.slane %v5670_v46, %v8915_v60  ;;  %v6772_v53 = vsel %vm5071_vm4, %v6594_v59, %v6771_v6 }
 0x414   : > { %v5688_v35 = vcombine.high %v5684_v12, %v5684_v12  ;;  %v6113_v4 = vcombine.low %v6105_v43, %v6112_v42  ;;  %v6144_v16 = vcombine.low %v5684_v12, %v5686_v30 }
 0x415   : > { %v6128_v50 = vrot.slane %v7745_v3, %v8915_v60  ;;  %v5476_v3 = vpop.permute.xlu1 %5475 }
 0x416   : > { %v6120_v19 = vrot.slane %v6113_v4, %v8915_v60  ;;  %v6151_v21 = vrot.slane %v6144_v16, %v8915_v60  ;;  %v6158_v17 = vrot.slane %v5688_v35, %v8915_v60  ;;  %v6891_v35 = vld [vmem:[%s10600_s11 + $0x28] sm:$0xff]  ;;  %v6890_v16 = vld [vmem:[%s10600_s11 + $0x20] sm:$0xff] }
 0x417   : > { %v6136_v22 = vcombine.low %v6128_v50, %v6135_v38  ;;  %8240 = vmatpush3.msra.mxu1 %v6891_v35 }
 0x418   : > { %v6159_v10 = vcombine.low %v6151_v21, %v6158_v17  ;;  %v6595_v24 = vsel %vm6559_vm8, %v6120_v19, -inf  ;;  %8241 = vmatprep.subr.mxu1 %v10659_v34  ;;  %v5478_v19 = vpop.permute.xlu0 %5477 }
 0x419   : > { %v6143_v62 = vrot.slane %v6136_v22, %v8915_v60  ;;  %v6596_v15 = vrot.slane %v6595_v24, 4  ;;  %8242 = vmatpush3.msra.mxu1 %v6890_v16 }
 0x41a   : > { %v6166_v31 = vrot.slane %v6159_v10, %v8915_v60  ;;  %8243 = vmatprep.subr.mxu1 %v10659_v34 }
 0x41b   : > { %v6597_v63 = vmax.f32 %v6595_v24, %v6596_v15  ;;  %v6602_v14 = vsel %vm6559_vm8, %v6143_v62, -inf  ;;  %8244 = vmatpush3.msra.mxu1 %v6889_v48 }
 0x41c   : > { %v6603_v25 = vrot.slane %v6602_v14, 4  ;;  %v6609_v9 = vsel %vm6559_vm8, %v6166_v31, -inf  ;;  %8245 = vmatprep.subr.mxu1 %v10659_v34 }
 0x41d   : > { %v6598_v1 = vrot.slane %v6597_v63, 2  ;;  %v6610_v52 = vrot.slane %v6609_v9, 4 }
 0x41e   : > { %v6604_v8 = vmax.f32 %v6602_v14, %v6603_v25 }
 0x41f   : > { %v6599_v18 = vmax.f32 %v6597_v63, %v6598_v1  ;;  %v6611_v47 = vmax.f32 %v6609_v9, %v6610_v52 }
 0x420   : > { %v6605_v32 = vrot.slane %v6604_v8, 2 }
 0x421   : > { %v6600_v33 = vrot.slane %v6599_v18, 1  ;;  %v6612_v2 = vrot.slane %v6611_v47, 2 }
 0x422   : > { %v6606_v27 = vmax.f32 %v6604_v8, %v6605_v32 }
 0x423   : > { %v6601_v0 = vmax.f32 %v6599_v18, %v6600_v33  ;;  %v6613_v26 = vmax.f32 %v6611_v47, %v6612_v2 }
 0x424   : > { %v6607_v23 = vrot.slane %v6606_v27, 1 }
 0x425   : > { %v6614_v46 = vrot.slane %v6613_v26, 1  ;;  %v6773_v45 = vsel %vm5073_vm5, %v6601_v0, %v6772_v53 }
 0x426   : > { %v6608_v20 = vmax.f32 %v6606_v27, %v6607_v23 }
 0x427   : > { %v6615_v55 = vmax.f32 %v6613_v26, %v6614_v46 }
 0x428   : > { %v6774_v44 = vsel %vm5075_vm6, %v6608_v20, %v6773_v45 }
 0x429   : > { %v10273_v12 = vsel %vm5077_vm7, %v6615_v55, %v6774_v44 }
 0x42a   : > { %8227 = vmatmul.mubr.msk.f32.vlgmr.msra.gmra.mxu0 %vm5322_vm11, %v10273_v12 }
 0x42b   : > { %8229 = vmatprep.mubr.msk.f32.mxu0 %vm8365_vm0, %v10659_v34 }
 0x42c   : > { %v5431_v30 = vpop.f32.mrf.mxu1 }
 0x42d   : > { %v5432_v42 = vadd.f32 %v10167_v28, %v5431_v30 }
 0x42e   : > { %v8194_v43 = vpop.f32.mrf.mxu1 }
 0x42f   : > { %v5499_v4 = vadd.f32 %v5476_v3, %v5432_v42  ;;  %v6888_v42 = vld [vmem:[%s10600_s11 + $0x10] sm:$0xff] }
 0x430   : > { %8246 = vmatpush3.msra.mxu1 %v6888_v42 }
 0x431   : > { %v5518_v58 = vmul.f32 %v10173_v7, %v5499_v4  ;;  %vm5508_vm10 = vcmp.ge.f32.partialorder %v5499_v4, 0.0  ;;  %8247 = vmatprep.subr.mxu1 %v10659_v34 }
 0x432   : > { %8248 = vmatpush3.msra.mxu1 %v6887_v36 }
 0x433   : > { %v5527_v50 = vsel %vm5508_vm10, %v5499_v4, %v5518_v58  ;;  %v6886_v4 = vld [vmem:[%s10600_s11] sm:$0xff]  ;;  %8249 = vmatprep.subr.mxu1 %v10659_v34 }
 0x434   : > { %v5696_v21 = vrot.slane %v5527_v50, %v8915_v60  ;;  %v5689_v22 = vcombine.high %v5527_v50, %v5527_v50  ;;  %8250 = vmatpush3.msra.mxu1 %v6886_v4 }
 0x436   : > { %v5704_v10 = vcombine.high %v5696_v21, %v5696_v21  ;;  %v5703_v40 = vrot.slane %v5689_v22, %v8915_v60  ;;  %v5712_v54 = vrot.slane %v5696_v21, %v8915_v60 }
 0x438   : > { %v5726_v13 = vrot.slane %v5704_v10, %v8915_v60  ;;  %v5705_v15 = vcombine.high %v5703_v40, %v5703_v40  ;;  %v5719_v11 = vrot.slane %v5703_v40, %v8915_v60  ;;  %v5734_v5 = vcombine.high %v5712_v54, %v5712_v54  ;;  %v5480_v10 = vpop.permute.xlu0 %5479 }
 0x43a   : > { %v5736_v31 = vcombine.high %v5726_v13, %v5726_v13  ;;  %v6167_v41 = vcombine.low %v5712_v54, %v5726_v13  ;;  %v5733_v25 = vrot.slane %v5705_v15, %v8915_v60  ;;  %v6181_v8 = vrot.slane %v5734_v5, %v8915_v60 }
 0x43c   : > { %v6190_v9 = vcombine.low %v5736_v31, %v5719_v11  ;;  %v6174_v52 = vrot.slane %v6167_v41, %v8915_v60  ;;  %v7746_v18 = vcombine.high %v5719_v11, %v5733_v25  ;;  %v6204_v33 = vrot.slane %v5733_v25, %v8915_v60 }
 0x43e   : > { %v6197_v47 = vrot.slane %v6190_v9, %v8915_v60  ;;  %v6182_v57 = vcombine.low %v6174_v52, %v6181_v8  ;;  %v6220_v27 = vrot.slane %v7746_v18, %v8915_v60 }
 0x440   : > { %v6205_v0 = vcombine.low %v6197_v47, %v6204_v33  ;;  %v6189_v46 = vrot.slane %v6182_v57, %v8915_v60 }
 0x442   : > { %v6212_v55 = vrot.slane %v6205_v0, %v8915_v60  ;;  %v6616_v39 = vsel %vm6559_vm8, %v6189_v46, -inf }
 0x443   : > { %v6617_v50 = vrot.slane %v6616_v39, 4 }
 0x444   : > { %v6623_v16 = vsel %vm6559_vm8, %v6212_v55, -inf }
 0x454   : > { %v5436_v38 = vpop.f32.mrf.mxu1 }
 0x455   : > { %v5437_v61 = vadd.f32 %v10167_v28, %v5436_v38 }
 0x456   : > { %v8197_v17 = vpop.f32.mrf.mxu1 }
 0x457   : > { %v5500_v51 = vadd.f32 %v5478_v19, %v5437_v61  ;;  %v6624_v61 = vrot.slane %v6623_v16, 4 }
 0x459   : > { %vm5509_vm3 = vcmp.ge.f32.partialorder %v5500_v51, 0.0  ;;  %v5519_v49 = vmul.f32 %v10173_v7, %v5500_v51  ;;  %v6625_v40 = vmax.f32 %v6623_v16, %v6624_v61 }
 0x45b   : > { %v5528_v24 = vsel %vm5509_vm3, %v5500_v51, %v5519_v49  ;;  %v6618_v51 = vmax.f32 %v6616_v39, %v6617_v50 }
 0x45c   : > { %v5738_v62 = vcombine.high %v5528_v24, %v5528_v24  ;;  %v5745_v63 = vrot.slane %v5528_v24, %v8915_v60 }
 0x45d   : > { %v6619_v54 = vrot.slane %v6618_v51, 2 }
 0x45e   : > { %v5752_v14 = vrot.slane %v5738_v62, %v8915_v60  ;;  %v5753_v37 = vcombine.high %v5745_v63, %v5745_v63  ;;  %v5761_v1 = vrot.slane %v5745_v63, %v8915_v60 }
 0x460   : > { %v5754_v56 = vcombine.high %v5752_v14, %v5752_v14  ;;  %v5775_v29 = vrot.slane %v5753_v37, %v8915_v60  ;;  %v5783_v32 = vcombine.high %v5761_v1, %v5761_v1  ;;  %v5768_v2 = vrot.slane %v5752_v14, %v8915_v60 }
 0x461   : > { %v6227_v6 = vrot.slane %v5761_v1, %v8915_v60  ;;  %v6626_v14 = vrot.slane %v6625_v40, 2  ;;  %v6620_v37 = vmax.f32 %v6618_v51, %v6619_v54 }
 0x462   : > { %v10317_v59 = vrot.slane %v5754_v56, %v8915_v60  ;;  %v5785_v26 = vcombine.high %v5775_v29, %v5775_v29  ;;  %v6236_v23 = vcombine.low %v5775_v29, %v5783_v32  ;;  %v5784_v45 = vcombine.high %v5768_v2, %v5768_v2 }
 0x463   : > { %v6228_v20 = vcombine.low %v6220_v27, %v6227_v6  ;;  %v6627_v47 = vmax.f32 %v6625_v40, %v6626_v14 }
 0x464   : > { %v6259_v53 = vcombine.low %v5768_v2, %v10317_v59  ;;  %v6243_v44 = vrot.slane %v6236_v23, %v8915_v60  ;;  %v6250_v30 = vrot.slane %v5785_v26, %v8915_v60  ;;  %v6273_v35 = vrot.slane %v5784_v45, %v8915_v60 }
 0x465   : > { %v6235_v3 = vrot.slane %v6228_v20, %v8915_v60  ;;  %v5786_v1 = vcombine.high %v10317_v59, %v10317_v59  ;;  %v6621_v23 = vrot.slane %v6620_v37, 1  ;;  %v5482_v59 = vpop.permute.xlu1 %5481 }
 0x466   : > { %v6266_v43 = vrot.slane %v6259_v53, %v8915_v60  ;;  %v6251_v48 = vcombine.low %v6243_v44, %v6250_v30 }
 0x467   : > { %v6630_v38 = vsel %vm6559_vm8, %v6235_v3, -inf }
 0x468   : > { %v6274_v58 = vcombine.low %v6266_v43, %v6273_v35  ;;  %v6258_v19 = vrot.slane %v6251_v48, %v8915_v60  ;;  %v6631_v22 = vrot.slane %v6630_v38, 4  ;;  %v6628_v35 = vrot.slane %v6627_v47, 1 }
 0x46a   : > { %v6281_v21 = vrot.slane %v6274_v58, %v8915_v60  ;;  %v6637_v62 = vsel %vm6559_vm8, %v6258_v19, -inf  ;;  %v6632_v31 = vmax.f32 %v6630_v38, %v6631_v22  ;;  %v6629_v14 = vmax.f32 %v6627_v47, %v6628_v35 }
 0x46b   : > { %v6638_v41 = vrot.slane %v6637_v62, 4 }
 0x46c   : > { %v6644_v15 = vsel %vm6559_vm8, %v6281_v21, -inf  ;;  %v6633_v56 = vrot.slane %v6632_v31, 2 }
 0x46d   : > { %v6645_v25 = vrot.slane %v6644_v15, 4  ;;  %v6639_v29 = vmax.f32 %v6637_v62, %v6638_v41 }
 0x46e   : > { %v6634_v0 = vmax.f32 %v6632_v31, %v6633_v56 }
 0x46f   : > { %v6646_v32 = vmax.f32 %v6644_v15, %v6645_v25  ;;  %v6640_v43 = vrot.slane %v6639_v29, 2 }
 0x470   : > { %v6635_v61 = vrot.slane %v6634_v0, 1 }
 0x471   : > { %v6647_v42 = vrot.slane %v6646_v32, 2 }
 0x473   : > { %v6648_v51 = vmax.f32 %v6646_v32, %v6647_v42 }
 0x47d   : > { %v5441_v17 = vpop.f32.mrf.mxu1 }
 0x47e   : > { %v5442_v49 = vadd.f32 %v10167_v28, %v5441_v17  ;;  %v6641_v17 = vmax.f32 %v6639_v29, %v6640_v43 }
 0x47f   : > { %v8200_v24 = vpop.f32.mrf.mxu1 }
 0x480   : > { %v5501_v13 = vadd.f32 %v5480_v10, %v5442_v49  ;;  %v6642_v56 = vrot.slane %v6641_v17, 1 }
 0x482   : > { %vm5510_vm12 = vcmp.ge.f32.partialorder %v5501_v13, 0.0  ;;  %v5520_v63 = vmul.f32 %v10173_v7, %v5501_v13 }
 0x484   : > { %v5529_v11 = vsel %vm5510_vm12, %v5501_v13, %v5520_v63  ;;  %v6622_v13 = vmax.f32 %v6620_v37, %v6621_v23 }
 0x485   : > { %v5787_v5 = vcombine.high %v5529_v11, %v5529_v11  ;;  %v5794_v9 = vrot.slane %v5529_v11, %v8915_v60  ;;  %v6636_v11 = vmax.f32 %v6634_v0, %v6635_v61 }
 0x487   : > { %v5801_v52 = vrot.slane %v5787_v5, %v8915_v60  ;;  %v5802_v8 = vcombine.high %v5794_v9, %v5794_v9  ;;  %v5810_v18 = vrot.slane %v5794_v9, %v8915_v60  ;;  %v5446_v27 = vpop.f32.mrf.mxu1 }
 0x488   : > { %v5447_v26 = vadd.f32 %v10167_v28, %v5446_v27 }
 0x489   : > { %v5803_v57 = vcombine.high %v5801_v52, %v5801_v52  ;;  %v5817_v33 = vrot.slane %v5801_v52, %v8915_v60  ;;  %v5824_v2 = vrot.slane %v5802_v8, %v8915_v60  ;;  %v6282_v6 = vcombine.low %v5786_v1, %v5810_v18  ;;  %v8203_v55 = vpop.f32.mrf.mxu1 }
 0x48a   : > { %v5502_v30 = vadd.f32 %v5482_v59, %v5447_v26  ;;  %v6649_v1 = vrot.slane %v6648_v51, 1  ;;  %v5484_v26 = vpop.permute.xlu1 %5483 }
 0x48b   : > { %v5831_v53 = vrot.slane %v5803_v57, %v8915_v60  ;;  %v5833_v46 = vcombine.high %v5817_v33, %v5817_v33  ;;  %v6289_v45 = vrot.slane %v6282_v6, %v8915_v60  ;;  %v6296_v20 = vrot.slane %v5824_v2, %v8915_v60 }
 0x48c   : > { %v7747_v44 = vcombine.high %v5810_v18, %v5824_v2  ;;  %v6319_v16 = vrot.slane %v5817_v33, %v8915_v60  ;;  %vm5511_vm1 = vcmp.ge.f32.partialorder %v5502_v30, 0.0  ;;  %v5521_v48 = vmul.f32 %v10173_v7, %v5502_v30 }
 0x48d   : > { %v5835_v36 = vcombine.high %v5831_v53, %v5831_v53  ;;  %v6297_v39 = vcombine.low %v6289_v45, %v6296_v20  ;;  %v6328_v3 = vcombine.low %v5831_v53, %v5833_v46  ;;  %v6643_v46 = vmax.f32 %v6641_v17, %v6642_v56 }
 0x48e   : > { %v6312_v4 = vrot.slane %v7747_v44, %v8915_v60  ;;  %v5530_v21 = vsel %vm5511_vm1, %v5502_v30, %v5521_v48  ;;  %v6776_v45 = vsel %vm5065_vm14, %v6629_v14, %v6622_v13 }
 0x48f   : > { %v6304_v58 = vrot.slane %v6297_v39, %v8915_v60  ;;  %v6335_v50 = vrot.slane %v6328_v3, %v8915_v60  ;;  %v6342_v38 = vrot.slane %v5835_v36, %v8915_v60  ;;  %v5836_v22 = vcombine.high %v5530_v21, %v5530_v21 }
 0x490   : > { %v6320_v19 = vcombine.low %v6312_v4, %v6319_v16  ;;  %v5843_v49 = vrot.slane %v5530_v21, %v8915_v60  ;;  %v6650_v36 = vmax.f32 %v6648_v51, %v6649_v1  ;;  %v6777_v39 = vsel %vm5067_vm15, %v6636_v11, %v6776_v45 }
 0x491   : > { %v6343_v10 = vcombine.low %v6335_v50, %v6342_v38  ;;  %v6651_v24 = vsel %vm6559_vm8, %v6304_v58, -inf  ;;  %v5850_v15 = vrot.slane %v5836_v22, %v8915_v60  ;;  %v6778_v50 = vsel %vm5069_vm2, %v6643_v46, %v6777_v39 }
 0x492   : > { %v6327_v40 = vrot.slane %v6320_v19, %v8915_v60  ;;  %v6652_v62 = vrot.slane %v6651_v24, 4  ;;  %v5851_v54 = vcombine.high %v5843_v49, %v5843_v49  ;;  %v5859_v31 = vrot.slane %v5843_v49, %v8915_v60 }
 0x493   : > { %v6350_v63 = vrot.slane %v6343_v10, %v8915_v60  ;;  %v5852_v5 = vcombine.high %v5850_v15, %v5850_v15  ;;  %v5866_v37 = vrot.slane %v5850_v15, %v8915_v60 }
 0x494   : > { %v6653_v41 = vmax.f32 %v6651_v24, %v6652_v62  ;;  %v6658_v25 = vsel %vm6559_vm8, %v6327_v40, -inf  ;;  %v5873_v9 = vrot.slane %v5851_v54, %v8915_v60  ;;  %v5881_v32 = vcombine.high %v5859_v31, %v5859_v31 }
 0x495   : > { %v6659_v8 = vrot.slane %v6658_v25, 4  ;;  %v6665_v18 = vsel %vm6559_vm8, %v6350_v63, -inf  ;;  %v5880_v29 = vrot.slane %v5852_v5, %v8915_v60  ;;  %v5451_v33 = vpop.f32.mrf.mxu1  ;;  %v6779_v24 = vsel %vm5071_vm4, %v6650_v36, %v6778_v50 }
 0x496   : > { %v6654_v52 = vrot.slane %v6653_v41, 2  ;;  %v5883_v57 = vcombine.high %v5873_v9, %v5873_v9  ;;  %v6351_v47 = vcombine.low %v5859_v31, %v5873_v9  ;;  %v5452_v2 = vadd.f32 %v10167_v28, %v5451_v33 }
 0x497   : > { %v6660_v27 = vmax.f32 %v6658_v25, %v6659_v8  ;;  %v6666_v0 = vrot.slane %v6665_v18, 4  ;;  %v8206_v53 = vpop.f32.mrf.mxu1  ;;  %v6388_v42 = vrot.slane %v5880_v29, %v8915_v60  ;;  %v6365_v3 = vrot.slane %v5881_v32, %v8915_v60 }
 0x498   : > { %v6655_v6 = vmax.f32 %v6653_v41, %v6654_v52  ;;  %v6358_v23 = vrot.slane %v6351_v47, %v8915_v60  ;;  %v6374_v59 = vcombine.low %v5883_v57, %v5866_v37  ;;  %v5503_v20 = vadd.f32 %v5484_v26, %v5452_v2  ;;  %v5486_v2 = vpop.permute.xlu0 %5485 }
 0x499   : > { %v6661_v44 = vrot.slane %v6660_v27, 2  ;;  %v6667_v30 = vmax.f32 %v6665_v18, %v6666_v0  ;;  %v7748_v61 = vcombine.high %v5866_v37, %v5880_v29 }
 0x49a   : > { %v6656_v55 = vrot.slane %v6655_v6, 1  ;;  %v6381_v43 = vrot.slane %v6374_v59, %v8915_v60  ;;  %vm5512_vm13 = vcmp.ge.f32.partialorder %v5503_v20, 0.0  ;;  %v5522_v35 = vmul.f32 %v10173_v7, %v5503_v20 }
 0x49b   : > { %v6662_v4 = vmax.f32 %v6660_v27, %v6661_v44  ;;  %v6668_v58 = vrot.slane %v6667_v30, 2  ;;  %v6366_v38 = vcombine.low %v6358_v23, %v6365_v3  ;;  %v6404_v31 = vrot.slane %v7748_v61, %v8915_v60 }
 0x49c   : > { %v6389_v16 = vcombine.low %v6381_v43, %v6388_v42  ;;  %v6657_v48 = vmax.f32 %v6655_v6, %v6656_v55  ;;  %v5531_v19 = vsel %vm5512_vm13, %v5503_v20, %v5522_v35 }
 0x49d   : > { %v6663_v21 = vrot.slane %v6662_v4, 1  ;;  %v5885_v17 = vcombine.high %v5531_v19, %v5531_v19  ;;  %v5892_v51 = vrot.slane %v5531_v19, %v8915_v60  ;;  %v6669_v10 = vmax.f32 %v6667_v30, %v6668_v58 }
 0x49e   : > { %v6396_v22 = vrot.slane %v6389_v16, %v8915_v60  ;;  %v6780_v15 = vsel %vm5073_vm5, %v6657_v48, %v6779_v24  ;;  %v6373_v54 = vrot.slane %v6366_v38, %v8915_v60 }
 0x49f   : > { %v6664_v49 = vmax.f32 %v6662_v4, %v6663_v21  ;;  %v5899_v40 = vrot.slane %v5885_v17, %v8915_v60  ;;  %v5900_v13 = vcombine.high %v5892_v51, %v5892_v51  ;;  %v5908_v62 = vrot.slane %v5892_v51, %v8915_v60 }
 0x4a0   : > { %v6670_v63 = vrot.slane %v6669_v10, 1  ;;  %v6679_v5 = vsel %vm6559_vm8, %v6396_v22, -inf  ;;  %v6672_v32 = vsel %vm6559_vm8, %v6373_v54, -inf }
 0x4a1   : > { %v5901_v14 = vcombine.high %v5899_v40, %v5899_v40  ;;  %v5915_v11 = vrot.slane %v5899_v40, %v8915_v60  ;;  %v5922_v41 = vrot.slane %v5900_v13, %v8915_v60  ;;  %v5930_v25 = vcombine.high %v5908_v62, %v5908_v62 }
 0x4a2   : > { %v6411_v9 = vrot.slane %v5908_v62, %v8915_v60  ;;  %v5456_v56 = vpop.f32.mrf.mxu1  ;;  %v6671_v1 = vmax.f32 %v6669_v10, %v6670_v63  ;;  %v6781_v37 = vsel %vm5075_vm6, %v6664_v49, %v6780_v15  ;;  %v6680_v26 = vrot.slane %v6679_v5, 4 }
 0x4a3   : > { %v5929_v52 = vrot.slane %v5901_v14, %v8915_v60  ;;  %v5931_v8 = vcombine.high %v5915_v11, %v5915_v11  ;;  %v5932_v18 = vcombine.high %v5922_v41, %v5922_v41  ;;  %v6420_v29 = vcombine.low %v5922_v41, %v5930_v25 }
 0x4a4   : > { %v6412_v57 = vcombine.low %v6404_v31, %v6411_v9  ;;  %v5457_v47 = vadd.f32 %v10167_v28, %v5456_v56  ;;  %v8209_v33 = vpop.f32.mrf.mxu1  ;;  %v10408_v53 = vsel %vm5077_vm7, %v6671_v1, %v6781_v37  ;;  %v6673_v46 = vrot.slane %v6672_v32, 4 }
 0x4a5   : > { %v6427_v6 = vrot.slane %v6420_v29, %v8915_v60  ;;  %v6434_v27 = vrot.slane %v5932_v18, %v8915_v60  ;;  %v6443_v0 = vcombine.low %v5915_v11, %v5929_v52  ;;  %v6457_v28 = vrot.slane %v5931_v8, %v8915_v60  ;;  %8230 = vmatmul.mubr.msk.f32.gmra.mxu0 %vm5322_vm11, %v10408_v53 }
 0x4a6   : > { %v6419_v23 = vrot.slane %v6412_v57, %v8915_v60  ;;  %v5504_v59 = vadd.f32 %v5486_v2, %v5457_v47  ;;  %8232 = vmatprep.mubr.msk.f32.mxu0 %vm8365_vm0, %v10659_v34  ;;  %v6681_v36 = vmax.f32 %v6679_v5, %v6680_v26  ;;  %v6674_v3 = vmax.f32 %v6672_v32, %v6673_v46 }
 0x4a7   : > { %v6435_v45 = vcombine.low %v6427_v6, %v6434_v27  ;;  %v6450_v20 = vrot.slane %v6443_v0, %v8915_v60  ;;  %v5933_v19 = vcombine.high %v5929_v52, %v5929_v52 }
 0x4a8   : > { %v6686_v55 = vsel %vm6559_vm8, %v6419_v23, -inf  ;;  %vm5513_vm9 = vcmp.ge.f32.partialorder %v5504_v59, 0.0  ;;  %v5523_v44 = vmul.f32 %v10173_v7, %v5504_v59  ;;  %v6682_v61 = vrot.slane %v6681_v36, 2 }
 0x4a9   : > { %v6442_v30 = vrot.slane %v6435_v45, %v8915_v60  ;;  %v6458_v43 = vcombine.low %v6450_v20, %v6457_v28  ;;  %v6687_v42 = vrot.slane %v6686_v55, 4  ;;  %v6675_v51 = vrot.slane %v6674_v3, 2 }
 0x4aa   : > { %v5532_v39 = vsel %vm5513_vm9, %v5504_v59, %v5523_v44  ;;  %v6683_v41 = vmax.f32 %v6681_v36, %v6682_v61 }
 0x4ab   : > { %v6465_v35 = vrot.slane %v6458_v43, %v8915_v60  ;;  %v5934_v4 = vcombine.high %v5532_v39, %v5532_v39  ;;  %v5941_v16 = vrot.slane %v5532_v39, %v8915_v60  ;;  %v6688_v48 = vmax.f32 %v6686_v55, %v6687_v42 }
 0x4ac   : > { %v6693_v58 = vsel %vm6559_vm8, %v6442_v30, -inf  ;;  %v6676_v37 = vmax.f32 %v6674_v3, %v6675_v51  ;;  %v6684_v27 = vrot.slane %v6683_v41, 1 }
 0x4ad   : > { %v5948_v7 = vrot.slane %v5934_v4, %v8915_v60  ;;  %v5949_v50 = vcombine.high %v5941_v16, %v5941_v16  ;;  %v5957_v38 = vrot.slane %v5941_v16, %v8915_v60  ;;  %v6694_v21 = vrot.slane %v6693_v58, 4 }
 0x4ae   : > { %v6700_v17 = vsel %vm6559_vm8, %v6465_v35, -inf  ;;  %v6689_v24 = vrot.slane %v6688_v48, 2  ;;  %v6677_v0 = vrot.slane %v6676_v37, 1  ;;  %v6685_v44 = vmax.f32 %v6683_v41, %v6684_v27  ;;  %v7410_v27 = vld [vmem:[%s10602_s13 + $0x30] sm:$0xff] }
 0x4af   : > { %v5950_v22 = vcombine.high %v5948_v7, %v5948_v7  ;;  %v5964_v49 = vrot.slane %v5948_v7, %v8915_v60  ;;  %v5971_v10 = vrot.slane %v5949_v50, %v8915_v60  ;;  %v6466_v40 = vcombine.low %v5933_v19, %v5957_v38 }
 0x4b0   : > { %v6695_v13 = vmax.f32 %v6693_v58, %v6694_v21  ;;  %v6701_v62 = vrot.slane %v6700_v17, 4  ;;  %v6690_v52 = vmax.f32 %v6688_v48, %v6689_v24  ;;  %v6678_v35 = vmax.f32 %v6676_v37, %v6677_v0  ;;  %v7409_v0 = vld [vmem:[%s10602_s13 + $0x28] sm:$0xff] }
 0x4b1   : > { %v5978_v15 = vrot.slane %v5950_v22, %v8915_v60  ;;  %v5980_v54 = vcombine.high %v5964_v49, %v5964_v49  ;;  %v6480_v31 = vrot.slane %v5971_v10, %v8915_v60  ;;  %v7749_v63 = vcombine.high %v5957_v38, %v5971_v10 }
 0x4b2   : > { %v6473_v14 = vrot.slane %v6466_v40, %v8915_v60  ;;  %v6503_v11 = vrot.slane %v5964_v49, %v8915_v60  ;;  %v6696_v25 = vrot.slane %v6695_v13, 2  ;;  %v6702_v1 = vmax.f32 %v6700_v17, %v6701_v62 }
 0x4b3   : > { %v5982_v5 = vcombine.high %v5978_v15, %v5978_v15  ;;  %v6496_v9 = vrot.slane %v7749_v63, %v8915_v60  ;;  %v6512_v56 = vcombine.low %v5978_v15, %v5980_v54  ;;  %v6691_v26 = vrot.slane %v6690_v52, 1  ;;  %v7752_v63 = vld [vmem:[%s10599_s10] ss:$0 sm:$0xff] }
 0x4b4   : > { %v6481_v8 = vcombine.low %v6473_v14, %v6480_v31  ;;  %v6697_v18 = vmax.f32 %v6695_v13, %v6696_v25  ;;  %v6703_v47 = vrot.slane %v6702_v1, 2  ;;  %v6783_v50 = vsel %vm5065_vm14, %v6685_v44, %v6678_v35 }
 0x4b5   : > { %v6504_v29 = vcombine.low %v6496_v9, %v6503_v11  ;;  %v6519_v32 = vrot.slane %v6512_v56, %v8915_v60  ;;  %v6526_v57 = vrot.slane %v5982_v5, %v8915_v60  ;;  %v6692_v42 = vmax.f32 %v6690_v52, %v6691_v26  ;;  %v7408_v26 = vld [vmem:[%s10602_s13 + $0x20] sm:$0xff] }
 0x4b6   : > { %v6488_v33 = vrot.slane %v6481_v8, %v8915_v60  ;;  %v6704_v23 = vmax.f32 %v6702_v1, %v6703_v47  ;;  %v6698_v45 = vrot.slane %v6697_v18, 1  ;;  %v6879_v11 = vstv %s7750_s26 }
 0x4b7   : > { %v6511_v2 = vrot.slane %v6504_v29, %v8915_v60  ;;  %v6527_v6 = vcombine.low %v6519_v32, %v6526_v57  ;;  %v6784_v21 = vsel %vm5067_vm15, %v6692_v42, %v6783_v50  ;;  %v10501_v44 = vstv %s7751_s19 }
 0x4b8   : > { %v6707_v59 = vsel %vm6559_vm8, %v6488_v33, -inf  ;;  %v6705_v36 = vrot.slane %v6704_v23, 1  ;;  %v6699_v4 = vmax.f32 %v6697_v18, %v6698_v45  ;;  %v7404_v45 = vld [vmem:[%s10602_s13] sm:$0xff] }
 0x4b9   : > { %v6534_v46 = vrot.slane %v6527_v6, %v8915_v60  ;;  %v6708_v20 = vrot.slane %v6707_v59, 4  ;;  %v6714_v28 = vsel %vm6559_vm8, %v6511_v2, -inf  ;;  %v7411_v6 = vld [vmem:[%s10602_s13 + $0x38] sm:$0xff] }
 0x4ba   : > { %v6715_v55 = vrot.slane %v6714_v28, 4  ;;  %v6706_v38 = vmax.f32 %v6704_v23, %v6705_v36  ;;  %v6785_v51 = vsel %vm5069_vm2, %v6699_v4, %v6784_v21  ;;  %8261 = vmatpush3.msra.mxu0 %v7411_v6  ;;  %v7407_v23 = vld [vmem:[%s10602_s13 + $0x18] sm:$0xff] }
 0x4bb   : > { %v6709_v30 = vmax.f32 %v6707_v59, %v6708_v20  ;;  %v6721_v43 = vsel %vm6559_vm8, %v6534_v46, -inf  ;;  %8262 = vmatprep.subr.mxu0 %v10659_v34  ;;  %v7406_v59 = vld [vmem:[%s10602_s13 + $0x10] sm:$0xff]  ;;  %v7405_v46 = vld [vmem:[%s10602_s13 + $0x8] sm:$0xff]  ;;  %v10497_v20 = vld [vmem:[%s10601_s12] ss:$0 sm:$0xff] }
 0x4bc   : > { %v6716_v39 = vmax.f32 %v6714_v28, %v6715_v55  ;;  %v6722_v3 = vrot.slane %v6721_v43, 4  ;;  %v6786_v13 = vsel %vm5071_vm4, %v6706_v38, %v6785_v51  ;;  %8263 = vmatpush3.msra.mxu0 %v7410_v27 }
 0x4bd   : > { %v6710_v16 = vrot.slane %v6709_v30, 2  ;;  %8264 = vmatprep.subr.mxu0 %v10659_v34 }
 0x4be   : > { %v6717_v48 = vrot.slane %v6716_v39, 2  ;;  %v6723_v58 = vmax.f32 %v6721_v43, %v6722_v3  ;;  %8265 = vmatpush3.msra.mxu0 %v7409_v0 }
 0x4bf   : > { %v6711_v7 = vmax.f32 %v6709_v30, %v6710_v16  ;;  %8266 = vmatprep.subr.mxu0 %v10659_v34 }
 0x4c0   : > { %v6718_v61 = vmax.f32 %v6716_v39, %v6717_v48  ;;  %v6724_v19 = vrot.slane %v6723_v58, 2  ;;  %8267 = vmatpush3.msra.mxu0 %v7408_v26 }
 0x4c1   : > { %v6712_v17 = vrot.slane %v6711_v7, 1  ;;  %8268 = vmatprep.subr.mxu0 %v10659_v34 }
 0x4c2   : > { %v6719_v22 = vrot.slane %v6718_v61, 1  ;;  %v6725_v49 = vmax.f32 %v6723_v58, %v6724_v19  ;;  %8269 = vmatpush3.msra.mxu0 %v7407_v23 }
 0x4c3   : > { %v6713_v10 = vmax.f32 %v6711_v7, %v6712_v17  ;;  %8270 = vmatprep.subr.mxu0 %v10659_v34 }
 0x4c4   : > { %v6720_v24 = vmax.f32 %v6718_v61, %v6719_v22  ;;  %v6726_v40 = vrot.slane %v6725_v49, 1  ;;  %8271 = vmatpush3.msra.mxu0 %v7406_v59 }
 0x4c5   : > { %v6787_v62 = vsel %vm5073_vm5, %v6713_v10, %v6786_v13  ;;  %8272 = vmatprep.subr.mxu0 %v10659_v34 }
 0x4c6   : > { %v6727_v15 = vmax.f32 %v6725_v49, %v6726_v40  ;;  %v6788_v54 = vsel %vm5075_vm6, %v6720_v24, %v6787_v62  ;;  %8273 = vmatpush3.msra.mxu0 %v7405_v46 }
 0x4c7   : > { %8274 = vmatprep.subr.mxu0 %v10659_v34 }
 0x4c8   : > { %v10447_v31 = vsel %vm5077_vm7, %v6727_v15, %v6788_v54  ;;  %8275 = vmatpush3.msra.mxu0 %v7404_v45 }
 0x4c9   : > { %8233 = vmatmul.mubr.msk.f32.gmra.mxu0 %vm5322_vm11, %v10447_v31 }
 0x4ca   : > { %8276 = vmatprep.mubr.msk.f32.mxu0 %vm8365_vm0, %v10659_v34 }
 0x4ea   : > { %v6862_v14 = vpop.f32.mrf.mxu0 }
 0x4eb   : > { %v6863_v41 = vadd.f32 %v7752_v63, %v6862_v14 }
 0x4ec   : > { %v8228_v25 = vpop.f32.mrf.mxu0 }
 0x4ed   : > { %vm6876_vm10 = vcmp.ge.f32.partialorder %v6863_v41, 0.0  ;;  %v6880_v5 = vmul.f32 %v6879_v11, %v6863_v41 }
 0x4ef   : > { %v6883_v9 = vsel %vm6876_vm10, %v6863_v41, %v6880_v5 }
 0x4f0   : > { %8252 = vmatmul.mubr.msk.f32.vlgmr.msra.gmra.mxu1 %vm5322_vm11, %v6883_v9 }
 0x4f1   : > { %8254 = vmatprep.mubr.msk.f32.mxu1 %vm8365_vm0, %v10659_v34 }
 0x565   : > { %v6867_v56 = vpop.f32.mrf.mxu0 }
 0x566   : > { %v6868_v1 = vadd.f32 %v7752_v63, %v6867_v56 }
 0x567   : > { %v8231_v37 = vpop.f32.mrf.mxu0 }
 0x568   : > { %vm6877_vm3 = vcmp.ge.f32.partialorder %v6868_v1, 0.0  ;;  %v6881_v52 = vmul.f32 %v6879_v11, %v6868_v1 }
 0x56a   : > { %v6884_v8 = vsel %vm6877_vm3, %v6868_v1, %v6881_v52 }
 0x56b   : > { %8255 = vmatmul.mubr.msk.f32.gmra.mxu1 %vm5322_vm11, %v6884_v8 }
 0x56c   : > { %8257 = vmatprep.mubr.msk.f32.mxu1 %vm8365_vm0, %v10659_v34 }
 0x589   : > { %v6872_v18 = vpop.f32.mrf.mxu0 }
 0x58a   : > { %v6873_v29 = vadd.f32 %v7752_v63, %v6872_v18 }
 0x58b   : > { %v8234_v32 = vpop.f32.mrf.mxu0 }
 0x58c   : > { %vm6878_vm12 = vcmp.ge.f32.partialorder %v6873_v29, 0.0  ;;  %v6882_v57 = vmul.f32 %v6879_v11, %v6873_v29 }
 0x58e   : > { %v6885_v47 = vsel %vm6878_vm12, %v6873_v29, %v6882_v57 }
 0x58f   : > { %8258 = vmatmul.mubr.msk.f32.gmra.mxu1 %vm5322_vm11, %v6885_v47 }
 0x5b0   : > { %v6976_v33 = vpop.f32.mrf.mxu1 }
 0x5b1   : > { %v6977_v28 = vadd.f32 %v10497_v20, %v6976_v33 }
 0x5b2   : > { %v8253_v2 = vpop.f32.mrf.mxu1 }
 0x5b3   : > { %v6993_v55 = vadd.f32 %v6977_v28, %v10273_v12 }
 0x5b5   : > { %v7000_v30 = vmul.f32 %v10501_v44, %v6993_v55  ;;  %vm6996_vm0 = vcmp.ge.f32.partialorder %v6993_v55, 0.0 }
 0x5b7   : > { %v7003_v43 = vsel %vm6996_vm0, %v6993_v55, %v7000_v30 }
 0x5b8   : > { %v7016_v36 = vrot.slane %v7003_v43, %v8915_v60  ;;  %v7009_v35 = vcombine.high %v7003_v43, %v7003_v43 }
 0x5ba   : > { %v7024_v16 = vcombine.high %v7016_v36, %v7016_v36  ;;  %v7023_v48 = vrot.slane %v7009_v35, %v8915_v60  ;;  %v7032_v24 = vrot.slane %v7016_v36, %v8915_v60 }
 0x5bc   : > { %v7046_v50 = vrot.slane %v7024_v16, %v8915_v60  ;;  %v7025_v61 = vcombine.high %v7023_v48, %v7023_v48  ;;  %v7039_v51 = vrot.slane %v7023_v48, %v8915_v60  ;;  %v7054_v11 = vcombine.high %v7032_v24, %v7032_v24 }
 0x5be   : > { %v7053_v22 = vrot.slane %v7025_v61, %v8915_v60  ;;  %v7156_v62 = vcombine.low %v7032_v24, %v7046_v50  ;;  %v7170_v18 = vrot.slane %v7054_v11, %v8915_v60 }
 0x5c0   : > { %v7760_v15 = vcombine.high %v7039_v51, %v7053_v22  ;;  %v7163_v9 = vrot.slane %v7156_v62, %v8915_v60  ;;  %v7193_v56 = vrot.slane %v7053_v22, %v8915_v60 }
 0x5c2   : > { %v7209_v37 = vrot.slane %v7760_v15, %v8915_v60  ;;  %v7171_v47 = vcombine.low %v7163_v9, %v7170_v18 }
 0x5c4   : > { %v7178_v26 = vrot.slane %v7171_v47, %v8915_v60 }
 0x5c6   : > { %v7348_v30 = vsel %vm6559_vm8, %v7178_v26, -inf }
 0x5c7   : > { %v7349_v35 = vrot.slane %v7348_v30, 4 }
 0x62b   : > { %v6981_v42 = vpop.f32.mrf.mxu1 }
 0x62c   : > { %v6982_v34 = vadd.f32 %v10497_v20, %v6981_v42 }
 0x62d   : > { %v8256_v39 = vpop.f32.mrf.mxu1 }
 0x62e   : > { %v6994_v3 = vadd.f32 %v6982_v34, %v10408_v53  ;;  %v7056_v53 = vcombine.high %v7046_v50, %v7046_v50 }
 0x630   : > { %vm6997_vm1 = vcmp.ge.f32.partialorder %v6994_v3, 0.0  ;;  %v7001_v4 = vmul.f32 %v10501_v44, %v6994_v3  ;;  %v7179_v40 = vcombine.low %v7056_v53, %v7039_v51 }
 0x632   : > { %v7004_v12 = vsel %vm6997_vm1, %v6994_v3, %v7001_v4  ;;  %v7186_v41 = vrot.slane %v7179_v40, %v8915_v60 }
 0x633   : > { %v7058_v58 = vcombine.high %v7004_v12, %v7004_v12  ;;  %v7065_v7 = vrot.slane %v7004_v12, %v8915_v60 }
 0x634   : > { %v7194_v29 = vcombine.low %v7186_v41, %v7193_v56 }
 0x635   : > { %v7072_v38 = vrot.slane %v7058_v58, %v8915_v60  ;;  %v7073_v19 = vcombine.high %v7065_v7, %v7065_v7  ;;  %v7081_v21 = vrot.slane %v7065_v7, %v8915_v60 }
 0x636   : > { %v7201_v6 = vrot.slane %v7194_v29, %v8915_v60 }
 0x637   : > { %v7074_v17 = vcombine.high %v7072_v38, %v7072_v38  ;;  %v7095_v49 = vrot.slane %v7073_v19, %v8915_v60  ;;  %v7103_v10 = vcombine.high %v7081_v21, %v7081_v21  ;;  %v7088_v54 = vrot.slane %v7072_v38, %v8915_v60 }
 0x638   : > { %v7216_v25 = vrot.slane %v7081_v21, %v8915_v60  ;;  %v7355_v59 = vsel %vm6559_vm8, %v7201_v6, -inf  ;;  %v7350_v38 = vmax.f32 %v7348_v30, %v7349_v35 }
 0x639   : > { %v10518_v13 = vrot.slane %v7074_v17, %v8915_v60  ;;  %v7105_v63 = vcombine.high %v7095_v49, %v7095_v49  ;;  %v7225_v14 = vcombine.low %v7095_v49, %v7103_v10  ;;  %v7104_v1 = vcombine.high %v7088_v54, %v7088_v54 }
 0x63a   : > { %v7217_v32 = vcombine.low %v7209_v37, %v7216_v25  ;;  %v7356_v34 = vrot.slane %v7355_v59, 4  ;;  %v7351_v40 = vrot.slane %v7350_v38, 2 }
 0x63b   : > { %v7248_v5 = vcombine.low %v7088_v54, %v10518_v13  ;;  %v7232_v52 = vrot.slane %v7225_v14, %v8915_v60  ;;  %v7239_v8 = vrot.slane %v7105_v63, %v8915_v60  ;;  %v7262_v2 = vrot.slane %v7104_v1, %v8915_v60 }
 0x63c   : > { %v7224_v27 = vrot.slane %v7217_v32, %v8915_v60  ;;  %v7357_v12 = vmax.f32 %v7355_v59, %v7356_v34  ;;  %v7106_v19 = vcombine.high %v10518_v13, %v10518_v13  ;;  %v7352_v1 = vmax.f32 %v7350_v38, %v7351_v40 }
 0x63d   : > { %v7255_v57 = vrot.slane %v7248_v5, %v8915_v60  ;;  %v7240_v33 = vcombine.low %v7232_v52, %v7239_v8 }
 0x63e   : > { %v7362_v45 = vsel %vm6559_vm8, %v7224_v27, -inf  ;;  %v7358_v17 = vrot.slane %v7357_v12, 2 }
 0x63f   : > { %v7263_v0 = vcombine.low %v7255_v57, %v7262_v2  ;;  %v7247_v23 = vrot.slane %v7240_v33, %v8915_v60  ;;  %v7363_v36 = vrot.slane %v7362_v45, 4 }
 0x640   : > { %v7359_v14 = vmax.f32 %v7357_v12, %v7358_v17 }
 0x641   : > { %v7270_v46 = vrot.slane %v7263_v0, %v8915_v60  ;;  %v7369_v43 = vsel %vm6559_vm8, %v7247_v23, -inf  ;;  %v7364_v48 = vmax.f32 %v7362_v45, %v7363_v36  ;;  %v7353_v0 = vrot.slane %v7352_v1, 1 }
 0x642   : > { %v7370_v4 = vrot.slane %v7369_v43, 4  ;;  %v7360_v57 = vrot.slane %v7359_v14, 1 }
 0x643   : > { %v7376_v3 = vsel %vm6559_vm8, %v7270_v46, -inf  ;;  %v7365_v51 = vrot.slane %v7364_v48, 2  ;;  %v7354_v36 = vmax.f32 %v7352_v1, %v7353_v0 }
 0x644   : > { %v7377_v58 = vrot.slane %v7376_v3, 4  ;;  %v7371_v61 = vmax.f32 %v7369_v43, %v7370_v4 }
 0x645   : > { %v7366_v11 = vmax.f32 %v7364_v48, %v7365_v51 }
 0x646   : > { %v7372_v62 = vrot.slane %v7371_v61, 2 }
 0x647   : > { %v7367_v33 = vrot.slane %v7366_v11, 1 }
 0x648   : > { %v7373_v8 = vmax.f32 %v7371_v61, %v7372_v62 }
 0x649   : > { %v7368_v30 = vmax.f32 %v7366_v11, %v7367_v33 }
 0x64a   : > { %v7374_v59 = vrot.slane %v7373_v8, 1 }
 0x64f   : > { %v6986_v28 = vpop.f32.mrf.mxu1 }
 0x650   : > { %v6987_v55 = vadd.f32 %v10497_v20, %v6986_v28 }
 0x651   : > { %v8259_v42 = vpop.f32.mrf.mxu1 }
 0x652   : > { %v6995_v39 = vadd.f32 %v6987_v55, %v10447_v31  ;;  %v7361_v55 = vmax.f32 %v7359_v14, %v7360_v57 }
 0x654   : > { %vm6998_vm13 = vcmp.ge.f32.partialorder %v6995_v39, 0.0  ;;  %v7002_v16 = vmul.f32 %v10501_v44, %v6995_v39  ;;  %v7378_v44 = vmax.f32 %v7376_v3, %v7377_v58  ;;  %v7427_v48 = vsel %vm5065_vm14, %v7361_v55, %v7354_v36 }
 0x655   : > { %vm7538_vm14 = vcmask 64512  }
 0x656   : > { %v7005_v20 = vsel %vm6998_vm13, %v6995_v39, %v7002_v16  ;;  %v7379_v56 = vrot.slane %v7378_v44, 2  ;;  %v7375_v39 = vmax.f32 %v7373_v8, %v7374_v59 }
 0x657   : > { %v7107_v7 = vcombine.high %v7005_v20, %v7005_v20  ;;  %v7114_v50 = vrot.slane %v7005_v20, %v8915_v60  ;;  %v7428_v20 = vsel %vm5067_vm15, %v7368_v30, %v7427_v48 }
 0x658   : > { %v7380_v27 = vmax.f32 %v7378_v44, %v7379_v56  ;;  %v7429_v38 = vsel %vm5069_vm2, %v7375_v39, %v7428_v20 }
 0x659   : > { %v7121_v31 = vrot.slane %v7107_v7, %v8915_v60  ;;  %v7122_v21 = vcombine.high %v7114_v50, %v7114_v50  ;;  %v7130_v53 = vrot.slane %v7114_v50, %v8915_v60 }
 0x65a   : > { %v7381_v42 = vrot.slane %v7380_v27, 1 }
 0x65b   : > { %v7123_v22 = vcombine.high %v7121_v31, %v7121_v31  ;;  %v7137_v49 = vrot.slane %v7121_v31, %v8915_v60  ;;  %v7144_v10 = vrot.slane %v7122_v21, %v8915_v60  ;;  %v7271_v24 = vcombine.low %v7106_v19, %v7130_v53 }
 0x65c   : > { %v7382_v58 = vmax.f32 %v7380_v27, %v7381_v42 }
 0x65d   : > { %v7151_v15 = vrot.slane %v7123_v22, %v8915_v60  ;;  %v7153_v54 = vcombine.high %v7137_v49, %v7137_v49  ;;  %v7278_v13 = vrot.slane %v7271_v24, %v8915_v60  ;;  %v7285_v63 = vrot.slane %v7144_v10, %v8915_v60  ;;  %v7762_v24 = vld [vmem:[%s10603_s14] ss:$0 sm:$0xff] }
 0x65e   : > { %v7761_v41 = vcombine.high %v7130_v53, %v7144_v10  ;;  %v7308_v52 = vrot.slane %v7137_v49, %v8915_v60  ;;  %v7430_v53 = vsel %vm5071_vm4, %v7382_v58, %v7429_v38 }
 0x65f   : > { %v7155_v25 = vcombine.high %v7151_v15, %v7151_v15  ;;  %v7286_v5 = vcombine.low %v7278_v13, %v7285_v63  ;;  %v7317_v9 = vcombine.low %v7151_v15, %v7153_v54 }
 0x660   : > { %v7301_v37 = vrot.slane %v7761_v41, %v8915_v60 }
 0x661   : > { %v7293_v18 = vrot.slane %v7286_v5, %v8915_v60  ;;  %v7324_v29 = vrot.slane %v7317_v9, %v8915_v60  ;;  %v7331_v32 = vrot.slane %v7155_v25, %v8915_v60 }
 0x662   : > { %v7309_v47 = vcombine.low %v7301_v37, %v7308_v52 }
 0x663   : > { %v7332_v2 = vcombine.low %v7324_v29, %v7331_v32  ;;  %v7383_v6 = vsel %vm6559_vm8, %v7293_v18, -inf }
 0x664   : > { %v7316_v26 = vrot.slane %v7309_v47, %v8915_v60  ;;  %v7384_v23 = vrot.slane %v7383_v6, 4 }
 0x665   : > { %v7339_v46 = vrot.slane %v7332_v2, %v8915_v60 }
 0x666   : > { %v7385_v45 = vmax.f32 %v7383_v6, %v7384_v23  ;;  %v7390_v28 = vsel %vm6559_vm8, %v7316_v26, -inf }
 0x667   : > { %v7391_v43 = vrot.slane %v7390_v28, 4  ;;  %v7397_v34 = vsel %vm6559_vm8, %v7339_v46, -inf }
 0x668   : > { %v7386_v3 = vrot.slane %v7385_v45, 2  ;;  %v7398_v35 = vrot.slane %v7397_v34, 4 }
 0x669   : > { %v7392_v4 = vmax.f32 %v7390_v28, %v7391_v43 }
 0x66a   : > { %v7387_v16 = vmax.f32 %v7385_v45, %v7386_v3  ;;  %v7399_v12 = vmax.f32 %v7397_v34, %v7398_v35 }
 0x66b   : > { %v7393_v60 = vrot.slane %v7392_v4, 2 }
 0x66c   : > { %v7388_v7 = vrot.slane %v7387_v16, 1  ;;  %v7400_v50 = vrot.slane %v7399_v12, 2 }
 0x66d   : > { %v7394_v61 = vmax.f32 %v7392_v4, %v7393_v60 }
 0x66e   : > { %v7389_v19 = vmax.f32 %v7387_v16, %v7388_v7  ;;  %v7401_v31 = vmax.f32 %v7399_v12, %v7400_v50 }
 0x66f   : > { %v7395_v21 = vrot.slane %v7394_v61, 1 }
 0x670   : > { %v7402_v17 = vrot.slane %v7401_v31, 1  ;;  %v7431_v51 = vsel %vm5073_vm5, %v7389_v19, %v7430_v53 }
 0x671   : > { %v7396_v44 = vmax.f32 %v7394_v61, %v7395_v21 }
 0x672   : > { %v7403_v22 = vmax.f32 %v7401_v31, %v7402_v17 }
 0x673   : > { %v7432_v49 = vsel %vm5075_vm6, %v7396_v44, %v7431_v51 }
 0x674   : > { %v7433_v10 = vsel %vm5077_vm7, %v7403_v22, %v7432_v49 }
 0x675   : > { %8277 = vmatmul.mubr.msk.f32.vlgmr.msra.gmra.mxu0 %vm5322_vm11, %v7433_v10 }
 0x735   : > { %v7502_v40 = vpop.f32.mrf.mxu0 }
 0x736   : > { %v7503_v62 = vadd.f32 %v7762_v24, %v7502_v40 }
 0x737   : > { %v8278_v15 = vpop.f32.mrf.mxu0 }
 0x738   : > { %7506 = vxpose.xlu1.b32.start.end [1/1] (short) (narrow) %v7503_v62, 16 }
 0x7b4   : > { %v7522_v54 = vpop.trf.xlu1 }
 0x7b5   : > { %7539 = vst.msk [vmem:[%s571_s0] sm:$0xff] %vm7538_vm14, %v7522_v54 }
 0x7b8   : > { %v7523_v13 = vpop.trf.xlu1 }
 0x7b9   : > { %7540 = vst.msk [vmem:[%s571_s0 + $0x8] sm:$0xff] %vm7538_vm14, %v7523_v13 }
 0x7ba PF: > { %s27_s23 = sadd.s32 1, %s8361_s23   ;;  %s10705_s21 = smov %s8357_s22 }
 0x7bb   : > { %p24_p2 = scmp.ge.s32.totalorder %s27_s23, 4   ;;  %s10706_s22 = smov %s10708_s25 }
 0x7bd   :  { %26 = sbr.rel (!%p24_p2) target bundleno = 4 (0x4), region = 119 }
 0x7c2   :  { %7568 = vsyncpa [#allocation3], 1 }
 0x7c3   :  { %7570 = vsyncpa [#allocation3 + $0x1], 1 }

</bundles_post_ra>
